<compile_context>
chip_gen: v7x
topology: tpu7x:2x2x1
jax: 0.10.0
libtpu: 0.0.40
codegen_flags: <defaults>
</compile_context>

<pallas_src>
import numpy as np
import jax
import jax.numpy as jnp
from jax.experimental import pallas as pl
from jax.experimental.pallas import tpu as pltpu


def _dot(a, b):
    return jnp.dot(a, b, preferred_element_type=jnp.float32)


# --------------------------------------------------------------------------
# Kernel 1: output_residue1[b, j] and output_residue2[b, j]
#   Hw[c,j,p,q,o,x] = R[c,j,p,q] * inv_d1[c,j,p,o] * inv_d2[c,j,q,x]
#   or1[b,j,o,x] = sum_c alpha[b,c,o,x] * (inv_d1[c,j]^T @ (R[c,j] @ inv_d2[c,j]))[o,x]
#   or2[b,j,p,q] = sum_c R[c,j,p,q] * ((inv_d1[c,j] @ alpha[b,c]) @ inv_d2[c,j]^T)[p,q]
# --------------------------------------------------------------------------
def pr_residues_kernel(ar_ref, ai_ref,
                       i1r_ref, i1i_ref, i1tr_ref, i1ti_ref,
                       i2r_ref, i2i_ref, i2tr_ref, i2ti_ref,
                       rr_ref, ri_ref,
                       or1r_ref, or1i_ref, or2r_ref, or2i_ref):
    # Block shapes seen here:
    #   ar/ai        (1, C, H, W)   Re/Im of fft2(x) for batch b
    #   i1r/i1i      (C, 1, M1, H)  1/(lambda1 - pole1[:, j])
    #   i1tr/i1ti    (C, 1, H, M1)  transposed copy
    #   i2r/i2i      (C, 1, M2, W)  1/(lambda2 - pole2[:, j])
    #   i2tr/i2ti    (C, 1, W, M2)
    #   rr/ri        (C, 1, M1, M2) weights_residue[:, j]
    #   or1*         (1, 1, H, W)   output_residue1[b, j]
    #   or2*         (1, 1, M1, M2) output_residue2[b, j]
    f32 = jnp.float32
    C = ar_ref.shape[1]
    H = ar_ref.shape[2]
    W = ar_ref.shape[3]
    M1 = rr_ref.shape[2]
    M2 = rr_ref.shape[3]

    acc1r = jnp.zeros((H, W), f32)
    acc1i = jnp.zeros((H, W), f32)
    acc2r = jnp.zeros((M1, M2), f32)
    acc2i = jnp.zeros((M1, M2), f32)

    for c in range(C):  # in-channel contraction, unrolled at trace time
        a_r = ar_ref[0, c]                       # (H, W)
        a_i = ai_ref[0, c]
        d1r, d1i = i1r_ref[c, 0], i1i_ref[c, 0]      # (M1, H)
        d1tr, d1ti = i1tr_ref[c, 0], i1ti_ref[c, 0]  # (H, M1)
        d2r, d2i = i2r_ref[c, 0], i2i_ref[c, 0]      # (M2, W)
        d2tr, d2ti = i2tr_ref[c, 0], i2ti_ref[c, 0]  # (W, M2)
        w_r, w_i = rr_ref[c, 0], ri_ref[c, 0]        # (M1, M2)

        # ---- output_residue1:  G = d1^T @ (R @ d2);  or1 += alpha * G ----
        t_r = _dot(w_r, d2r) - _dot(w_i, d2i)        # (M1, W)
        t_i = _dot(w_r, d2i) + _dot(w_i, d2r)
        g_r = _dot(d1tr, t_r) - _dot(d1ti, t_i)      # (H, W)
        g_i = _dot(d1tr, t_i) + _dot(d1ti, t_r)
        acc1r = acc1r + (a_r * g_r - a_i * g_i)
        acc1i = acc1i + (a_r * g_i + a_i * g_r)

        # ---- output_residue2:  A = (d1 @ alpha) @ d2^T;  or2 += R * A ----
        u_r = _dot(d1r, a_r) - _dot(d1i, a_i)        # (M1, W)
        u_i = _dot(d1r, a_i) + _dot(d1i, a_r)
        v_r = _dot(u_r, d2tr) - _dot(u_i, d2ti)      # (M1, M2)
        v_i = _dot(u_r, d2ti) + _dot(u_i, d2tr)
        acc2r = acc2r + (w_r * v_r - w_i * v_i)
        acc2i = acc2i + (w_r * v_i + w_i * v_r)

    or1r_ref[0, 0] = acc1r
    or1i_ref[0, 0] = acc1i
    or2r_ref[0, 0] = acc2r
    or2i_ref[0, 0] = acc2i


# --------------------------------------------------------------------------
# Kernel 2: pole-exponential reconstruction, written in place over x1
#   out[b,j] = x1[b,j] + Re( sum_c e1t[c,j] @ (or2[b,c] @ e2[c,j]) )
# (e2 is pre-scaled by 1/(H*W) in the wrapper.)
# --------------------------------------------------------------------------
def pr_recon_kernel(x1_ref, or2r_ref, or2i_ref,
                    e1tr_ref, e1ti_ref, e2r_ref, e2i_ref, out_ref):
    f32 = jnp.float32
    C = e1tr_ref.shape[0]
    H = x1_ref.shape[2]
    W = x1_ref.shape[3]

    acc = jnp.zeros((H, W), f32)
    for c in range(C):
        o_r = or2r_ref[0, c]                     # (M1, M2)
        o_i = or2i_ref[0, c]
        e1r, e1i = e1tr_ref[c, 0], e1ti_ref[c, 0]    # (H, M1)
        e2r, e2i = e2r_ref[c, 0], e2i_ref[c, 0]      # (M2, W), pre-scaled
        p_r = _dot(o_r, e2r) - _dot(o_i, e2i)        # (M1, W)
        p_i = _dot(o_r, e2i) + _dot(o_i, e2r)
        acc = acc + _dot(e1r, p_r) - _dot(e1i, p_i)  # Re(e1 @ p)
    out_ref[0, 0] = x1_ref[0, 0] + acc


# --------------------------------------------------------------------------
# Wrapper: FFT glue, batch-invariant factor precompute, two pallas_calls
# --------------------------------------------------------------------------
def _pr2d_forward_impl(x, p1r, p1i, p2r, p2i, rr, ri, ty, tx):
    f32 = jnp.float32
    B, C, H, W = x.shape
    _, O, M1 = p1r.shape
    M2 = p2r.shape[2]
    if C != O:
        # The reference einsum 'kbpq,bipqzx->kizx' reuses one channel axis for
        # both roles, so PR2d is only well-defined for in_channels == out_channels.
        raise ValueError("PR2d requires in_channels == out_channels")

    dty = (ty[0, 1] - ty[0, 0]).astype(f32)
    dtx = (tx[0, 1] - tx[0, 0]).astype(f32)

    # ---- batch-invariant factors, hoisted out of the per-batch grid loop ----
    w1 = (2.0 * np.pi) * jnp.fft.fftfreq(H).astype(f32) / dty   # Im(lambda1), (H,)
    w2 = (2.0 * np.pi) * jnp.fft.fftfreq(W).astype(f32) / dtx   # Im(lambda2), (W,)

    # inv_d1[c,j,p,o] = 1 / (lambda1[o] - pole1[c,j,p]);  lambda1 purely imaginary.
    d1r = (-p1r[..., None]).astype(f32)                                 # (C,O,M1,1)
    d1i = (w1[None, None, None, :] - p1i[..., None]).astype(f32)        # (C,O,M1,H)
    inv_m1 = 1.0 / (d1r * d1r + d1i * d1i)
    i1r = d1r * inv_m1                                                  # (C,O,M1,H)
    i1i = -d1i * inv_m1
    i1tr = jnp.swapaxes(i1r, -1, -2)                                    # (C,O,H,M1)
    i1ti = jnp.swapaxes(i1i, -1, -2)

    d2r = (-p2r[..., None]).astype(f32)                                 # (C,O,M2,1)
    d2i = (w2[None, None, None, :] - p2i[..., None]).astype(f32)        # (C,O,M2,W)
    inv_m2 = 1.0 / (d2r * d2r + d2i * d2i)
    i2r = d2r * inv_m2                                                  # (C,O,M2,W)
    i2i = -d2i * inv_m2
    i2tr = jnp.swapaxes(i2r, -1, -2)                                    # (C,O,W,M2)
    i2ti = jnp.swapaxes(i2i, -1, -2)

    # e1[c,j,p,z] = exp(pole1[c,j,p]*ty[z]);  e2 pre-scaled by 1/(H*W).
    ty1 = ty.reshape(-1).astype(f32)
    tx1 = tx.reshape(-1).astype(f32)
    m1e = jnp.exp(p1r[..., None].astype(f32) * ty1)                     # (C,O,M1,H)
    ph1 = p1i[..., None].astype(f32) * ty1
    e1tr = jnp.swapaxes(m1e * jnp.cos(ph1), -1, -2)                     # (C,O,H,M1)
    e1ti = jnp.swapaxes(m1e * jnp.sin(ph1), -1, -2)
    scale = 1.0 / float(H * W)
    m2e = jnp.exp(p2r[..., None].astype(f32) * tx1) * scale             # (C,O,M2,W)
    ph2 = p2i[..., None].astype(f32) * tx1
    e2r = m2e * jnp.cos(ph2)
    e2i = m2e * jnp.sin(ph2)

    rr4 = rr.astype(f32)
    ri4 = ri.astype(f32)

    # TODO(synk): torch.fft.fft2 / ifft2 / fftfreq have no Pallas-TPU primitive;
    # they are O(N log N) glue done in XLA around the Pallas contractions.
    alpha = jnp.fft.fft2(x, axes=(-2, -1))
    ar = jnp.real(alpha).astype(f32)                                    # (B,C,H,W)
    ai = jnp.imag(alpha).astype(f32)

    batch_map = lambda b, j: (b, 0, 0, 0)   # alpha / or2 blocks: stream per batch
    param_map = lambda b, j: (0, j, 0, 0)   # parameter factors: slice by out-channel
    out_map = lambda b, j: (b, j, 0, 0)     # per-(b, j) output blocks

    cparams = pltpu.CompilerParams(
        dimension_semantics=("parallel", "parallel"),
        vmem_limit_bytes=48 * 1024 * 1024,  # safe on v7x (64 MiB physical VMEM)
    )

    or1r, or1i, or2r, or2i = pl.pallas_call(
        pr_residues_kernel,
        out_shape=(
            jax.ShapeDtypeStruct((B, O, H, W), f32),      # Re(output_residue1)
            jax.ShapeDtypeStruct((B, O, H, W), f32),      # Im(output_residue1)
            jax.ShapeDtypeStruct((B, O, M1, M2), f32),    # Re(output_residue2)
            jax.ShapeDtypeStruct((B, O, M1, M2), f32),    # Im(output_residue2)
        ),
        grid=(B, O),
        in_specs=[
            pl.BlockSpec((1, C, H, W), batch_map),        # ar
            pl.BlockSpec((1, C, H, W), batch_map),        # ai
            pl.BlockSpec((C, 1, M1, H), param_map),       # Re(1/d1)
            pl.BlockSpec((C, 1, M1, H), param_map),       # Im(1/d1)
            pl.BlockSpec((C, 1, H, M1), param_map),       # Re(1/d1)^T
            pl.BlockSpec((C, 1, H, M1), param_map),       # Im(1/d1)^T
            pl.BlockSpec((C, 1, M2, W), param_map),       # Re(1/d2)
            pl.BlockSpec((C, 1, M2, W), param_map),       # Im(1/d2)
            pl.BlockSpec((C, 1, W, M2), param_map),       # Re(1/d2)^T
            pl.BlockSpec((C, 1, W, M2), param_map),       # Im(1/d2)^T
            pl.BlockSpec((C, 1, M1, M2), param_map),      # Re(residue)
            pl.BlockSpec((C, 1, M1, M2), param_map),      # Im(residue)
        ],
        out_specs=(
            pl.BlockSpec((1, 1, H, W), out_map),
            pl.BlockSpec((1, 1, H, W), out_map),
            pl.BlockSpec((1, 1, M1, M2), out_map),
            pl.BlockSpec((1, 1, M1, M2), out_map),
        ),
        compiler_params=cparams,
    )(ar, ai, i1r, i1i, i1tr, i1ti, i2r, i2i, i2tr, i2ti, rr4, ri4)

    # x1 = Re(ifft2(output_residue1))  -- FFT glue, see TODO above.
    x1 = jnp.real(jnp.fft.ifft2(or1r + 1j * or1i, s=(H, W), axes=(-2, -1))).astype(f32)

    out = pl.pallas_call(
        pr_recon_kernel,
        out_shape=jax.ShapeDtypeStruct((B, O, H, W), f32),
        grid=(B, O),
        in_specs=[
            pl.BlockSpec((1, 1, H, W), out_map),          # x1 (aliased with output)
            pl.BlockSpec((1, O, M1, M2), batch_map),      # Re(output_residue2)
            pl.BlockSpec((1, O, M1, M2), batch_map),      # Im(output_residue2)
            pl.BlockSpec((C, 1, H, M1), param_map),       # Re(exp(pole1*ty))^T
            pl.BlockSpec((C, 1, H, M1), param_map),       # Im(exp(pole1*ty))^T
            pl.BlockSpec((C, 1, M2, W), param_map),       # Re(exp(pole2*tx))/(H*W)
            pl.BlockSpec((C, 1, M2, W), param_map),       # Im(exp(pole2*tx))/(H*W)
        ],
        out_specs=pl.BlockSpec((1, 1, H, W), out_map),
        input_output_aliases={0: 0},                      # write x1 + x2 in place
        compiler_params=cparams,
    )(x1, or2r, or2i, e1tr, e1ti, e2r, e2i)
    return out


pr2d_forward = jax.jit(_pr2d_forward_impl)


# --------------------------------------------------------------------------
# Pure numpy (complex128) transcription of PR2d.forward for verification
# --------------------------------------------------------------------------
def pr2d_reference_numpy(x, p1, p2, res, ty, tx):
    x = np.asarray(x, dtype=np.float64)
    p1 = np.asarray(p1, dtype=np.complex128)
    p2 = np.asarray(p2, dtype=np.complex128)
    res = np.asarray(res, dtype=np.complex128)
    ty = np.asarray(ty, dtype=np.float64)
    tx = np.asarray(tx, dtype=np.float64)
    B, C, H, W = x.shape
    dty = ty[0, 1] - ty[0, 0]
    dtx = tx[0, 1] - tx[0, 0]
    alpha = np.fft.fft2(x, axes=(-2, -1))
    lam1 = (np.fft.fftfreq(H, d=dty) * 2 * np.pi * 1j).reshape(H, 1, 1, 1)
    lam2 = (np.fft.fftfreq(W, d=dtx) * 2 * np.pi * 1j).reshape(W, 1, 1, 1)
    term1 = 1.0 / np.einsum('pbix,qbik->pqbixk', lam1 - p1, lam2 - p2)
    Hw = np.einsum('bixk,pqbixk->pqbixk', res, term1)
    out1 = np.einsum('biox,oxikpq->bkox', alpha, Hw)
    out2 = np.einsum('biox,oxikpq->bkpq', alpha, Hw)
    x1 = np.real(np.fft.ifft2(out1, s=(H, W), axes=(-2, -1)))
    t1 = np.einsum('bip,kz->bipz', p1, ty.astype(np.complex128).reshape(1, -1))
    t2 = np.einsum('biq,kx->biqx', p2, tx.astype(np.complex128).reshape(1, -1))
    t3 = np.einsum('bipz,biqx->bipqzx', np.exp(t1), np.exp(t2))
    x2 = np.real(np.einsum('kbpq,bipqzx->kizx', out2, t3))
    x2 = x2 / W / H
    return x1 + x2


if __name__ == "__main__":
    # Small shapes consistent with the module.  The reference einsum
    # 'kbpq,bipqzx->kizx' implicitly requires in_channels == out_channels.
    B, C_in, C_out = 2, 4, 4
    H, W = 16, 16
    modes1, modes2 = 4, 4
    scale = 1.0 / (C_in * C_out)

    key = jax.random.PRNGKey(0)
    ks = jax.random.split(key, 7)
    p1r = scale * jax.random.uniform(ks[0], (C_in, C_out, modes1), dtype=jnp.float32)
    p1i = scale * jax.random.uniform(ks[1], (C_in, C_out, modes1), dtype=jnp.float32)
    p2r = scale * jax.random.uniform(ks[2], (C_in, C_out, modes2), dtype=jnp.float32)
    p2i = scale * jax.random.uniform(ks[3], (C_in, C_out, modes2), dtype=jnp.float32)
    rr = scale * jax.random.uniform(ks[4], (C_in, C_out, modes1, modes2), dtype=jnp.float32)
    ri = scale * jax.random.uniform(ks[5], (C_in, C_out, modes1, modes2), dtype=jnp.float32)
    x = jax.random.normal(ks[6], (B, C_in, H, W), dtype=jnp.float32)

    # Synthetic coordinate grids standing in for reader.read_field('x') / ('t'):
    ty = jnp.linspace(0.0, 1.0, H, endpoint=False, dtype=jnp.float32).reshape(1, H)  # "X"
    tx = jnp.linspace(0.0, 1.0, W, endpoint=False, dtype=jnp.float32).reshape(1, W)  # "T"

    out = pr2d_forward(x, p1r, p1i, p2r, p2i, rr, ri, ty, tx)
    out = jax.block_until_ready(out)

    ref = pr2d_reference_numpy(
        np.asarray(x),
        np.asarray(p1r) + 1j * np.asarray(p1i),
        np.asarray(p2r) + 1j * np.asarray(p2i),
        np.asarray(rr) + 1j * np.asarray(ri),
        np.asarray(ty), np.asarray(tx))

    assert out.shape == (B, C_out, H, W), out.shape
    err = float(np.max(np.abs(np.asarray(out, dtype=np.float64) - ref)))
    denom = max(1.0, float(np.max(np.abs(ref))))
    assert err / denom < 5e-3, (err, denom)
    print("KERNEL_OK")
</pallas_src>

<mosaic_0001>
module attributes {stable_mosaic.version = 11 : i64} {
  func.func @pr_residues_kernel(%arg0: i32, %arg1: i32, %arg2: memref<1x4x16x16xf32, #tpu.memory_space<vmem>>, %arg3: memref<1x4x16x16xf32, #tpu.memory_space<vmem>>, %arg4: memref<4x1x4x16xf32, #tpu.memory_space<vmem>>, %arg5: memref<4x1x4x16xf32, #tpu.memory_space<vmem>>, %arg6: memref<4x1x16x4xf32, #tpu.memory_space<vmem>>, %arg7: memref<4x1x16x4xf32, #tpu.memory_space<vmem>>, %arg8: memref<4x1x4x16xf32, #tpu.memory_space<vmem>>, %arg9: memref<4x1x4x16xf32, #tpu.memory_space<vmem>>, %arg10: memref<4x1x16x4xf32, #tpu.memory_space<vmem>>, %arg11: memref<4x1x16x4xf32, #tpu.memory_space<vmem>>, %arg12: memref<4x1x4x4xf32, #tpu.memory_space<vmem>>, %arg13: memref<4x1x4x4xf32, #tpu.memory_space<vmem>>, %arg14: memref<1x1x16x16xf32, #tpu.memory_space<vmem>>, %arg15: memref<1x1x16x16xf32, #tpu.memory_space<vmem>>, %arg16: memref<1x1x4x4xf32, #tpu.memory_space<vmem>>, %arg17: memref<1x1x4x4xf32, #tpu.memory_space<vmem>>) attributes {dimension_semantics = [#tpu.dimension_semantics<parallel>, #tpu.dimension_semantics<parallel>], iteration_bounds = array<i64: 2, 4>, scalar_prefetch = 0 : i64, scratch_operands = 0 : i64, tpu.core_type = #tpu.core_type<tc>, window_params = [{transform_indices = @transform_0, window_bounds = array<i64: 1, 4, 16, 16>}, {transform_indices = @transform_1, window_bounds = array<i64: 1, 4, 16, 16>}, {transform_indices = @transform_2, window_bounds = array<i64: 4, 1, 4, 16>}, {transform_indices = @transform_3, window_bounds = array<i64: 4, 1, 4, 16>}, {transform_indices = @transform_4, window_bounds = array<i64: 4, 1, 16, 4>}, {transform_indices = @transform_5, window_bounds = array<i64: 4, 1, 16, 4>}, {transform_indices = @transform_6, window_bounds = array<i64: 4, 1, 4, 16>}, {transform_indices = @transform_7, window_bounds = array<i64: 4, 1, 4, 16>}, {transform_indices = @transform_8, window_bounds = array<i64: 4, 1, 16, 4>}, {transform_indices = @transform_9, window_bounds = array<i64: 4, 1, 16, 4>}, {transform_indices = @transform_10, window_bounds = array<i64: 4, 1, 4, 4>}, {transform_indices = @transform_11, window_bounds = array<i64: 4, 1, 4, 4>}, {transform_indices = @transform_12, window_bounds = array<i64: 1, 1, 16, 16>}, {transform_indices = @transform_13, window_bounds = array<i64: 1, 1, 16, 16>}, {transform_indices = @transform_14, window_bounds = array<i64: 1, 1, 4, 4>}, {transform_indices = @transform_15, window_bounds = array<i64: 1, 1, 4, 4>}]} {
    %cst = arith.constant 0.000000e+00 : f32
    %0 = vector.broadcast %cst : f32 to vector<16x16xf32>
    %cst_0 = arith.constant 0.000000e+00 : f32
    %1 = vector.broadcast %cst_0 : f32 to vector<16x16xf32>
    %cst_1 = arith.constant 0.000000e+00 : f32
    %2 = vector.broadcast %cst_1 : f32 to vector<4x4xf32>
    %cst_2 = arith.constant 0.000000e+00 : f32
    %3 = vector.broadcast %cst_2 : f32 to vector<4x4xf32>
    %c0 = arith.constant 0 : index
    %c0_3 = arith.constant 0 : index
    %c0_4 = arith.constant 0 : index
    %c0_5 = arith.constant 0 : index
    %4 = vector.load %arg2[%c0, %c0_3, %c0_4, %c0_5] : memref<1x4x16x16xf32, #tpu.memory_space<vmem>>, vector<1x1x16x16xf32>
    %5 = vector.shape_cast %4 : vector<1x1x16x16xf32> to vector<16x16xf32>
    %c0_6 = arith.constant 0 : index
    %c0_7 = arith.constant 0 : index
    %c0_8 = arith.constant 0 : index
    %c0_9 = arith.constant 0 : index
    %6 = vector.load %arg3[%c0_6, %c0_7, %c0_8, %c0_9] : memref<1x4x16x16xf32, #tpu.memory_space<vmem>>, vector<1x1x16x16xf32>
    %7 = vector.shape_cast %6 : vector<1x1x16x16xf32> to vector<16x16xf32>
    %c0_10 = arith.constant 0 : index
    %c0_11 = arith.constant 0 : index
    %c0_12 = arith.constant 0 : index
    %c0_13 = arith.constant 0 : index
    %8 = vector.load %arg4[%c0_10, %c0_11, %c0_12, %c0_13] : memref<4x1x4x16xf32, #tpu.memory_space<vmem>>, vector<1x1x4x16xf32>
    %9 = vector.shape_cast %8 : vector<1x1x4x16xf32> to vector<4x16xf32>
    %c0_14 = arith.constant 0 : index
    %c0_15 = arith.constant 0 : index
    %c0_16 = arith.constant 0 : index
    %c0_17 = arith.constant 0 : index
    %10 = vector.load %arg5[%c0_14, %c0_15, %c0_16, %c0_17] : memref<4x1x4x16xf32, #tpu.memory_space<vmem>>, vector<1x1x4x16xf32>
    %11 = vector.shape_cast %10 : vector<1x1x4x16xf32> to vector<4x16xf32>
    %c0_18 = arith.constant 0 : index
    %c0_19 = arith.constant 0 : index
    %c0_20 = arith.constant 0 : index
    %c0_21 = arith.constant 0 : index
    %12 = vector.load %arg6[%c0_18, %c0_19, %c0_20, %c0_21] : memref<4x1x16x4xf32, #tpu.memory_space<vmem>>, vector<1x1x16x4xf32>
    %13 = vector.shape_cast %12 : vector<1x1x16x4xf32> to vector<16x4xf32>
    %c0_22 = arith.constant 0 : index
    %c0_23 = arith.constant 0 : index
    %c0_24 = arith.constant 0 : index
    %c0_25 = arith.constant 0 : index
    %14 = vector.load %arg7[%c0_22, %c0_23, %c0_24, %c0_25] : memref<4x1x16x4xf32, #tpu.memory_space<vmem>>, vector<1x1x16x4xf32>
    %15 = vector.shape_cast %14 : vector<1x1x16x4xf32> to vector<16x4xf32>
    %c0_26 = arith.constant 0 : index
    %c0_27 = arith.constant 0 : index
    %c0_28 = arith.constant 0 : index
    %c0_29 = arith.constant 0 : index
    %16 = vector.load %arg8[%c0_26, %c0_27, %c0_28, %c0_29] : memref<4x1x4x16xf32, #tpu.memory_space<vmem>>, vector<1x1x4x16xf32>
    %17 = vector.shape_cast %16 : vector<1x1x4x16xf32> to vector<4x16xf32>
    %c0_30 = arith.constant 0 : index
    %c0_31 = arith.constant 0 : index
    %c0_32 = arith.constant 0 : index
    %c0_33 = arith.constant 0 : index
    %18 = vector.load %arg9[%c0_30, %c0_31, %c0_32, %c0_33] : memref<4x1x4x16xf32, #tpu.memory_space<vmem>>, vector<1x1x4x16xf32>
    %19 = vector.shape_cast %18 : vector<1x1x4x16xf32> to vector<4x16xf32>
    %c0_34 = arith.constant 0 : index
    %c0_35 = arith.constant 0 : index
    %c0_36 = arith.constant 0 : index
    %c0_37 = arith.constant 0 : index
    %20 = vector.load %arg10[%c0_34, %c0_35, %c0_36, %c0_37] : memref<4x1x16x4xf32, #tpu.memory_space<vmem>>, vector<1x1x16x4xf32>
    %21 = vector.shape_cast %20 : vector<1x1x16x4xf32> to vector<16x4xf32>
    %c0_38 = arith.constant 0 : index
    %c0_39 = arith.constant 0 : index
    %c0_40 = arith.constant 0 : index
    %c0_41 = arith.constant 0 : index
    %22 = vector.load %arg11[%c0_38, %c0_39, %c0_40, %c0_41] : memref<4x1x16x4xf32, #tpu.memory_space<vmem>>, vector<1x1x16x4xf32>
    %23 = vector.shape_cast %22 : vector<1x1x16x4xf32> to vector<16x4xf32>
    %c0_42 = arith.constant 0 : index
    %c0_43 = arith.constant 0 : index
    %c0_44 = arith.constant 0 : index
    %c0_45 = arith.constant 0 : index
    %24 = vector.load %arg12[%c0_42, %c0_43, %c0_44, %c0_45] : memref<4x1x4x4xf32, #tpu.memory_space<vmem>>, vector<1x1x4x4xf32>
    %25 = vector.shape_cast %24 : vector<1x1x4x4xf32> to vector<4x4xf32>
    %c0_46 = arith.constant 0 : index
    %c0_47 = arith.constant 0 : index
    %c0_48 = arith.constant 0 : index
    %c0_49 = arith.constant 0 : index
    %26 = vector.load %arg13[%c0_46, %c0_47, %c0_48, %c0_49] : memref<4x1x4x4xf32, #tpu.memory_space<vmem>>, vector<1x1x4x4xf32>
    %27 = vector.shape_cast %26 : vector<1x1x4x4xf32> to vector<4x4xf32>
    %cst_50 = arith.constant dense<0.000000e+00> : vector<4x16xf32>
    %28 = tpu.matmul %25, %17, %cst_50 {dimension_numbers = #tpu.dot_dimension_numbers<[1], [0], [0], [1], [0, 0, 1, 1], [], []>} : vector<4x4xf32>, vector<4x16xf32>, vector<4x16xf32> -> vector<4x16xf32>
    %cst_51 = arith.constant dense<0.000000e+00> : vector<4x16xf32>
    %29 = tpu.matmul %27, %19, %cst_51 {dimension_numbers = #tpu.dot_dimension_numbers<[1], [0], [0], [1], [0, 0, 1, 1], [], []>} : vector<4x4xf32>, vector<4x16xf32>, vector<4x16xf32> -> vector<4x16xf32>
    %30 = arith.subf %28, %29 : vector<4x16xf32>
    %cst_52 = arith.constant dense<0.000000e+00> : vector<4x16xf32>
    %31 = tpu.matmul %25, %19, %cst_52 {dimension_numbers = #tpu.dot_dimension_numbers<[1], [0], [0], [1], [0, 0, 1, 1], [], []>} : vector<4x4xf32>, vector<4x16xf32>, vector<4x16xf32> -> vector<4x16xf32>
    %cst_53 = arith.constant dense<0.000000e+00> : vector<4x16xf32>
    %32 = tpu.matmul %27, %17, %cst_53 {dimension_numbers = #tpu.dot_dimension_numbers<[1], [0], [0], [1], [0, 0, 1, 1], [], []>} : vector<4x4xf32>, vector<4x16xf32>, vector<4x16xf32> -> vector<4x16xf32>
    %33 = arith.addf %31, %32 : vector<4x16xf32>
    %cst_54 = arith.constant dense<0.000000e+00> : vector<16x16xf32>
    %34 = tpu.matmul %13, %30, %cst_54 {dimension_numbers = #tpu.dot_dimension_numbers<[1], [0], [0], [1], [0, 0, 1, 1], [], []>} : vector<16x4xf32>, vector<4x16xf32>, vector<16x16xf32> -> vector<16x16xf32>
    %cst_55 = arith.constant dense<0.000000e+00> : vector<16x16xf32>
    %35 = tpu.matmul %15, %33, %cst_55 {dimension_numbers = #tpu.dot_dimension_numbers<[1], [0], [0], [1], [0, 0, 1, 1], [], []>} : vector<16x4xf32>, vector<4x16xf32>, vector<16x16xf32> -> vector<16x16xf32>
    %36 = arith.subf %34, %35 : vector<16x16xf32>
    %cst_56 = arith.constant dense<0.000000e+00> : vector<16x16xf32>
    %37 = tpu.matmul %13, %33, %cst_56 {dimension_numbers = #tpu.dot_dimension_numbers<[1], [0], [0], [1], [0, 0, 1, 1], [], []>} : vector<16x4xf32>, vector<4x16xf32>, vector<16x16xf32> -> vector<16x16xf32>
    %cst_57 = arith.constant dense<0.000000e+00> : vector<16x16xf32>
    %38 = tpu.matmul %15, %30, %cst_57 {dimension_numbers = #tpu.dot_dimension_numbers<[1], [0], [0], [1], [0, 0, 1, 1], [], []>} : vector<16x4xf32>, vector<4x16xf32>, vector<16x16xf32> -> vector<16x16xf32>
    %39 = arith.addf %37, %38 : vector<16x16xf32>
    %40 = arith.mulf %5, %36 : vector<16x16xf32>
    %41 = arith.mulf %7, %39 : vector<16x16xf32>
    %42 = arith.subf %40, %41 : vector<16x16xf32>
    %43 = arith.addf %0, %42 : vector<16x16xf32>
    %44 = arith.mulf %5, %39 : vector<16x16xf32>
    %45 = arith.mulf %7, %36 : vector<16x16xf32>
    %46 = arith.addf %44, %45 : vector<16x16xf32>
    %47 = arith.addf %1, %46 : vector<16x16xf32>
    %cst_58 = arith.constant dense<0.000000e+00> : vector<4x16xf32>
    %48 = tpu.matmul %9, %5, %cst_58 {dimension_numbers = #tpu.dot_dimension_numbers<[1], [0], [0], [1], [0, 0, 1, 1], [], []>} : vector<4x16xf32>, vector<16x16xf32>, vector<4x16xf32> -> vector<4x16xf32>
    %cst_59 = arith.constant dense<0.000000e+00> : vector<4x16xf32>
    %49 = tpu.matmul %11, %7, %cst_59 {dimension_numbers = #tpu.dot_dimension_numbers<[1], [0], [0], [1], [0, 0, 1, 1], [], []>} : vector<4x16xf32>, vector<16x16xf32>, vector<4x16xf32> -> vector<4x16xf32>
    %50 = arith.subf %48, %49 : vector<4x16xf32>
    %cst_60 = arith.constant dense<0.000000e+00> : vector<4x16xf32>
    %51 = tpu.matmul %9, %7, %cst_60 {dimension_numbers = #tpu.dot_dimension_numbers<[1], [0], [0], [1], [0, 0, 1, 1], [], []>} : vector<4x16xf32>, vector<16x16xf32>, vector<4x16xf32> -> vector<4x16xf32>
    %cst_61 = arith.constant dense<0.000000e+00> : vector<4x16xf32>
    %52 = tpu.matmul %11, %5, %cst_61 {dimension_numbers = #tpu.dot_dimension_numbers<[1], [0], [0], [1], [0, 0, 1, 1], [], []>} : vector<4x16xf32>, vector<16x16xf32>, vector<4x16xf32> -> vector<4x16xf32>
    %53 = arith.addf %51, %52 : vector<4x16xf32>
    %cst_62 = arith.constant dense<0.000000e+00> : vector<4x4xf32>
    %54 = tpu.matmul %50, %21, %cst_62 {dimension_numbers = #tpu.dot_dimension_numbers<[1], [0], [0], [1], [0, 0, 1, 1], [], []>} : vector<4x16xf32>, vector<16x4xf32>, vector<4x4xf32> -> vector<4x4xf32>
    %cst_63 = arith.constant dense<0.000000e+00> : vector<4x4xf32>
    %55 = tpu.matmul %53, %23, %cst_63 {dimension_numbers = #tpu.dot_dimension_numbers<[1], [0], [0], [1], [0, 0, 1, 1], [], []>} : vector<4x16xf32>, vector<16x4xf32>, vector<4x4xf32> -> vector<4x4xf32>
    %56 = arith.subf %54, %55 : vector<4x4xf32>
    %cst_64 = arith.constant dense<0.000000e+00> : vector<4x4xf32>
    %57 = tpu.matmul %50, %23, %cst_64 {dimension_numbers = #tpu.dot_dimension_numbers<[1], [0], [0], [1], [0, 0, 1, 1], [], []>} : vector<4x16xf32>, vector<16x4xf32>, vector<4x4xf32> -> vector<4x4xf32>
    %cst_65 = arith.constant dense<0.000000e+00> : vector<4x4xf32>
    %58 = tpu.matmul %53, %21, %cst_65 {dimension_numbers = #tpu.dot_dimension_numbers<[1], [0], [0], [1], [0, 0, 1, 1], [], []>} : vector<4x16xf32>, vector<16x4xf32>, vector<4x4xf32> -> vector<4x4xf32>
    %59 = arith.addf %57, %58 : vector<4x4xf32>
    %60 = arith.mulf %25, %56 : vector<4x4xf32>
    %61 = arith.mulf %27, %59 : vector<4x4xf32>
    %62 = arith.subf %60, %61 : vector<4x4xf32>
    %63 = arith.addf %2, %62 : vector<4x4xf32>
    %64 = arith.mulf %25, %59 : vector<4x4xf32>
    %65 = arith.mulf %27, %56 : vector<4x4xf32>
    %66 = arith.addf %64, %65 : vector<4x4xf32>
    %67 = arith.addf %3, %66 : vector<4x4xf32>
    %c0_66 = arith.constant 0 : index
    %c1 = arith.constant 1 : index
    %c0_67 = arith.constant 0 : index
    %c0_68 = arith.constant 0 : index
    %68 = vector.load %arg2[%c0_66, %c1, %c0_67, %c0_68] : memref<1x4x16x16xf32, #tpu.memory_space<vmem>>, vector<1x1x16x16xf32>
    %69 = vector.shape_cast %68 : vector<1x1x16x16xf32> to vector<16x16xf32>
    %c0_69 = arith.constant 0 : index
    %c1_70 = arith.constant 1 : index
    %c0_71 = arith.constant 0 : index
    %c0_72 = arith.constant 0 : index
    %70 = vector.load %arg3[%c0_69, %c1_70, %c0_71, %c0_72] : memref<1x4x16x16xf32, #tpu.memory_space<vmem>>, vector<1x1x16x16xf32>
    %71 = vector.shape_cast %70 : vector<1x1x16x16xf32> to vector<16x16xf32>
    %c1_73 = arith.constant 1 : index
    %c0_74 = arith.constant 0 : index
    %c0_75 = arith.constant 0 : index
    %c0_76 = arith.constant 0 : index
    %72 = vector.load %arg4[%c1_73, %c0_74, %c0_75, %c0_76] : memref<4x1x4x16xf32, #tpu.memory_space<vmem>>, vector<1x1x4x16xf32>
    %73 = vector.shape_cast %72 : vector<1x1x4x16xf32> to vector<4x16xf32>
    %c1_77 = arith.constant 1 : index
    %c0_78 = arith.constant 0 : index
    %c0_79 = arith.constant 0 : index
    %c0_80 = arith.constant 0 : index
    %74 = vector.load %arg5[%c1_77, %c0_78, %c0_79, %c0_80] : memref<4x1x4x16xf32, #tpu.memory_space<vmem>>, vector<1x1x4x16xf32>
    %75 = vector.shape_cast %74 : vector<1x1x4x16xf32> to vector<4x16xf32>
    %c1_81 = arith.constant 1 : index
    %c0_82 = arith.constant 0 : index
    %c0_83 = arith.constant 0 : index
    %c0_84 = arith.constant 0 : index
    %76 = vector.load %arg6[%c1_81, %c0_82, %c0_83, %c0_84] : memref<4x1x16x4xf32, #tpu.memory_space<vmem>>, vector<1x1x16x4xf32>
    %77 = vector.shape_cast %76 : vector<1x1x16x4xf32> to vector<16x4xf32>
    %c1_85 = arith.constant 1 : index
    %c0_86 = arith.constant 0 : index
    %c0_87 = arith.constant 0 : index
    %c0_88 = arith.constant 0 : index
    %78 = vector.load %arg7[%c1_85, %c0_86, %c0_87, %c0_88] : memref<4x1x16x4xf32, #tpu.memory_space<vmem>>, vector<1x1x16x4xf32>
    %79 = vector.shape_cast %78 : vector<1x1x16x4xf32> to vector<16x4xf32>
    %c1_89 = arith.constant 1 : index
    %c0_90 = arith.constant 0 : index
    %c0_91 = arith.constant 0 : index
    %c0_92 = arith.constant 0 : index
    %80 = vector.load %arg8[%c1_89, %c0_90, %c0_91, %c0_92] : memref<4x1x4x16xf32, #tpu.memory_space<vmem>>, vector<1x1x4x16xf32>
    %81 = vector.shape_cast %80 : vector<1x1x4x16xf32> to vector<4x16xf32>
    %c1_93 = arith.constant 1 : index
    %c0_94 = arith.constant 0 : index
    %c0_95 = arith.constant 0 : index
    %c0_96 = arith.constant 0 : index
    %82 = vector.load %arg9[%c1_93, %c0_94, %c0_95, %c0_96] : memref<4x1x4x16xf32, #tpu.memory_space<vmem>>, vector<1x1x4x16xf32>
    %83 = vector.shape_cast %82 : vector<1x1x4x16xf32> to vector<4x16xf32>
    %c1_97 = arith.constant 1 : index
    %c0_98 = arith.constant 0 : index
    %c0_99 = arith.constant 0 : index
    %c0_100 = arith.constant 0 : index
    %84 = vector.load %arg10[%c1_97, %c0_98, %c0_99, %c0_100] : memref<4x1x16x4xf32, #tpu.memory_space<vmem>>, vector<1x1x16x4xf32>
    %85 = vector.shape_cast %84 : vector<1x1x16x4xf32> to vector<16x4xf32>
    %c1_101 = arith.constant 1 : index
    %c0_102 = arith.constant 0 : index
    %c0_103 = arith.constant 0 : index
    %c0_104 = arith.constant 0 : index
    %86 = vector.load %arg11[%c1_101, %c0_102, %c0_103, %c0_104] : memref<4x1x16x4xf32, #tpu.memory_space<vmem>>, vector<1x1x16x4xf32>
    %87 = vector.shape_cast %86 : vector<1x1x16x4xf32> to vector<16x4xf32>
    %c1_105 = arith.constant 1 : index
    %c0_106 = arith.constant 0 : index
    %c0_107 = arith.constant 0 : index
    %c0_108 = arith.constant 0 : index
    %88 = vector.load %arg12[%c1_105, %c0_106, %c0_107, %c0_108] : memref<4x1x4x4xf32, #tpu.memory_space<vmem>>, vector<1x1x4x4xf32>
    %89 = vector.shape_cast %88 : vector<1x1x4x4xf32> to vector<4x4xf32>
    %c1_109 = arith.constant 1 : index
    %c0_110 = arith.constant 0 : index
    %c0_111 = arith.constant 0 : index
    %c0_112 = arith.constant 0 : index
    %90 = vector.load %arg13[%c1_109, %c0_110, %c0_111, %c0_112] : memref<4x1x4x4xf32, #tpu.memory_space<vmem>>, vector<1x1x4x4xf32>
    %91 = vector.shape_cast %90 : vector<1x1x4x4xf32> to vector<4x4xf32>
    %cst_113 = arith.constant dense<0.000000e+00> : vector<4x16xf32>
    %92 = tpu.matmul %89, %81, %cst_113 {dimension_numbers = #tpu.dot_dimension_numbers<[1], [0], [0], [1], [0, 0, 1, 1], [], []>} : vector<4x4xf32>, vector<4x16xf32>, vector<4x16xf32> -> vector<4x16xf32>
    %cst_114 = arith.constant dense<0.000000e+00> : vector<4x16xf32>
    %93 = tpu.matmul %91, %83, %cst_114 {dimension_numbers = #tpu.dot_dimension_numbers<[1], [0], [0], [1], [0, 0, 1, 1], [], []>} : vector<4x4xf32>, vector<4x16xf32>, vector<4x16xf32> -> vector<4x16xf32>
    %94 = arith.subf %92, %93 : vector<4x16xf32>
    %cst_115 = arith.constant dense<0.000000e+00> : vector<4x16xf32>
    %95 = tpu.matmul %89, %83, %cst_115 {dimension_numbers = #tpu.dot_dimension_numbers<[1], [0], [0], [1], [0, 0, 1, 1], [], []>} : vector<4x4xf32>, vector<4x16xf32>, vector<4x16xf32> -> vector<4x16xf32>
    %cst_116 = arith.constant dense<0.000000e+00> : vector<4x16xf32>
    %96 = tpu.matmul %91, %81, %cst_116 {dimension_numbers = #tpu.dot_dimension_numbers<[1], [0], [0], [1], [0, 0, 1, 1], [], []>} : vector<4x4xf32>, vector<4x16xf32>, vector<4x16xf32> -> vector<4x16xf32>
    %97 = arith.addf %95, %96 : vector<4x16xf32>
    %cst_117 = arith.constant dense<0.000000e+00> : vector<16x16xf32>
    %98 = tpu.matmul %77, %94, %cst_117 {dimension_numbers = #tpu.dot_dimension_numbers<[1], [0], [0], [1], [0, 0, 1, 1], [], []>} : vector<16x4xf32>, vector<4x16xf32>, vector<16x16xf32> -> vector<16x16xf32>
    %cst_118 = arith.constant dense<0.000000e+00> : vector<16x16xf32>
    %99 = tpu.matmul %79, %97, %cst_118 {dimension_numbers = #tpu.dot_dimension_numbers<[1], [0], [0], [1], [0, 0, 1, 1], [], []>} : vector<16x4xf32>, vector<4x16xf32>, vector<16x16xf32> -> vector<16x16xf32>
    %100 = arith.subf %98, %99 : vector<16x16xf32>
    %cst_119 = arith.constant dense<0.000000e+00> : vector<16x16xf32>
    %101 = tpu.matmul %77, %97, %cst_119 {dimension_numbers = #tpu.dot_dimension_numbers<[1], [0], [0], [1], [0, 0, 1, 1], [], []>} : vector<16x4xf32>, vector<4x16xf32>, vector<16x16xf32> -> vector<16x16xf32>
    %cst_120 = arith.constant dense<0.000000e+00> : vector<16x16xf32>
    %102 = tpu.matmul %79, %94, %cst_120 {dimension_numbers = #tpu.dot_dimension_numbers<[1], [0], [0], [1], [0, 0, 1, 1], [], []>} : vector<16x4xf32>, vector<4x16xf32>, vector<16x16xf32> -> vector<16x16xf32>
    %103 = arith.addf %101, %102 : vector<16x16xf32>
    %104 = arith.mulf %69, %100 : vector<16x16xf32>
    %105 = arith.mulf %71, %103 : vector<16x16xf32>
    %106 = arith.subf %104, %105 : vector<16x16xf32>
    %107 = arith.addf %43, %106 : vector<16x16xf32>
    %108 = arith.mulf %69, %103 : vector<16x16xf32>
    %109 = arith.mulf %71, %100 : vector<16x16xf32>
    %110 = arith.addf %108, %109 : vector<16x16xf32>
    %111 = arith.addf %47, %110 : vector<16x16xf32>
    %cst_121 = arith.constant dense<0.000000e+00> : vector<4x16xf32>
    %112 = tpu.matmul %73, %69, %cst_121 {dimension_numbers = #tpu.dot_dimension_numbers<[1], [0], [0], [1], [0, 0, 1, 1], [], []>} : vector<4x16xf32>, vector<16x16xf32>, vector<4x16xf32> -> vector<4x16xf32>
    %cst_122 = arith.constant dense<0.000000e+00> : vector<4x16xf32>
    %113 = tpu.matmul %75, %71, %cst_122 {dimension_numbers = #tpu.dot_dimension_numbers<[1], [0], [0], [1], [0, 0, 1, 1], [], []>} : vector<4x16xf32>, vector<16x16xf32>, vector<4x16xf32> -> vector<4x16xf32>
    %114 = arith.subf %112, %113 : vector<4x16xf32>
    %cst_123 = arith.constant dense<0.000000e+00> : vector<4x16xf32>
    %115 = tpu.matmul %73, %71, %cst_123 {dimension_numbers = #tpu.dot_dimension_numbers<[1], [0], [0], [1], [0, 0, 1, 1], [], []>} : vector<4x16xf32>, vector<16x16xf32>, vector<4x16xf32> -> vector<4x16xf32>
    %cst_124 = arith.constant dense<0.000000e+00> : vector<4x16xf32>
    %116 = tpu.matmul %75, %69, %cst_124 {dimension_numbers = #tpu.dot_dimension_numbers<[1], [0], [0], [1], [0, 0, 1, 1], [], []>} : vector<4x16xf32>, vector<16x16xf32>, vector<4x16xf32> -> vector<4x16xf32>
    %117 = arith.addf %115, %116 : vector<4x16xf32>
    %cst_125 = arith.constant dense<0.000000e+00> : vector<4x4xf32>
    %118 = tpu.matmul %114, %85, %cst_125 {dimension_numbers = #tpu.dot_dimension_numbers<[1], [0], [0], [1], [0, 0, 1, 1], [], []>} : vector<4x16xf32>, vector<16x4xf32>, vector<4x4xf32> -> vector<4x4xf32>
    %cst_126 = arith.constant dense<0.000000e+00> : vector<4x4xf32>
    %119 = tpu.matmul %117, %87, %cst_126 {dimension_numbers = #tpu.dot_dimension_numbers<[1], [0], [0], [1], [0, 0, 1, 1], [], []>} : vector<4x16xf32>, vector<16x4xf32>, vector<4x4xf32> -> vector<4x4xf32>
    %120 = arith.subf %118, %119 : vector<4x4xf32>
    %cst_127 = arith.constant dense<0.000000e+00> : vector<4x4xf32>
    %121 = tpu.matmul %114, %87, %cst_127 {dimension_numbers = #tpu.dot_dimension_numbers<[1], [0], [0], [1], [0, 0, 1, 1], [], []>} : vector<4x16xf32>, vector<16x4xf32>, vector<4x4xf32> -> vector<4x4xf32>
    %cst_128 = arith.constant dense<0.000000e+00> : vector<4x4xf32>
    %122 = tpu.matmul %117, %85, %cst_128 {dimension_numbers = #tpu.dot_dimension_numbers<[1], [0], [0], [1], [0, 0, 1, 1], [], []>} : vector<4x16xf32>, vector<16x4xf32>, vector<4x4xf32> -> vector<4x4xf32>
    %123 = arith.addf %121, %122 : vector<4x4xf32>
    %124 = arith.mulf %89, %120 : vector<4x4xf32>
    %125 = arith.mulf %91, %123 : vector<4x4xf32>
    %126 = arith.subf %124, %125 : vector<4x4xf32>
    %127 = arith.addf %63, %126 : vector<4x4xf32>
    %128 = arith.mulf %89, %123 : vector<4x4xf32>
    %129 = arith.mulf %91, %120 : vector<4x4xf32>
    %130 = arith.addf %128, %129 : vector<4x4xf32>
    %131 = arith.addf %67, %130 : vector<4x4xf32>
    %c0_129 = arith.constant 0 : index
    %c2 = arith.constant 2 : index
    %c0_130 = arith.constant 0 : index
    %c0_131 = arith.constant 0 : index
    %132 = vector.load %arg2[%c0_129, %c2, %c0_130, %c0_131] : memref<1x4x16x16xf32, #tpu.memory_space<vmem>>, vector<1x1x16x16xf32>
    %133 = vector.shape_cast %132 : vector<1x1x16x16xf32> to vector<16x16xf32>
    %c0_132 = arith.constant 0 : index
    %c2_133 = arith.constant 2 : index
    %c0_134 = arith.constant 0 : index
    %c0_135 = arith.constant 0 : index
    %134 = vector.load %arg3[%c0_132, %c2_133, %c0_134, %c0_135] : memref<1x4x16x16xf32, #tpu.memory_space<vmem>>, vector<1x1x16x16xf32>
    %135 = vector.shape_cast %134 : vector<1x1x16x16xf32> to vector<16x16xf32>
    %c2_136 = arith.constant 2 : index
    %c0_137 = arith.constant 0 : index
    %c0_138 = arith.constant 0 : index
    %c0_139 = arith.constant 0 : index
    %136 = vector.load %arg4[%c2_136, %c0_137, %c0_138, %c0_139] : memref<4x1x4x16xf32, #tpu.memory_space<vmem>>, vector<1x1x4x16xf32>
    %137 = vector.shape_cast %136 : vector<1x1x4x16xf32> to vector<4x16xf32>
    %c2_140 = arith.constant 2 : index
    %c0_141 = arith.constant 0 : index
    %c0_142 = arith.constant 0 : index
    %c0_143 = arith.constant 0 : index
    %138 = vector.load %arg5[%c2_140, %c0_141, %c0_142, %c0_143] : memref<4x1x4x16xf32, #tpu.memory_space<vmem>>, vector<1x1x4x16xf32>
    %139 = vector.shape_cast %138 : vector<1x1x4x16xf32> to vector<4x16xf32>
    %c2_144 = arith.constant 2 : index
    %c0_145 = arith.constant 0 : index
    %c0_146 = arith.constant 0 : index
    %c0_147 = arith.constant 0 : index
    %140 = vector.load %arg6[%c2_144, %c0_145, %c0_146, %c0_147] : memref<4x1x16x4xf32, #tpu.memory_space<vmem>>, vector<1x1x16x4xf32>
    %141 = vector.shape_cast %140 : vector<1x1x16x4xf32> to vector<16x4xf32>
    %c2_148 = arith.constant 2 : index
    %c0_149 = arith.constant 0 : index
    %c0_150 = arith.constant 0 : index
    %c0_151 = arith.constant 0 : index
    %142 = vector.load %arg7[%c2_148, %c0_149, %c0_150, %c0_151] : memref<4x1x16x4xf32, #tpu.memory_space<vmem>>, vector<1x1x16x4xf32>
    %143 = vector.shape_cast %142 : vector<1x1x16x4xf32> to vector<16x4xf32>
    %c2_152 = arith.constant 2 : index
    %c0_153 = arith.constant 0 : index
    %c0_154 = arith.constant 0 : index
    %c0_155 = arith.constant 0 : index
    %144 = vector.load %arg8[%c2_152, %c0_153, %c0_154, %c0_155] : memref<4x1x4x16xf32, #tpu.memory_space<vmem>>, vector<1x1x4x16xf32>
    %145 = vector.shape_cast %144 : vector<1x1x4x16xf32> to vector<4x16xf32>
    %c2_156 = arith.constant 2 : index
    %c0_157 = arith.constant 0 : index
    %c0_158 = arith.constant 0 : index
    %c0_159 = arith.constant 0 : index
    %146 = vector.load %arg9[%c2_156, %c0_157, %c0_158, %c0_159] : memref<4x1x4x16xf32, #tpu.memory_space<vmem>>, vector<1x1x4x16xf32>
    %147 = vector.shape_cast %146 : vector<1x1x4x16xf32> to vector<4x16xf32>
    %c2_160 = arith.constant 2 : index
    %c0_161 = arith.constant 0 : index
    %c0_162 = arith.constant 0 : index
    %c0_163 = arith.constant 0 : index
    %148 = vector.load %arg10[%c2_160, %c0_161, %c0_162, %c0_163] : memref<4x1x16x4xf32, #tpu.memory_space<vmem>>, vector<1x1x16x4xf32>
    %149 = vector.shape_cast %148 : vector<1x1x16x4xf32> to vector<16x4xf32>
    %c2_164 = arith.constant 2 : index
    %c0_165 = arith.constant 0 : index
    %c0_166 = arith.constant 0 : index
    %c0_167 = arith.constant 0 : index
    %150 = vector.load %arg11[%c2_164, %c0_165, %c0_166, %c0_167] : memref<4x1x16x4xf32, #tpu.memory_space<vmem>>, vector<1x1x16x4xf32>
    %151 = vector.shape_cast %150 : vector<1x1x16x4xf32> to vector<16x4xf32>
    %c2_168 = arith.constant 2 : index
    %c0_169 = arith.constant 0 : index
    %c0_170 = arith.constant 0 : index
    %c0_171 = arith.constant 0 : index
    %152 = vector.load %arg12[%c2_168, %c0_169, %c0_170, %c0_171] : memref<4x1x4x4xf32, #tpu.memory_space<vmem>>, vector<1x1x4x4xf32>
    %153 = vector.shape_cast %152 : vector<1x1x4x4xf32> to vector<4x4xf32>
    %c2_172 = arith.constant 2 : index
    %c0_173 = arith.constant 0 : index
    %c0_174 = arith.constant 0 : index
    %c0_175 = arith.constant 0 : index
    %154 = vector.load %arg13[%c2_172, %c0_173, %c0_174, %c0_175] : memref<4x1x4x4xf32, #tpu.memory_space<vmem>>, vector<1x1x4x4xf32>
    %155 = vector.shape_cast %154 : vector<1x1x4x4xf32> to vector<4x4xf32>
    %cst_176 = arith.constant dense<0.000000e+00> : vector<4x16xf32>
    %156 = tpu.matmul %153, %145, %cst_176 {dimension_numbers = #tpu.dot_dimension_numbers<[1], [0], [0], [1], [0, 0, 1, 1], [], []>} : vector<4x4xf32>, vector<4x16xf32>, vector<4x16xf32> -> vector<4x16xf32>
    %cst_177 = arith.constant dense<0.000000e+00> : vector<4x16xf32>
    %157 = tpu.matmul %155, %147, %cst_177 {dimension_numbers = #tpu.dot_dimension_numbers<[1], [0], [0], [1], [0, 0, 1, 1], [], []>} : vector<4x4xf32>, vector<4x16xf32>, vector<4x16xf32> -> vector<4x16xf32>
    %158 = arith.subf %156, %157 : vector<4x16xf32>
    %cst_178 = arith.constant dense<0.000000e+00> : vector<4x16xf32>
    %159 = tpu.matmul %153, %147, %cst_178 {dimension_numbers = #tpu.dot_dimension_numbers<[1], [0], [0], [1], [0, 0, 1, 1], [], []>} : vector<4x4xf32>, vector<4x16xf32>, vector<4x16xf32> -> vector<4x16xf32>
    %cst_179 = arith.constant dense<0.000000e+00> : vector<4x16xf32>
    %160 = tpu.matmul %155, %145, %cst_179 {dimension_numbers = #tpu.dot_dimension_numbers<[1], [0], [0], [1], [0, 0, 1, 1], [], []>} : vector<4x4xf32>, vector<4x16xf32>, vector<4x16xf32> -> vector<4x16xf32>
    %161 = arith.addf %159, %160 : vector<4x16xf32>
    %cst_180 = arith.constant dense<0.000000e+00> : vector<16x16xf32>
    %162 = tpu.matmul %141, %158, %cst_180 {dimension_numbers = #tpu.dot_dimension_numbers<[1], [0], [0], [1], [0, 0, 1, 1], [], []>} : vector<16x4xf32>, vector<4x16xf32>, vector<16x16xf32> -> vector<16x16xf32>
    %cst_181 = arith.constant dense<0.000000e+00> : vector<16x16xf32>
    %163 = tpu.matmul %143, %161, %cst_181 {dimension_numbers = #tpu.dot_dimension_numbers<[1], [0], [0], [1], [0, 0, 1, 1], [], []>} : vector<16x4xf32>, vector<4x16xf32>, vector<16x16xf32> -> vector<16x16xf32>
    %164 = arith.subf %162, %163 : vector<16x16xf32>
    %cst_182 = arith.constant dense<0.000000e+00> : vector<16x16xf32>
    %165 = tpu.matmul %141, %161, %cst_182 {dimension_numbers = #tpu.dot_dimension_numbers<[1], [0], [0], [1], [0, 0, 1, 1], [], []>} : vector<16x4xf32>, vector<4x16xf32>, vector<16x16xf32> -> vector<16x16xf32>
    %cst_183 = arith.constant dense<0.000000e+00> : vector<16x16xf32>
    %166 = tpu.matmul %143, %158, %cst_183 {dimension_numbers = #tpu.dot_dimension_numbers<[1], [0], [0], [1], [0, 0, 1, 1], [], []>} : vector<16x4xf32>, vector<4x16xf32>, vector<16x16xf32> -> vector<16x16xf32>
    %167 = arith.addf %165, %166 : vector<16x16xf32>
    %168 = arith.mulf %133, %164 : vector<16x16xf32>
    %169 = arith.mulf %135, %167 : vector<16x16xf32>
    %170 = arith.subf %168, %169 : vector<16x16xf32>
    %171 = arith.addf %107, %170 : vector<16x16xf32>
    %172 = arith.mulf %133, %167 : vector<16x16xf32>
    %173 = arith.mulf %135, %164 : vector<16x16xf32>
    %174 = arith.addf %172, %173 : vector<16x16xf32>
    %175 = arith.addf %111, %174 : vector<16x16xf32>
    %cst_184 = arith.constant dense<0.000000e+00> : vector<4x16xf32>
    %176 = tpu.matmul %137, %133, %cst_184 {dimension_numbers = #tpu.dot_dimension_numbers<[1], [0], [0], [1], [0, 0, 1, 1], [], []>} : vector<4x16xf32>, vector<16x16xf32>, vector<4x16xf32> -> vector<4x16xf32>
    %cst_185 = arith.constant dense<0.000000e+00> : vector<4x16xf32>
    %177 = tpu.matmul %139, %135, %cst_185 {dimension_numbers = #tpu.dot_dimension_numbers<[1], [0], [0], [1], [0, 0, 1, 1], [], []>} : vector<4x16xf32>, vector<16x16xf32>, vector<4x16xf32> -> vector<4x16xf32>
    %178 = arith.subf %176, %177 : vector<4x16xf32>
    %cst_186 = arith.constant dense<0.000000e+00> : vector<4x16xf32>
    %179 = tpu.matmul %137, %135, %cst_186 {dimension_numbers = #tpu.dot_dimension_numbers<[1], [0], [0], [1], [0, 0, 1, 1], [], []>} : vector<4x16xf32>, vector<16x16xf32>, vector<4x16xf32> -> vector<4x16xf32>
    %cst_187 = arith.constant dense<0.000000e+00> : vector<4x16xf32>
    %180 = tpu.matmul %139, %133, %cst_187 {dimension_numbers = #tpu.dot_dimension_numbers<[1], [0], [0], [1], [0, 0, 1, 1], [], []>} : vector<4x16xf32>, vector<16x16xf32>, vector<4x16xf32> -> vector<4x16xf32>
    %181 = arith.addf %179, %180 : vector<4x16xf32>
    %cst_188 = arith.constant dense<0.000000e+00> : vector<4x4xf32>
    %182 = tpu.matmul %178, %149, %cst_188 {dimension_numbers = #tpu.dot_dimension_numbers<[1], [0], [0], [1], [0, 0, 1, 1], [], []>} : vector<4x16xf32>, vector<16x4xf32>, vector<4x4xf32> -> vector<4x4xf32>
    %cst_189 = arith.constant dense<0.000000e+00> : vector<4x4xf32>
    %183 = tpu.matmul %181, %151, %cst_189 {dimension_numbers = #tpu.dot_dimension_numbers<[1], [0], [0], [1], [0, 0, 1, 1], [], []>} : vector<4x16xf32>, vector<16x4xf32>, vector<4x4xf32> -> vector<4x4xf32>
    %184 = arith.subf %182, %183 : vector<4x4xf32>
    %cst_190 = arith.constant dense<0.000000e+00> : vector<4x4xf32>
    %185 = tpu.matmul %178, %151, %cst_190 {dimension_numbers = #tpu.dot_dimension_numbers<[1], [0], [0], [1], [0, 0, 1, 1], [], []>} : vector<4x16xf32>, vector<16x4xf32>, vector<4x4xf32> -> vector<4x4xf32>
    %cst_191 = arith.constant dense<0.000000e+00> : vector<4x4xf32>
    %186 = tpu.matmul %181, %149, %cst_191 {dimension_numbers = #tpu.dot_dimension_numbers<[1], [0], [0], [1], [0, 0, 1, 1], [], []>} : vector<4x16xf32>, vector<16x4xf32>, vector<4x4xf32> -> vector<4x4xf32>
    %187 = arith.addf %185, %186 : vector<4x4xf32>
    %188 = arith.mulf %153, %184 : vector<4x4xf32>
    %189 = arith.mulf %155, %187 : vector<4x4xf32>
    %190 = arith.subf %188, %189 : vector<4x4xf32>
    %191 = arith.addf %127, %190 : vector<4x4xf32>
    %192 = arith.mulf %153, %187 : vector<4x4xf32>
    %193 = arith.mulf %155, %184 : vector<4x4xf32>
    %194 = arith.addf %192, %193 : vector<4x4xf32>
    %195 = arith.addf %131, %194 : vector<4x4xf32>
    %c0_192 = arith.constant 0 : index
    %c3 = arith.constant 3 : index
    %c0_193 = arith.constant 0 : index
    %c0_194 = arith.constant 0 : index
    %196 = vector.load %arg2[%c0_192, %c3, %c0_193, %c0_194] : memref<1x4x16x16xf32, #tpu.memory_space<vmem>>, vector<1x1x16x16xf32>
    %197 = vector.shape_cast %196 : vector<1x1x16x16xf32> to vector<16x16xf32>
    %c0_195 = arith.constant 0 : index
    %c3_196 = arith.constant 3 : index
    %c0_197 = arith.constant 0 : index
    %c0_198 = arith.constant 0 : index
    %198 = vector.load %arg3[%c0_195, %c3_196, %c0_197, %c0_198] : memref<1x4x16x16xf32, #tpu.memory_space<vmem>>, vector<1x1x16x16xf32>
    %199 = vector.shape_cast %198 : vector<1x1x16x16xf32> to vector<16x16xf32>
    %c3_199 = arith.constant 3 : index
    %c0_200 = arith.constant 0 : index
    %c0_201 = arith.constant 0 : index
    %c0_202 = arith.constant 0 : index
    %200 = vector.load %arg4[%c3_199, %c0_200, %c0_201, %c0_202] : memref<4x1x4x16xf32, #tpu.memory_space<vmem>>, vector<1x1x4x16xf32>
    %201 = vector.shape_cast %200 : vector<1x1x4x16xf32> to vector<4x16xf32>
    %c3_203 = arith.constant 3 : index
    %c0_204 = arith.constant 0 : index
    %c0_205 = arith.constant 0 : index
    %c0_206 = arith.constant 0 : index
    %202 = vector.load %arg5[%c3_203, %c0_204, %c0_205, %c0_206] : memref<4x1x4x16xf32, #tpu.memory_space<vmem>>, vector<1x1x4x16xf32>
    %203 = vector.shape_cast %202 : vector<1x1x4x16xf32> to vector<4x16xf32>
    %c3_207 = arith.constant 3 : index
    %c0_208 = arith.constant 0 : index
    %c0_209 = arith.constant 0 : index
    %c0_210 = arith.constant 0 : index
    %204 = vector.load %arg6[%c3_207, %c0_208, %c0_209, %c0_210] : memref<4x1x16x4xf32, #tpu.memory_space<vmem>>, vector<1x1x16x4xf32>
    %205 = vector.shape_cast %204 : vector<1x1x16x4xf32> to vector<16x4xf32>
    %c3_211 = arith.constant 3 : index
    %c0_212 = arith.constant 0 : index
    %c0_213 = arith.constant 0 : index
    %c0_214 = arith.constant 0 : index
    %206 = vector.load %arg7[%c3_211, %c0_212, %c0_213, %c0_214] : memref<4x1x16x4xf32, #tpu.memory_space<vmem>>, vector<1x1x16x4xf32>
    %207 = vector.shape_cast %206 : vector<1x1x16x4xf32> to vector<16x4xf32>
    %c3_215 = arith.constant 3 : index
    %c0_216 = arith.constant 0 : index
    %c0_217 = arith.constant 0 : index
    %c0_218 = arith.constant 0 : index
    %208 = vector.load %arg8[%c3_215, %c0_216, %c0_217, %c0_218] : memref<4x1x4x16xf32, #tpu.memory_space<vmem>>, vector<1x1x4x16xf32>
    %209 = vector.shape_cast %208 : vector<1x1x4x16xf32> to vector<4x16xf32>
    %c3_219 = arith.constant 3 : index
    %c0_220 = arith.constant 0 : index
    %c0_221 = arith.constant 0 : index
    %c0_222 = arith.constant 0 : index
    %210 = vector.load %arg9[%c3_219, %c0_220, %c0_221, %c0_222] : memref<4x1x4x16xf32, #tpu.memory_space<vmem>>, vector<1x1x4x16xf32>
    %211 = vector.shape_cast %210 : vector<1x1x4x16xf32> to vector<4x16xf32>
    %c3_223 = arith.constant 3 : index
    %c0_224 = arith.constant 0 : index
    %c0_225 = arith.constant 0 : index
    %c0_226 = arith.constant 0 : index
    %212 = vector.load %arg10[%c3_223, %c0_224, %c0_225, %c0_226] : memref<4x1x16x4xf32, #tpu.memory_space<vmem>>, vector<1x1x16x4xf32>
    %213 = vector.shape_cast %212 : vector<1x1x16x4xf32> to vector<16x4xf32>
    %c3_227 = arith.constant 3 : index
    %c0_228 = arith.constant 0 : index
    %c0_229 = arith.constant 0 : index
    %c0_230 = arith.constant 0 : index
    %214 = vector.load %arg11[%c3_227, %c0_228, %c0_229, %c0_230] : memref<4x1x16x4xf32, #tpu.memory_space<vmem>>, vector<1x1x16x4xf32>
    %215 = vector.shape_cast %214 : vector<1x1x16x4xf32> to vector<16x4xf32>
    %c3_231 = arith.constant 3 : index
    %c0_232 = arith.constant 0 : index
    %c0_233 = arith.constant 0 : index
    %c0_234 = arith.constant 0 : index
    %216 = vector.load %arg12[%c3_231, %c0_232, %c0_233, %c0_234] : memref<4x1x4x4xf32, #tpu.memory_space<vmem>>, vector<1x1x4x4xf32>
    %217 = vector.shape_cast %216 : vector<1x1x4x4xf32> to vector<4x4xf32>
    %c3_235 = arith.constant 3 : index
    %c0_236 = arith.constant 0 : index
    %c0_237 = arith.constant 0 : index
    %c0_238 = arith.constant 0 : index
    %218 = vector.load %arg13[%c3_235, %c0_236, %c0_237, %c0_238] : memref<4x1x4x4xf32, #tpu.memory_space<vmem>>, vector<1x1x4x4xf32>
    %219 = vector.shape_cast %218 : vector<1x1x4x4xf32> to vector<4x4xf32>
    %cst_239 = arith.constant dense<0.000000e+00> : vector<4x16xf32>
    %220 = tpu.matmul %217, %209, %cst_239 {dimension_numbers = #tpu.dot_dimension_numbers<[1], [0], [0], [1], [0, 0, 1, 1], [], []>} : vector<4x4xf32>, vector<4x16xf32>, vector<4x16xf32> -> vector<4x16xf32>
    %cst_240 = arith.constant dense<0.000000e+00> : vector<4x16xf32>
    %221 = tpu.matmul %219, %211, %cst_240 {dimension_numbers = #tpu.dot_dimension_numbers<[1], [0], [0], [1], [0, 0, 1, 1], [], []>} : vector<4x4xf32>, vector<4x16xf32>, vector<4x16xf32> -> vector<4x16xf32>
    %222 = arith.subf %220, %221 : vector<4x16xf32>
    %cst_241 = arith.constant dense<0.000000e+00> : vector<4x16xf32>
    %223 = tpu.matmul %217, %211, %cst_241 {dimension_numbers = #tpu.dot_dimension_numbers<[1], [0], [0], [1], [0, 0, 1, 1], [], []>} : vector<4x4xf32>, vector<4x16xf32>, vector<4x16xf32> -> vector<4x16xf32>
    %cst_242 = arith.constant dense<0.000000e+00> : vector<4x16xf32>
    %224 = tpu.matmul %219, %209, %cst_242 {dimension_numbers = #tpu.dot_dimension_numbers<[1], [0], [0], [1], [0, 0, 1, 1], [], []>} : vector<4x4xf32>, vector<4x16xf32>, vector<4x16xf32> -> vector<4x16xf32>
    %225 = arith.addf %223, %224 : vector<4x16xf32>
    %cst_243 = arith.constant dense<0.000000e+00> : vector<16x16xf32>
    %226 = tpu.matmul %205, %222, %cst_243 {dimension_numbers = #tpu.dot_dimension_numbers<[1], [0], [0], [1], [0, 0, 1, 1], [], []>} : vector<16x4xf32>, vector<4x16xf32>, vector<16x16xf32> -> vector<16x16xf32>
    %cst_244 = arith.constant dense<0.000000e+00> : vector<16x16xf32>
    %227 = tpu.matmul %207, %225, %cst_244 {dimension_numbers = #tpu.dot_dimension_numbers<[1], [0], [0], [1], [0, 0, 1, 1], [], []>} : vector<16x4xf32>, vector<4x16xf32>, vector<16x16xf32> -> vector<16x16xf32>
    %228 = arith.subf %226, %227 : vector<16x16xf32>
    %cst_245 = arith.constant dense<0.000000e+00> : vector<16x16xf32>
    %229 = tpu.matmul %205, %225, %cst_245 {dimension_numbers = #tpu.dot_dimension_numbers<[1], [0], [0], [1], [0, 0, 1, 1], [], []>} : vector<16x4xf32>, vector<4x16xf32>, vector<16x16xf32> -> vector<16x16xf32>
    %cst_246 = arith.constant dense<0.000000e+00> : vector<16x16xf32>
    %230 = tpu.matmul %207, %222, %cst_246 {dimension_numbers = #tpu.dot_dimension_numbers<[1], [0], [0], [1], [0, 0, 1, 1], [], []>} : vector<16x4xf32>, vector<4x16xf32>, vector<16x16xf32> -> vector<16x16xf32>
    %231 = arith.addf %229, %230 : vector<16x16xf32>
    %232 = arith.mulf %197, %228 : vector<16x16xf32>
    %233 = arith.mulf %199, %231 : vector<16x16xf32>
    %234 = arith.subf %232, %233 : vector<16x16xf32>
    %235 = arith.addf %171, %234 : vector<16x16xf32>
    %236 = arith.mulf %197, %231 : vector<16x16xf32>
    %237 = arith.mulf %199, %228 : vector<16x16xf32>
    %238 = arith.addf %236, %237 : vector<16x16xf32>
    %239 = arith.addf %175, %238 : vector<16x16xf32>
    %cst_247 = arith.constant dense<0.000000e+00> : vector<4x16xf32>
    %240 = tpu.matmul %201, %197, %cst_247 {dimension_numbers = #tpu.dot_dimension_numbers<[1], [0], [0], [1], [0, 0, 1, 1], [], []>} : vector<4x16xf32>, vector<16x16xf32>, vector<4x16xf32> -> vector<4x16xf32>
    %cst_248 = arith.constant dense<0.000000e+00> : vector<4x16xf32>
    %241 = tpu.matmul %203, %199, %cst_248 {dimension_numbers = #tpu.dot_dimension_numbers<[1], [0], [0], [1], [0, 0, 1, 1], [], []>} : vector<4x16xf32>, vector<16x16xf32>, vector<4x16xf32> -> vector<4x16xf32>
    %242 = arith.subf %240, %241 : vector<4x16xf32>
    %cst_249 = arith.constant dense<0.000000e+00> : vector<4x16xf32>
    %243 = tpu.matmul %201, %199, %cst_249 {dimension_numbers = #tpu.dot_dimension_numbers<[1], [0], [0], [1], [0, 0, 1, 1], [], []>} : vector<4x16xf32>, vector<16x16xf32>, vector<4x16xf32> -> vector<4x16xf32>
    %cst_250 = arith.constant dense<0.000000e+00> : vector<4x16xf32>
    %244 = tpu.matmul %203, %197, %cst_250 {dimension_numbers = #tpu.dot_dimension_numbers<[1], [0], [0], [1], [0, 0, 1, 1], [], []>} : vector<4x16xf32>, vector<16x16xf32>, vector<4x16xf32> -> vector<4x16xf32>
    %245 = arith.addf %243, %244 : vector<4x16xf32>
    %cst_251 = arith.constant dense<0.000000e+00> : vector<4x4xf32>
    %246 = tpu.matmul %242, %213, %cst_251 {dimension_numbers = #tpu.dot_dimension_numbers<[1], [0], [0], [1], [0, 0, 1, 1], [], []>} : vector<4x16xf32>, vector<16x4xf32>, vector<4x4xf32> -> vector<4x4xf32>
    %cst_252 = arith.constant dense<0.000000e+00> : vector<4x4xf32>
    %247 = tpu.matmul %245, %215, %cst_252 {dimension_numbers = #tpu.dot_dimension_numbers<[1], [0], [0], [1], [0, 0, 1, 1], [], []>} : vector<4x16xf32>, vector<16x4xf32>, vector<4x4xf32> -> vector<4x4xf32>
    %248 = arith.subf %246, %247 : vector<4x4xf32>
    %cst_253 = arith.constant dense<0.000000e+00> : vector<4x4xf32>
    %249 = tpu.matmul %242, %215, %cst_253 {dimension_numbers = #tpu.dot_dimension_numbers<[1], [0], [0], [1], [0, 0, 1, 1], [], []>} : vector<4x16xf32>, vector<16x4xf32>, vector<4x4xf32> -> vector<4x4xf32>
    %cst_254 = arith.constant dense<0.000000e+00> : vector<4x4xf32>
    %250 = tpu.matmul %245, %213, %cst_254 {dimension_numbers = #tpu.dot_dimension_numbers<[1], [0], [0], [1], [0, 0, 1, 1], [], []>} : vector<4x16xf32>, vector<16x4xf32>, vector<4x4xf32> -> vector<4x4xf32>
    %251 = arith.addf %249, %250 : vector<4x4xf32>
    %252 = arith.mulf %217, %248 : vector<4x4xf32>
    %253 = arith.mulf %219, %251 : vector<4x4xf32>
    %254 = arith.subf %252, %253 : vector<4x4xf32>
    %255 = arith.addf %191, %254 : vector<4x4xf32>
    %256 = arith.mulf %217, %251 : vector<4x4xf32>
    %257 = arith.mulf %219, %248 : vector<4x4xf32>
    %258 = arith.addf %256, %257 : vector<4x4xf32>
    %259 = arith.addf %195, %258 : vector<4x4xf32>
    %c0_255 = arith.constant 0 : index
    %c0_256 = arith.constant 0 : index
    %c0_257 = arith.constant 0 : index
    %c0_258 = arith.constant 0 : index
    %260 = vector.load %arg14[%c0_255, %c0_256, %c0_257, %c0_258] : memref<1x1x16x16xf32, #tpu.memory_space<vmem>>, vector<1x1x16x16xf32>
    %261 = vector.shape_cast %260 : vector<1x1x16x16xf32> to vector<16x16xf32>
    %262 = vector.shape_cast %235 : vector<16x16xf32> to vector<1x1x16x16xf32>
    tpu.vector_store %arg14[%c0_255, %c0_256, %c0_257, %c0_258], %262 {strides = array<i32>} : memref<1x1x16x16xf32, #tpu.memory_space<vmem>>, vector<1x1x16x16xf32>,
    %c0_259 = arith.constant 0 : index
    %c0_260 = arith.constant 0 : index
    %c0_261 = arith.constant 0 : index
    %c0_262 = arith.constant 0 : index
    %263 = vector.load %arg15[%c0_259, %c0_260, %c0_261, %c0_262] : memref<1x1x16x16xf32, #tpu.memory_space<vmem>>, vector<1x1x16x16xf32>
    %264 = vector.shape_cast %263 : vector<1x1x16x16xf32> to vector<16x16xf32>
    %265 = vector.shape_cast %239 : vector<16x16xf32> to vector<1x1x16x16xf32>
    tpu.vector_store %arg15[%c0_259, %c0_260, %c0_261, %c0_262], %265 {strides = array<i32>} : memref<1x1x16x16xf32, #tpu.memory_space<vmem>>, vector<1x1x16x16xf32>,
    %c0_263 = arith.constant 0 : index
    %c0_264 = arith.constant 0 : index
    %c0_265 = arith.constant 0 : index
    %c0_266 = arith.constant 0 : index
    %266 = vector.load %arg16[%c0_263, %c0_264, %c0_265, %c0_266] : memref<1x1x4x4xf32, #tpu.memory_space<vmem>>, vector<1x1x4x4xf32>
    %267 = vector.shape_cast %266 : vector<1x1x4x4xf32> to vector<4x4xf32>
    %268 = vector.shape_cast %255 : vector<4x4xf32> to vector<1x1x4x4xf32>
    tpu.vector_store %arg16[%c0_263, %c0_264, %c0_265, %c0_266], %268 {strides = array<i32>} : memref<1x1x4x4xf32, #tpu.memory_space<vmem>>, vector<1x1x4x4xf32>,
    %c0_267 = arith.constant 0 : index
    %c0_268 = arith.constant 0 : index
    %c0_269 = arith.constant 0 : index
    %c0_270 = arith.constant 0 : index
    %269 = vector.load %arg17[%c0_267, %c0_268, %c0_269, %c0_270] : memref<1x1x4x4xf32, #tpu.memory_space<vmem>>, vector<1x1x4x4xf32>
    %270 = vector.shape_cast %269 : vector<1x1x4x4xf32> to vector<4x4xf32>
    %271 = vector.shape_cast %259 : vector<4x4xf32> to vector<1x1x4x4xf32>
    tpu.vector_store %arg17[%c0_267, %c0_268, %c0_269, %c0_270], %271 {strides = array<i32>} : memref<1x1x4x4xf32, #tpu.memory_space<vmem>>, vector<1x1x4x4xf32>,
    return
  }
  func.func @transform_0(%arg0: i32, %arg1: i32) -> (i32, i32, i32, i32) {
    %c0_i32 = arith.constant 0 : i32
    %c0_i32_0 = arith.constant 0 : i32
    %c0_i32_1 = arith.constant 0 : i32
    %c0_i32_2 = arith.constant 0 : i32
    return %arg0, %c0_i32, %c0_i32_0, %c0_i32_1 : i32, i32, i32, i32
  }
  func.func @transform_1(%arg0: i32, %arg1: i32) -> (i32, i32, i32, i32) {
    %c0_i32 = arith.constant 0 : i32
    %c0_i32_0 = arith.constant 0 : i32
    %c0_i32_1 = arith.constant 0 : i32
    %c0_i32_2 = arith.constant 0 : i32
    return %arg0, %c0_i32, %c0_i32_0, %c0_i32_1 : i32, i32, i32, i32
  }
  func.func @transform_2(%arg0: i32, %arg1: i32) -> (i32, i32, i32, i32) {
    %c0_i32 = arith.constant 0 : i32
    %c0_i32_0 = arith.constant 0 : i32
    %c0_i32_1 = arith.constant 0 : i32
    %c0_i32_2 = arith.constant 0 : i32
    return %c0_i32, %arg1, %c0_i32_0, %c0_i32_1 : i32, i32, i32, i32
  }
  func.func @transform_3(%arg0: i32, %arg1: i32) -> (i32, i32, i32, i32) {
    %c0_i32 = arith.constant 0 : i32
    %c0_i32_0 = arith.constant 0 : i32
    %c0_i32_1 = arith.constant 0 : i32
    %c0_i32_2 = arith.constant 0 : i32
    return %c0_i32, %arg1, %c0_i32_0, %c0_i32_1 : i32, i32, i32, i32
  }
  func.func @transform_4(%arg0: i32, %arg1: i32) -> (i32, i32, i32, i32) {
    %c0_i32 = arith.constant 0 : i32
    %c0_i32_0 = arith.constant 0 : i32
    %c0_i32_1 = arith.constant 0 : i32
    %c0_i32_2 = arith.constant 0 : i32
    return %c0_i32, %arg1, %c0_i32_0, %c0_i32_1 : i32, i32, i32, i32
  }
  func.func @transform_5(%arg0: i32, %arg1: i32) -> (i32, i32, i32, i32) {
    %c0_i32 = arith.constant 0 : i32
    %c0_i32_0 = arith.constant 0 : i32
    %c0_i32_1 = arith.constant 0 : i32
    %c0_i32_2 = arith.constant 0 : i32
    return %c0_i32, %arg1, %c0_i32_0, %c0_i32_1 : i32, i32, i32, i32
  }
  func.func @transform_6(%arg0: i32, %arg1: i32) -> (i32, i32, i32, i32) {
    %c0_i32 = arith.constant 0 : i32
    %c0_i32_0 = arith.constant 0 : i32
    %c0_i32_1 = arith.constant 0 : i32
    %c0_i32_2 = arith.constant 0 : i32
    return %c0_i32, %arg1, %c0_i32_0, %c0_i32_1 : i32, i32, i32, i32
  }
  func.func @transform_7(%arg0: i32, %arg1: i32) -> (i32, i32, i32, i32) {
    %c0_i32 = arith.constant 0 : i32
    %c0_i32_0 = arith.constant 0 : i32
    %c0_i32_1 = arith.constant 0 : i32
    %c0_i32_2 = arith.constant 0 : i32
    return %c0_i32, %arg1, %c0_i32_0, %c0_i32_1 : i32, i32, i32, i32
  }
  func.func @transform_8(%arg0: i32, %arg1: i32) -> (i32, i32, i32, i32) {
    %c0_i32 = arith.constant 0 : i32
    %c0_i32_0 = arith.constant 0 : i32
    %c0_i32_1 = arith.constant 0 : i32
    %c0_i32_2 = arith.constant 0 : i32
    return %c0_i32, %arg1, %c0_i32_0, %c0_i32_1 : i32, i32, i32, i32
  }
  func.func @transform_9(%arg0: i32, %arg1: i32) -> (i32, i32, i32, i32) {
    %c0_i32 = arith.constant 0 : i32
    %c0_i32_0 = arith.constant 0 : i32
    %c0_i32_1 = arith.constant 0 : i32
    %c0_i32_2 = arith.constant 0 : i32
    return %c0_i32, %arg1, %c0_i32_0, %c0_i32_1 : i32, i32, i32, i32
  }
  func.func @transform_10(%arg0: i32, %arg1: i32) -> (i32, i32, i32, i32) {
    %c0_i32 = arith.constant 0 : i32
    %c0_i32_0 = arith.constant 0 : i32
    %c0_i32_1 = arith.constant 0 : i32
    %c0_i32_2 = arith.constant 0 : i32
    return %c0_i32, %arg1, %c0_i32_0, %c0_i32_1 : i32, i32, i32, i32
  }
  func.func @transform_11(%arg0: i32, %arg1: i32) -> (i32, i32, i32, i32) {
    %c0_i32 = arith.constant 0 : i32
    %c0_i32_0 = arith.constant 0 : i32
    %c0_i32_1 = arith.constant 0 : i32
    %c0_i32_2 = arith.constant 0 : i32
    return %c0_i32, %arg1, %c0_i32_0, %c0_i32_1 : i32, i32, i32, i32
  }
  func.func @transform_12(%arg0: i32, %arg1: i32) -> (i32, i32, i32, i32) {
    %c0_i32 = arith.constant 0 : i32
    %c0_i32_0 = arith.constant 0 : i32
    %c0_i32_1 = arith.constant 0 : i32
    return %arg0, %arg1, %c0_i32, %c0_i32_0 : i32, i32, i32, i32
  }
  func.func @transform_13(%arg0: i32, %arg1: i32) -> (i32, i32, i32, i32) {
    %c0_i32 = arith.constant 0 : i32
    %c0_i32_0 = arith.constant 0 : i32
    %c0_i32_1 = arith.constant 0 : i32
    return %arg0, %arg1, %c0_i32, %c0_i32_0 : i32, i32, i32, i32
  }
  func.func @transform_14(%arg0: i32, %arg1: i32) -> (i32, i32, i32, i32) {
    %c0_i32 = arith.constant 0 : i32
    %c0_i32_0 = arith.constant 0 : i32
    %c0_i32_1 = arith.constant 0 : i32
    return %arg0, %arg1, %c0_i32, %c0_i32_0 : i32, i32, i32, i32
  }
  func.func @transform_15(%arg0: i32, %arg1: i32) -> (i32, i32, i32, i32) {
    %c0_i32 = arith.constant 0 : i32
    %c0_i32_0 = arith.constant 0 : i32
    %c0_i32_1 = arith.constant 0 : i32
    return %arg0, %arg1, %c0_i32, %c0_i32_0 : i32, i32, i32, i32
  }
}

module attributes {stable_mosaic.version = 11 : i64} {
  func.func @pr_recon_kernel(%arg0: i32, %arg1: i32, %arg2: memref<1x1x16x16xf32, #tpu.memory_space<vmem>>, %arg3: memref<1x4x4x4xf32, #tpu.memory_space<vmem>>, %arg4: memref<1x4x4x4xf32, #tpu.memory_space<vmem>>, %arg5: memref<4x1x16x4xf32, #tpu.memory_space<vmem>>, %arg6: memref<4x1x16x4xf32, #tpu.memory_space<vmem>>, %arg7: memref<4x1x4x16xf32, #tpu.memory_space<vmem>>, %arg8: memref<4x1x4x16xf32, #tpu.memory_space<vmem>>, %arg9: memref<1x1x16x16xf32, #tpu.memory_space<vmem>>) attributes {dimension_semantics = [#tpu.dimension_semantics<parallel>, #tpu.dimension_semantics<parallel>], iteration_bounds = array<i64: 2, 4>, scalar_prefetch = 0 : i64, scratch_operands = 0 : i64, tpu.core_type = #tpu.core_type<tc>, window_params = [{transform_indices = @transform_0, window_bounds = array<i64: 1, 1, 16, 16>}, {transform_indices = @transform_1, window_bounds = array<i64: 1, 4, 4, 4>}, {transform_indices = @transform_2, window_bounds = array<i64: 1, 4, 4, 4>}, {transform_indices = @transform_3, window_bounds = array<i64: 4, 1, 16, 4>}, {transform_indices = @transform_4, window_bounds = array<i64: 4, 1, 16, 4>}, {transform_indices = @transform_5, window_bounds = array<i64: 4, 1, 4, 16>}, {transform_indices = @transform_6, window_bounds = array<i64: 4, 1, 4, 16>}, {transform_indices = @transform_7, window_bounds = array<i64: 1, 1, 16, 16>}]} {
    %cst = arith.constant 0.000000e+00 : f32
    %0 = vector.broadcast %cst : f32 to vector<16x16xf32>
    %c0 = arith.constant 0 : index
    %c0_0 = arith.constant 0 : index
    %c0_1 = arith.constant 0 : index
    %c0_2 = arith.constant 0 : index
    %1 = vector.load %arg3[%c0, %c0_0, %c0_1, %c0_2] : memref<1x4x4x4xf32, #tpu.memory_space<vmem>>, vector<1x1x4x4xf32>
    %2 = vector.shape_cast %1 : vector<1x1x4x4xf32> to vector<4x4xf32>
    %c0_3 = arith.constant 0 : index
    %c0_4 = arith.constant 0 : index
    %c0_5 = arith.constant 0 : index
    %c0_6 = arith.constant 0 : index
    %3 = vector.load %arg4[%c0_3, %c0_4, %c0_5, %c0_6] : memref<1x4x4x4xf32, #tpu.memory_space<vmem>>, vector<1x1x4x4xf32>
    %4 = vector.shape_cast %3 : vector<1x1x4x4xf32> to vector<4x4xf32>
    %c0_7 = arith.constant 0 : index
    %c0_8 = arith.constant 0 : index
    %c0_9 = arith.constant 0 : index
    %c0_10 = arith.constant 0 : index
    %5 = vector.load %arg5[%c0_7, %c0_8, %c0_9, %c0_10] : memref<4x1x16x4xf32, #tpu.memory_space<vmem>>, vector<1x1x16x4xf32>
    %6 = vector.shape_cast %5 : vector<1x1x16x4xf32> to vector<16x4xf32>
    %c0_11 = arith.constant 0 : index
    %c0_12 = arith.constant 0 : index
    %c0_13 = arith.constant 0 : index
    %c0_14 = arith.constant 0 : index
    %7 = vector.load %arg6[%c0_11, %c0_12, %c0_13, %c0_14] : memref<4x1x16x4xf32, #tpu.memory_space<vmem>>, vector<1x1x16x4xf32>
    %8 = vector.shape_cast %7 : vector<1x1x16x4xf32> to vector<16x4xf32>
    %c0_15 = arith.constant 0 : index
    %c0_16 = arith.constant 0 : index
    %c0_17 = arith.constant 0 : index
    %c0_18 = arith.constant 0 : index
    %9 = vector.load %arg7[%c0_15, %c0_16, %c0_17, %c0_18] : memref<4x1x4x16xf32, #tpu.memory_space<vmem>>, vector<1x1x4x16xf32>
    %10 = vector.shape_cast %9 : vector<1x1x4x16xf32> to vector<4x16xf32>
    %c0_19 = arith.constant 0 : index
    %c0_20 = arith.constant 0 : index
    %c0_21 = arith.constant 0 : index
    %c0_22 = arith.constant 0 : index
    %11 = vector.load %arg8[%c0_19, %c0_20, %c0_21, %c0_22] : memref<4x1x4x16xf32, #tpu.memory_space<vmem>>, vector<1x1x4x16xf32>
    %12 = vector.shape_cast %11 : vector<1x1x4x16xf32> to vector<4x16xf32>
    %cst_23 = arith.constant dense<0.000000e+00> : vector<4x16xf32>
    %13 = tpu.matmul %2, %10, %cst_23 {dimension_numbers = #tpu.dot_dimension_numbers<[1], [0], [0], [1], [0, 0, 1, 1], [], []>} : vector<4x4xf32>, vector<4x16xf32>, vector<4x16xf32> -> vector<4x16xf32>
    %cst_24 = arith.constant dense<0.000000e+00> : vector<4x16xf32>
    %14 = tpu.matmul %4, %12, %cst_24 {dimension_numbers = #tpu.dot_dimension_numbers<[1], [0], [0], [1], [0, 0, 1, 1], [], []>} : vector<4x4xf32>, vector<4x16xf32>, vector<4x16xf32> -> vector<4x16xf32>
    %15 = arith.subf %13, %14 : vector<4x16xf32>
    %cst_25 = arith.constant dense<0.000000e+00> : vector<4x16xf32>
    %16 = tpu.matmul %2, %12, %cst_25 {dimension_numbers = #tpu.dot_dimension_numbers<[1], [0], [0], [1], [0, 0, 1, 1], [], []>} : vector<4x4xf32>, vector<4x16xf32>, vector<4x16xf32> -> vector<4x16xf32>
    %cst_26 = arith.constant dense<0.000000e+00> : vector<4x16xf32>
    %17 = tpu.matmul %4, %10, %cst_26 {dimension_numbers = #tpu.dot_dimension_numbers<[1], [0], [0], [1], [0, 0, 1, 1], [], []>} : vector<4x4xf32>, vector<4x16xf32>, vector<4x16xf32> -> vector<4x16xf32>
    %18 = arith.addf %16, %17 : vector<4x16xf32>
    %cst_27 = arith.constant dense<0.000000e+00> : vector<16x16xf32>
    %19 = tpu.matmul %6, %15, %cst_27 {dimension_numbers = #tpu.dot_dimension_numbers<[1], [0], [0], [1], [0, 0, 1, 1], [], []>} : vector<16x4xf32>, vector<4x16xf32>, vector<16x16xf32> -> vector<16x16xf32>
    %20 = arith.addf %0, %19 : vector<16x16xf32>
    %cst_28 = arith.constant dense<0.000000e+00> : vector<16x16xf32>
    %21 = tpu.matmul %8, %18, %cst_28 {dimension_numbers = #tpu.dot_dimension_numbers<[1], [0], [0], [1], [0, 0, 1, 1], [], []>} : vector<16x4xf32>, vector<4x16xf32>, vector<16x16xf32> -> vector<16x16xf32>
    %22 = arith.subf %20, %21 : vector<16x16xf32>
    %c0_29 = arith.constant 0 : index
    %c1 = arith.constant 1 : index
    %c0_30 = arith.constant 0 : index
    %c0_31 = arith.constant 0 : index
    %23 = vector.load %arg3[%c0_29, %c1, %c0_30, %c0_31] : memref<1x4x4x4xf32, #tpu.memory_space<vmem>>, vector<1x1x4x4xf32>
    %24 = vector.shape_cast %23 : vector<1x1x4x4xf32> to vector<4x4xf32>
    %c0_32 = arith.constant 0 : index
    %c1_33 = arith.constant 1 : index
    %c0_34 = arith.constant 0 : index
    %c0_35 = arith.constant 0 : index
    %25 = vector.load %arg4[%c0_32, %c1_33, %c0_34, %c0_35] : memref<1x4x4x4xf32, #tpu.memory_space<vmem>>, vector<1x1x4x4xf32>
    %26 = vector.shape_cast %25 : vector<1x1x4x4xf32> to vector<4x4xf32>
    %c1_36 = arith.constant 1 : index
    %c0_37 = arith.constant 0 : index
    %c0_38 = arith.constant 0 : index
    %c0_39 = arith.constant 0 : index
    %27 = vector.load %arg5[%c1_36, %c0_37, %c0_38, %c0_39] : memref<4x1x16x4xf32, #tpu.memory_space<vmem>>, vector<1x1x16x4xf32>
    %28 = vector.shape_cast %27 : vector<1x1x16x4xf32> to vector<16x4xf32>
    %c1_40 = arith.constant 1 : index
    %c0_41 = arith.constant 0 : index
    %c0_42 = arith.constant 0 : index
    %c0_43 = arith.constant 0 : index
    %29 = vector.load %arg6[%c1_40, %c0_41, %c0_42, %c0_43] : memref<4x1x16x4xf32, #tpu.memory_space<vmem>>, vector<1x1x16x4xf32>
    %30 = vector.shape_cast %29 : vector<1x1x16x4xf32> to vector<16x4xf32>
    %c1_44 = arith.constant 1 : index
    %c0_45 = arith.constant 0 : index
    %c0_46 = arith.constant 0 : index
    %c0_47 = arith.constant 0 : index
    %31 = vector.load %arg7[%c1_44, %c0_45, %c0_46, %c0_47] : memref<4x1x4x16xf32, #tpu.memory_space<vmem>>, vector<1x1x4x16xf32>
    %32 = vector.shape_cast %31 : vector<1x1x4x16xf32> to vector<4x16xf32>
    %c1_48 = arith.constant 1 : index
    %c0_49 = arith.constant 0 : index
    %c0_50 = arith.constant 0 : index
    %c0_51 = arith.constant 0 : index
    %33 = vector.load %arg8[%c1_48, %c0_49, %c0_50, %c0_51] : memref<4x1x4x16xf32, #tpu.memory_space<vmem>>, vector<1x1x4x16xf32>
    %34 = vector.shape_cast %33 : vector<1x1x4x16xf32> to vector<4x16xf32>
    %cst_52 = arith.constant dense<0.000000e+00> : vector<4x16xf32>
    %35 = tpu.matmul %24, %32, %cst_52 {dimension_numbers = #tpu.dot_dimension_numbers<[1], [0], [0], [1], [0, 0, 1, 1], [], []>} : vector<4x4xf32>, vector<4x16xf32>, vector<4x16xf32> -> vector<4x16xf32>
    %cst_53 = arith.constant dense<0.000000e+00> : vector<4x16xf32>
    %36 = tpu.matmul %26, %34, %cst_53 {dimension_numbers = #tpu.dot_dimension_numbers<[1], [0], [0], [1], [0, 0, 1, 1], [], []>} : vector<4x4xf32>, vector<4x16xf32>, vector<4x16xf32> -> vector<4x16xf32>
    %37 = arith.subf %35, %36 : vector<4x16xf32>
    %cst_54 = arith.constant dense<0.000000e+00> : vector<4x16xf32>
    %38 = tpu.matmul %24, %34, %cst_54 {dimension_numbers = #tpu.dot_dimension_numbers<[1], [0], [0], [1], [0, 0, 1, 1], [], []>} : vector<4x4xf32>, vector<4x16xf32>, vector<4x16xf32> -> vector<4x16xf32>
    %cst_55 = arith.constant dense<0.000000e+00> : vector<4x16xf32>
    %39 = tpu.matmul %26, %32, %cst_55 {dimension_numbers = #tpu.dot_dimension_numbers<[1], [0], [0], [1], [0, 0, 1, 1], [], []>} : vector<4x4xf32>, vector<4x16xf32>, vector<4x16xf32> -> vector<4x16xf32>
    %40 = arith.addf %38, %39 : vector<4x16xf32>
    %cst_56 = arith.constant dense<0.000000e+00> : vector<16x16xf32>
    %41 = tpu.matmul %28, %37, %cst_56 {dimension_numbers = #tpu.dot_dimension_numbers<[1], [0], [0], [1], [0, 0, 1, 1], [], []>} : vector<16x4xf32>, vector<4x16xf32>, vector<16x16xf32> -> vector<16x16xf32>
    %42 = arith.addf %22, %41 : vector<16x16xf32>
    %cst_57 = arith.constant dense<0.000000e+00> : vector<16x16xf32>
    %43 = tpu.matmul %30, %40, %cst_57 {dimension_numbers = #tpu.dot_dimension_numbers<[1], [0], [0], [1], [0, 0, 1, 1], [], []>} : vector<16x4xf32>, vector<4x16xf32>, vector<16x16xf32> -> vector<16x16xf32>
    %44 = arith.subf %42, %43 : vector<16x16xf32>
    %c0_58 = arith.constant 0 : index
    %c2 = arith.constant 2 : index
    %c0_59 = arith.constant 0 : index
    %c0_60 = arith.constant 0 : index
    %45 = vector.load %arg3[%c0_58, %c2, %c0_59, %c0_60] : memref<1x4x4x4xf32, #tpu.memory_space<vmem>>, vector<1x1x4x4xf32>
    %46 = vector.shape_cast %45 : vector<1x1x4x4xf32> to vector<4x4xf32>
    %c0_61 = arith.constant 0 : index
    %c2_62 = arith.constant 2 : index
    %c0_63 = arith.constant 0 : index
    %c0_64 = arith.constant 0 : index
    %47 = vector.load %arg4[%c0_61, %c2_62, %c0_63, %c0_64] : memref<1x4x4x4xf32, #tpu.memory_space<vmem>>, vector<1x1x4x4xf32>
    %48 = vector.shape_cast %47 : vector<1x1x4x4xf32> to vector<4x4xf32>
    %c2_65 = arith.constant 2 : index
    %c0_66 = arith.constant 0 : index
    %c0_67 = arith.constant 0 : index
    %c0_68 = arith.constant 0 : index
    %49 = vector.load %arg5[%c2_65, %c0_66, %c0_67, %c0_68] : memref<4x1x16x4xf32, #tpu.memory_space<vmem>>, vector<1x1x16x4xf32>
    %50 = vector.shape_cast %49 : vector<1x1x16x4xf32> to vector<16x4xf32>
    %c2_69 = arith.constant 2 : index
    %c0_70 = arith.constant 0 : index
    %c0_71 = arith.constant 0 : index
    %c0_72 = arith.constant 0 : index
    %51 = vector.load %arg6[%c2_69, %c0_70, %c0_71, %c0_72] : memref<4x1x16x4xf32, #tpu.memory_space<vmem>>, vector<1x1x16x4xf32>
    %52 = vector.shape_cast %51 : vector<1x1x16x4xf32> to vector<16x4xf32>
    %c2_73 = arith.constant 2 : index
    %c0_74 = arith.constant 0 : index
    %c0_75 = arith.constant 0 : index
    %c0_76 = arith.constant 0 : index
    %53 = vector.load %arg7[%c2_73, %c0_74, %c0_75, %c0_76] : memref<4x1x4x16xf32, #tpu.memory_space<vmem>>, vector<1x1x4x16xf32>
    %54 = vector.shape_cast %53 : vector<1x1x4x16xf32> to vector<4x16xf32>
    %c2_77 = arith.constant 2 : index
    %c0_78 = arith.constant 0 : index
    %c0_79 = arith.constant 0 : index
    %c0_80 = arith.constant 0 : index
    %55 = vector.load %arg8[%c2_77, %c0_78, %c0_79, %c0_80] : memref<4x1x4x16xf32, #tpu.memory_space<vmem>>, vector<1x1x4x16xf32>
    %56 = vector.shape_cast %55 : vector<1x1x4x16xf32> to vector<4x16xf32>
    %cst_81 = arith.constant dense<0.000000e+00> : vector<4x16xf32>
    %57 = tpu.matmul %46, %54, %cst_81 {dimension_numbers = #tpu.dot_dimension_numbers<[1], [0], [0], [1], [0, 0, 1, 1], [], []>} : vector<4x4xf32>, vector<4x16xf32>, vector<4x16xf32> -> vector<4x16xf32>
    %cst_82 = arith.constant dense<0.000000e+00> : vector<4x16xf32>
    %58 = tpu.matmul %48, %56, %cst_82 {dimension_numbers = #tpu.dot_dimension_numbers<[1], [0], [0], [1], [0, 0, 1, 1], [], []>} : vector<4x4xf32>, vector<4x16xf32>, vector<4x16xf32> -> vector<4x16xf32>
    %59 = arith.subf %57, %58 : vector<4x16xf32>
    %cst_83 = arith.constant dense<0.000000e+00> : vector<4x16xf32>
    %60 = tpu.matmul %46, %56, %cst_83 {dimension_numbers = #tpu.dot_dimension_numbers<[1], [0], [0], [1], [0, 0, 1, 1], [], []>} : vector<4x4xf32>, vector<4x16xf32>, vector<4x16xf32> -> vector<4x16xf32>
    %cst_84 = arith.constant dense<0.000000e+00> : vector<4x16xf32>
    %61 = tpu.matmul %48, %54, %cst_84 {dimension_numbers = #tpu.dot_dimension_numbers<[1], [0], [0], [1], [0, 0, 1, 1], [], []>} : vector<4x4xf32>, vector<4x16xf32>, vector<4x16xf32> -> vector<4x16xf32>
    %62 = arith.addf %60, %61 : vector<4x16xf32>
    %cst_85 = arith.constant dense<0.000000e+00> : vector<16x16xf32>
    %63 = tpu.matmul %50, %59, %cst_85 {dimension_numbers = #tpu.dot_dimension_numbers<[1], [0], [0], [1], [0, 0, 1, 1], [], []>} : vector<16x4xf32>, vector<4x16xf32>, vector<16x16xf32> -> vector<16x16xf32>
    %64 = arith.addf %44, %63 : vector<16x16xf32>
    %cst_86 = arith.constant dense<0.000000e+00> : vector<16x16xf32>
    %65 = tpu.matmul %52, %62, %cst_86 {dimension_numbers = #tpu.dot_dimension_numbers<[1], [0], [0], [1], [0, 0, 1, 1], [], []>} : vector<16x4xf32>, vector<4x16xf32>, vector<16x16xf32> -> vector<16x16xf32>
    %66 = arith.subf %64, %65 : vector<16x16xf32>
    %c0_87 = arith.constant 0 : index
    %c3 = arith.constant 3 : index
    %c0_88 = arith.constant 0 : index
    %c0_89 = arith.constant 0 : index
    %67 = vector.load %arg3[%c0_87, %c3, %c0_88, %c0_89] : memref<1x4x4x4xf32, #tpu.memory_space<vmem>>, vector<1x1x4x4xf32>
    %68 = vector.shape_cast %67 : vector<1x1x4x4xf32> to vector<4x4xf32>
    %c0_90 = arith.constant 0 : index
    %c3_91 = arith.constant 3 : index
    %c0_92 = arith.constant 0 : index
    %c0_93 = arith.constant 0 : index
    %69 = vector.load %arg4[%c0_90, %c3_91, %c0_92, %c0_93] : memref<1x4x4x4xf32, #tpu.memory_space<vmem>>, vector<1x1x4x4xf32>
    %70 = vector.shape_cast %69 : vector<1x1x4x4xf32> to vector<4x4xf32>
    %c3_94 = arith.constant 3 : index
    %c0_95 = arith.constant 0 : index
    %c0_96 = arith.constant 0 : index
    %c0_97 = arith.constant 0 : index
    %71 = vector.load %arg5[%c3_94, %c0_95, %c0_96, %c0_97] : memref<4x1x16x4xf32, #tpu.memory_space<vmem>>, vector<1x1x16x4xf32>
    %72 = vector.shape_cast %71 : vector<1x1x16x4xf32> to vector<16x4xf32>
    %c3_98 = arith.constant 3 : index
    %c0_99 = arith.constant 0 : index
    %c0_100 = arith.constant 0 : index
    %c0_101 = arith.constant 0 : index
    %73 = vector.load %arg6[%c3_98, %c0_99, %c0_100, %c0_101] : memref<4x1x16x4xf32, #tpu.memory_space<vmem>>, vector<1x1x16x4xf32>
    %74 = vector.shape_cast %73 : vector<1x1x16x4xf32> to vector<16x4xf32>
    %c3_102 = arith.constant 3 : index
    %c0_103 = arith.constant 0 : index
    %c0_104 = arith.constant 0 : index
    %c0_105 = arith.constant 0 : index
    %75 = vector.load %arg7[%c3_102, %c0_103, %c0_104, %c0_105] : memref<4x1x4x16xf32, #tpu.memory_space<vmem>>, vector<1x1x4x16xf32>
    %76 = vector.shape_cast %75 : vector<1x1x4x16xf32> to vector<4x16xf32>
    %c3_106 = arith.constant 3 : index
    %c0_107 = arith.constant 0 : index
    %c0_108 = arith.constant 0 : index
    %c0_109 = arith.constant 0 : index
    %77 = vector.load %arg8[%c3_106, %c0_107, %c0_108, %c0_109] : memref<4x1x4x16xf32, #tpu.memory_space<vmem>>, vector<1x1x4x16xf32>
    %78 = vector.shape_cast %77 : vector<1x1x4x16xf32> to vector<4x16xf32>
    %cst_110 = arith.constant dense<0.000000e+00> : vector<4x16xf32>
    %79 = tpu.matmul %68, %76, %cst_110 {dimension_numbers = #tpu.dot_dimension_numbers<[1], [0], [0], [1], [0, 0, 1, 1], [], []>} : vector<4x4xf32>, vector<4x16xf32>, vector<4x16xf32> -> vector<4x16xf32>
    %cst_111 = arith.constant dense<0.000000e+00> : vector<4x16xf32>
    %80 = tpu.matmul %70, %78, %cst_111 {dimension_numbers = #tpu.dot_dimension_numbers<[1], [0], [0], [1], [0, 0, 1, 1], [], []>} : vector<4x4xf32>, vector<4x16xf32>, vector<4x16xf32> -> vector<4x16xf32>
    %81 = arith.subf %79, %80 : vector<4x16xf32>
    %cst_112 = arith.constant dense<0.000000e+00> : vector<4x16xf32>
    %82 = tpu.matmul %68, %78, %cst_112 {dimension_numbers = #tpu.dot_dimension_numbers<[1], [0], [0], [1], [0, 0, 1, 1], [], []>} : vector<4x4xf32>, vector<4x16xf32>, vector<4x16xf32> -> vector<4x16xf32>
    %cst_113 = arith.constant dense<0.000000e+00> : vector<4x16xf32>
    %83 = tpu.matmul %70, %76, %cst_113 {dimension_numbers = #tpu.dot_dimension_numbers<[1], [0], [0], [1], [0, 0, 1, 1], [], []>} : vector<4x4xf32>, vector<4x16xf32>, vector<4x16xf32> -> vector<4x16xf32>
    %84 = arith.addf %82, %83 : vector<4x16xf32>
    %cst_114 = arith.constant dense<0.000000e+00> : vector<16x16xf32>
    %85 = tpu.matmul %72, %81, %cst_114 {dimension_numbers = #tpu.dot_dimension_numbers<[1], [0], [0], [1], [0, 0, 1, 1], [], []>} : vector<16x4xf32>, vector<4x16xf32>, vector<16x16xf32> -> vector<16x16xf32>
    %86 = arith.addf %66, %85 : vector<16x16xf32>
    %cst_115 = arith.constant dense<0.000000e+00> : vector<16x16xf32>
    %87 = tpu.matmul %74, %84, %cst_115 {dimension_numbers = #tpu.dot_dimension_numbers<[1], [0], [0], [1], [0, 0, 1, 1], [], []>} : vector<16x4xf32>, vector<4x16xf32>, vector<16x16xf32> -> vector<16x16xf32>
    %88 = arith.subf %86, %87 : vector<16x16xf32>
    %c0_116 = arith.constant 0 : index
    %c0_117 = arith.constant 0 : index
    %c0_118 = arith.constant 0 : index
    %c0_119 = arith.constant 0 : index
    %89 = vector.load %arg2[%c0_116, %c0_117, %c0_118, %c0_119] : memref<1x1x16x16xf32, #tpu.memory_space<vmem>>, vector<1x1x16x16xf32>
    %90 = vector.shape_cast %89 : vector<1x1x16x16xf32> to vector<16x16xf32>
    %91 = arith.addf %90, %88 : vector<16x16xf32>
    %c0_120 = arith.constant 0 : index
    %c0_121 = arith.constant 0 : index
    %c0_122 = arith.constant 0 : index
    %c0_123 = arith.constant 0 : index
    %92 = vector.load %arg9[%c0_120, %c0_121, %c0_122, %c0_123] : memref<1x1x16x16xf32, #tpu.memory_space<vmem>>, vector<1x1x16x16xf32>
    %93 = vector.shape_cast %92 : vector<1x1x16x16xf32> to vector<16x16xf32>
    %94 = vector.shape_cast %91 : vector<16x16xf32> to vector<1x1x16x16xf32>
    tpu.vector_store %arg9[%c0_120, %c0_121, %c0_122, %c0_123], %94 {strides = array<i32>} : memref<1x1x16x16xf32, #tpu.memory_space<vmem>>, vector<1x1x16x16xf32>,
    return
  }
  func.func @transform_0(%arg0: i32, %arg1: i32) -> (i32, i32, i32, i32) {
    %c0_i32 = arith.constant 0 : i32
    %c0_i32_0 = arith.constant 0 : i32
    %c0_i32_1 = arith.constant 0 : i32
    return %arg0, %arg1, %c0_i32, %c0_i32_0 : i32, i32, i32, i32
  }
  func.func @transform_1(%arg0: i32, %arg1: i32) -> (i32, i32, i32, i32) {
    %c0_i32 = arith.constant 0 : i32
    %c0_i32_0 = arith.constant 0 : i32
    %c0_i32_1 = arith.constant 0 : i32
    %c0_i32_2 = arith.constant 0 : i32
    return %arg0, %c0_i32, %c0_i32_0, %c0_i32_1 : i32, i32, i32, i32
  }
  func.func @transform_2(%arg0: i32, %arg1: i32) -> (i32, i32, i32, i32) {
    %c0_i32 = arith.constant 0 : i32
    %c0_i32_0 = arith.constant 0 : i32
    %c0_i32_1 = arith.constant 0 : i32
    %c0_i32_2 = arith.constant 0 : i32
    return %arg0, %c0_i32, %c0_i32_0, %c0_i32_1 : i32, i32, i32, i32
  }
  func.func @transform_3(%arg0: i32, %arg1: i32) -> (i32, i32, i32, i32) {
    %c0_i32 = arith.constant 0 : i32
    %c0_i32_0 = arith.constant 0 : i32
    %c0_i32_1 = arith.constant 0 : i32
    %c0_i32_2 = arith.constant 0 : i32
    return %c0_i32, %arg1, %c0_i32_0, %c0_i32_1 : i32, i32, i32, i32
  }
  func.func @transform_4(%arg0: i32, %arg1: i32) -> (i32, i32, i32, i32) {
    %c0_i32 = arith.constant 0 : i32
    %c0_i32_0 = arith.constant 0 : i32
    %c0_i32_1 = arith.constant 0 : i32
    %c0_i32_2 = arith.constant 0 : i32
    return %c0_i32, %arg1, %c0_i32_0, %c0_i32_1 : i32, i32, i32, i32
  }
  func.func @transform_5(%arg0: i32, %arg1: i32) -> (i32, i32, i32, i32) {
    %c0_i32 = arith.constant 0 : i32
    %c0_i32_0 = arith.constant 0 : i32
    %c0_i32_1 = arith.constant 0 : i32
    %c0_i32_2 = arith.constant 0 : i32
    return %c0_i32, %arg1, %c0_i32_0, %c0_i32_1 : i32, i32, i32, i32
  }
  func.func @transform_6(%arg0: i32, %arg1: i32) -> (i32, i32, i32, i32) {
    %c0_i32 = arith.constant 0 : i32
    %c0_i32_0 = arith.constant 0 : i32
    %c0_i32_1 = arith.constant 0 : i32
    %c0_i32_2 = arith.constant 0 : i32
    return %c0_i32, %arg1, %c0_i32_0, %c0_i32_1 : i32, i32, i32, i32
  }
  func.func @transform_7(%arg0: i32, %arg1: i32) -> (i32, i32, i32, i32) {
    %c0_i32 = arith.constant 0 : i32
    %c0_i32_0 = arith.constant 0 : i32
    %c0_i32_1 = arith.constant 0 : i32
    return %arg0, %arg1, %c0_i32, %c0_i32_0 : i32, i32, i32, i32
  }
}

</mosaic_0001>

<bundles_post_ra>
// kernel: _pr2d_forward_impl.3
= control target key start
LH: loop header
LB: loop body
LE: loop exit
PB: predicated region body
PF: predicated region fallthrough
CT: control target
= control target key end

     0   :  { %s3808_s0 = inlined_call_operand.hbm [shape: f32[2,4,16,16], index: 0, kind: input, shape index: {}, may-alias: {0,7}]   ;;  %s3809_s1 = inlined_call_operand.vmem [shape: f32[2,4,4,4], index: 1, kind: input, shape index: {}]   ;;  %s3810_s2 = inlined_call_operand.vmem [shape: f32[2,4,4,4], index: 2, kind: input, shape index: {}]   ;;  %s3811_s3 = inlined_call_operand.vmem [shape: f32[4,4,16,4], index: 3, kind: input, shape index: {}]   ;;  %s3812_s4 = inlined_call_operand.vmem [shape: f32[4,4,16,4], index: 4, kind: input, shape index: {}]   ;;  %s3813_s5 = inlined_call_operand.vmem [shape: f32[4,4,4,16], index: 5, kind: input, shape index: {}]   ;;  %s3814_s6 = inlined_call_operand.vmem [shape: f32[4,4,4,16], index: 6, kind: input, shape index: {}]   ;;  %s3815_s7 = inlined_call_operand.hbm [shape: f32[2,4,16,16], index: 7, kind: output, shape index: {}, may-alias: {0,7}]  }
   0x1   :  { %3826 = sst [smem:[#allocation20_spill]] %s3815_s7 }
   0x2   :  { %12 = vsyncpa [#allocation3], 0 }
   0x3   :  { %14 = vsyncpa [#allocation3 + $0x1], 0 }
   0x4   :  { %15 = vsyncpa [#allocation4], 0 }
   0x5   :  { %17 = vsyncpa [#allocation4 + $0x1], 0  ;;  %s3376_s24 = smov 0   ;;  %s3378_s25 = smov 0  }
   0x6   :  { %s3380_s26 = smov 0   ;;  %s3382_s27 = smov 0  }
   0x7   :  { %s3384_s28 = smov 0   ;;  %s3386_s29 = smov 0  }
   0x8   :  { %s3388_s30 = smov 0   ;;  %s3390_s8 = smov 0  }
   0x9   :  { %s3392_s9 = smov 0   ;;  %s3394_s10 = smov 0  }
   0xa LB: > { %3827 = sst [smem:[#allocation12_spill]] %s3298_s26  ;;  %s2786_s11 = sadd.s32 4294967295, %s3326_s10   ;;  %s3326_s10 = sphi %s3394_s10, %s23_s10   ;;  %s3322_s9 = sphi %s3392_s9, %s3859_s9   ;;  %s3318_s8 = sphi %s3390_s8, %s3858_s8   ;;  %s3314_s30 = sphi %s3388_s30, %s3857_s30   ;;  %s3310_s29 = sphi %s3386_s29, %s3856_s29   ;;  %s3306_s28 = sphi %s3384_s28, %s3849_s28   ;;  %s3302_s27 = sphi %s3382_s27, %s3855_s27   ;;  %s3298_s26 = sphi %s3380_s26, %s3854_s26   ;;  %s3294_s25 = sphi %s3378_s25, %s3853_s25   ;;  %s3290_s24 = sphi %s3376_s24, %s3852_s24  }
   0xb   : > { %3828 = sst [smem:[#allocation13_spill]] %s3306_s28  ;;  %s2787_s12 = sadd.s32 4294967294, %s3326_s10  }
   0xc   : > { %s32_s13 = sadd.s32 1, %s3318_s8  ;;  %s35_s14 = sadd.s32 1, %s3322_s9 }
   0xd   : > { %p33_p0 = scmp.ge.s32.totalorder %s32_s13, 4  ;;  %s44_s15 = sadd.s32 1, %s3306_s28 }
   0xe   : > { %p51_p1 = scmp.ne.s32.totalorder %s3306_s28, %s3302_s27  ;;  %p52_p2 = scmp.eq.s32.totalorder %s3326_s10, 0 }
   0xf   : > { %s3861_s13 = smov (%p33_p0, %s32_s13), 0  ;;  %s3863_s14 = smov (!%p33_p0, %s35_s14), %s3322_s9 }
  0x10   : > { %3829 = sst [smem:[#allocation14_spill]] %s3861_s13  ;;  %s40_s16 = ssub.s32 %s3318_s8, %s3861_s13 }
  0x11   : > { %p3444_p3 = por %p52_p2, %p51_p1  ;;  %p37_p4 = scmp.ge.s32.totalorder %s3863_s14, 2 }
  0x12   : > { %p57_p5 = scmp.ne.s32.totalorder %s3302_s27, %s3298_s26  ;;  %p58_p6 = scmp.eq.s32.totalorder %s2786_s11, 0 }
  0x13   : > { %p120_p7 = scmp.eq.s32.totalorder %s40_s16, 0  ;;  %s3865_s14 = smov (%p37_p4, %s3863_s14), 0 }
  0x14   : > { %3831 = sst [smem:[#allocation15_spill]] %s3865_s14  ;;  %p3455_p8 = por %p58_p6, %p57_p5 }
  0x15   : > { %s122_s19 = sadd.s32 1, %s3294_s25  ;;  %s39_s20 = ssub.s32 %s3322_s9, %s3865_s14 }
  0x16   : > { %s3832_s18 = scalar_select %p3455_p8, 1, 0 }
  0x17   : > { %p129_p9 = scmp.ne.s32.totalorder %s3294_s25, %s3290_s24  ;;  %s41_s21 = sor.u32 %s40_s16, %s39_s20 }
  0x18   : > { %p239_p10 = scmp.eq.s32.totalorder %s2786_s11, 7  ;;  %p42_p11 = scmp.eq.s32.totalorder %s41_s21, 0 }
  0x19   : > { %p3466_p12 = por %p129_p9, %p52_p2  ;;  %p245_p0 = scmp.eq.s32.totalorder %s2787_s12, 7 }
  0x1a   : > { %s3471_s23 = scalar_select %p120_p7, %s3294_s25, %s122_s19  }
  0x1b   : > { %s3474_s13 = scalar_select %p42_p11, %s3306_s28, %s44_s15  }
  0x1c   : > { %3834 = sst [smem:[#allocation16_spill]] %s3471_s23  ;;  %p3479_p13 = por %p239_p10, %p51_p1 }
  0x1d   : > { %3835 = sst [smem:[#allocation17_spill]] %s3474_s13  ;;  %p3486_p4 = por %p245_p0, %p57_p5 }
  0x1e   : > { %s3836_s7 = scalar_select %p3479_p13, 1, 0 }
  0x1f   : > { %s3838_s16 = scalar_select %p3486_p4, 1, 0 }
  0x20   : > { %3837 = sst [smem:[#allocation18_spill]] %s3836_s7  ;;  %p2789_p2 = scmp.ge.s32.totalorder %s3326_s10, 8 }
  0x21   : > { %3839 = sst [smem:[#allocation19_spill]] %s3838_s16  ;;  %s265_s11 = sand.u32 (!%p2789_p2), 1, %s3306_s28  }
  0x22   : > { %261 = sbr.rel (%p2789_p2) target bundleno = 92 (0x5c), region = 16  ;;  %s2791_s15 = sshll.u32 (!%p2789_p2), %s3318_s8, 1 }
  0x23   : > { %s2790_s19 = sshll.u32 (!%p2789_p2), %s265_s11, 4  ;;  %s2792_s20 = sshll.u32 (!%p2789_p2), %s3322_s9, 3 }
  0x24   : > { %s275_s21 = sadd.s32 (!%p2789_p2), %s2792_s20, %s2791_s15  ;;  %s269_s14 = scalar_lea.vmem (!%p2789_p2), [#allocation2], %s2790_s19 }
  0x25   : > { %s278_s13 = sshll.u32 (!%p2789_p2), %s269_s14, 4  ;;  %s2793_s12 = sshll.u32 (!%p2789_p2), %s275_s21, 7  ;;  %s3494_s13 = int_to_ptr.vmem [resolvable:$true] %s278_s13 }
  0x26   : > { %s3499_s16 = scalar_lea.hbm (!%p2789_p2), %s3808_s0, %s2793_s12  ;;  %s3501_s7 = scalar_lea.sflag (!%p2789_p2), [#allocation3], %s265_s11 }
  0x27   : > { %s3184_s28 = scalar_lea.hbm (!%p2789_p2), %s3499_s16, 256  ;;  %s3188_s19 = scalar_lea.hbm (!%p2789_p2), %s3808_s0, 2048 }
  0x28   : > { %p3185_p1 = scmp.ne.s32.totalorder (!%p2789_p2), %s3499_s16, %s3184_s28  ;;  %p3189_p7 = scmp.lt.u32.totalorder (!%p2789_p2), %s3499_s16, %s3808_s0 }
  0x29   : > { %p3190_p9 = scmp.lt.u32.totalorder %s3188_s19, %s3184_s28  ;;  %p3192_p11 = scmp.lt.u32.totalorder %s3184_s28, %s3499_s16 }
  0x2a   : > { %p3186_p5 = pnand %p3185_p1, %p3444_p3 }
  0x2b   : > { %p3191_p10 = por %p3190_p9, %p3189_p7 }
  0x2c   : > { %p3187_p6 = pneg %p3186_p5 }
  0x2d   : > { %p3193_p0 = por %p3192_p11, %p3191_p10 }
  0x2f   : > { %p3194_p2 = pnand %p3193_p0, %p3187_p6 }
  0x31   : > { %3197 = shalt.err (!%p3194_p2)
}
  0x32   : > { %s3198_s26 = scalar_lea.vmem %s3494_s13, 256  ;;  %s3328_s23 = smov [#allocation2]  }
  0x33   : > { %p3199_p1 = scmp.ne.s32.totalorder %s3494_s13, %s3198_s26  ;;  %s3202_s11 = sshll.u32 %s3328_s23, 4  ;;  %s3203_s11 = int_to_ptr.vmem [resolvable:$false] %s3202_s11 }
  0x34   : > { %s3204_s12 = scalar_lea.vmem %s3203_s11, 512  ;;  %p3205_p13 = scmp.lt.s32.totalorder %s3494_s13, %s3203_s11 }
  0x35   : > { %p3200_p5 = pnand %p3199_p1, %p3444_p3  ;;  %p3206_p8 = scmp.lt.s32.totalorder %s3204_s12, %s3198_s26 }
  0x37   : > { %p3201_p4 = pneg %p3200_p5  ;;  %p3207_p7 = por %p3206_p8, %p3205_p13 }
  0x39   : > { %p3208_p9 = pnand %p3207_p7, %p3201_p4 }
  0x3b   : > { %3211 = shalt.err (!%p3208_p9)
}
  0x3c   : > { %s3329_s28 = smov 128   ;;  %s3330_s14 = smov 8  }
  0x3d   : > { %3089 = dma.hbm_to_vmem [thread:$0]  (%p3444_p3), %s3499_s16, 256, %s3494_s13, %s3501_s7, %s3329_s28, %s3329_s28, %s3330_s14  }
  0x3e   : > { %303 = sbr.rel (!%p3466_p12) target bundleno = 70 (0x46), region = 32  ;;  %s305_s15 = sand.u32 (%p3466_p12), 1, %s3294_s25  }
  0x3f   : > { %s2901_s19 = sshll.u32 (%p3466_p12), %s3318_s8, 4  ;;  %s2794_s20 = sshll.u32 (%p3466_p12), %s305_s15, 6 }
  0x40   : > { %s310_s23 = scalar_lea.vmem (%p3466_p12), %s3811_s3, %s2901_s19  ;;  %s307_s11 = scalar_lea.vmem (%p3466_p12), [#allocation5], %s2794_s20 }
  0x41   : > { %v352_v0 = vld [vmem:[%s310_s23] sm:$0xff] (%p3466_p12)  ;;  %v354_v1 = vld [vmem:[%s310_s23 + $0x8] sm:$0xff] (%p3466_p12) }
  0x42   : > { %v356_v2 = vld [vmem:[%s310_s23 + $0x40] sm:$0xff] (%p3466_p12)  ;;  %353 = vst [vmem:[%s307_s11] sm:$0xff] (%p3466_p12), %v352_v0  ;;  %355 = vst [vmem:[%s307_s11 + $0x8] sm:$0xff] (%p3466_p12), %v354_v1  ;;  %v358_v3 = vld [vmem:[%s310_s23 + $0x48] sm:$0xff] (%p3466_p12) }
  0x43   : > { %357 = vst [vmem:[%s307_s11 + $0x10] sm:$0xff] (%p3466_p12), %v356_v2  ;;  %v360_v4 = vld [vmem:[%s310_s23 + $0x80] sm:$0xff] (%p3466_p12)  ;;  %v362_v5 = vld [vmem:[%s310_s23 + $0x88] sm:$0xff] (%p3466_p12)  ;;  %359 = vst [vmem:[%s307_s11 + $0x18] sm:$0xff] (%p3466_p12), %v358_v3 }
  0x44   : > { %361 = vst [vmem:[%s307_s11 + $0x20] sm:$0xff] (%p3466_p12), %v360_v4  ;;  %363 = vst [vmem:[%s307_s11 + $0x28] sm:$0xff] (%p3466_p12), %v362_v5  ;;  %v364_v6 = vld [vmem:[%s310_s23 + $0xc0] sm:$0xff] (%p3466_p12)  ;;  %v366_v7 = vld [vmem:[%s310_s23 + $0xc8] sm:$0xff] (%p3466_p12) }
  0x45   : > { %365 = vst [vmem:[%s307_s11 + $0x30] sm:$0xff] %v364_v6  ;;  %367 = vst [vmem:[%s307_s11 + $0x38] sm:$0xff] %v366_v7 }
  0x46 PF: > { %373 = sbr.rel (!%p3466_p12) target bundleno = 78 (0x4e), region = 70  ;;  %s375_s7 = sand.u32 (%p3466_p12), 1, %s3294_s25  }
  0x47   : > { %s2902_s13 = sshll.u32 (%p3466_p12), %s3318_s8, 4  ;;  %s2797_s17 = sshll.u32 (%p3466_p12), %s375_s7, 6 }
  0x48   : > { %s380_s28 = scalar_lea.vmem (%p3466_p12), %s3812_s4, %s2902_s13  ;;  %s377_s14 = scalar_lea.vmem (%p3466_p12), [#allocation6], %s2797_s17 }
  0x49   : > { %v422_v8 = vld [vmem:[%s380_s28] sm:$0xff] (%p3466_p12)  ;;  %v424_v9 = vld [vmem:[%s380_s28 + $0x8] sm:$0xff] (%p3466_p12) }
  0x4a   : > { %v426_v10 = vld [vmem:[%s380_s28 + $0x40] sm:$0xff] (%p3466_p12)  ;;  %423 = vst [vmem:[%s377_s14] sm:$0xff] (%p3466_p12), %v422_v8  ;;  %425 = vst [vmem:[%s377_s14 + $0x8] sm:$0xff] (%p3466_p12), %v424_v9  ;;  %v428_v11 = vld [vmem:[%s380_s28 + $0x48] sm:$0xff] (%p3466_p12) }
  0x4b   : > { %427 = vst [vmem:[%s377_s14 + $0x10] sm:$0xff] (%p3466_p12), %v426_v10  ;;  %v430_v12 = vld [vmem:[%s380_s28 + $0x80] sm:$0xff] (%p3466_p12)  ;;  %v432_v13 = vld [vmem:[%s380_s28 + $0x88] sm:$0xff] (%p3466_p12)  ;;  %429 = vst [vmem:[%s377_s14 + $0x18] sm:$0xff] (%p3466_p12), %v428_v11 }
  0x4c   : > { %431 = vst [vmem:[%s377_s14 + $0x20] sm:$0xff] (%p3466_p12), %v430_v12  ;;  %433 = vst [vmem:[%s377_s14 + $0x28] sm:$0xff] (%p3466_p12), %v432_v13  ;;  %v434_v14 = vld [vmem:[%s380_s28 + $0xc0] sm:$0xff] (%p3466_p12)  ;;  %v436_v15 = vld [vmem:[%s380_s28 + $0xc8] sm:$0xff] (%p3466_p12) }
  0x4d   : > { %435 = vst [vmem:[%s377_s14 + $0x30] sm:$0xff] %v434_v14  ;;  %437 = vst [vmem:[%s377_s14 + $0x38] sm:$0xff] %v436_v15 }
  0x4e PF: > { %443 = sbr.rel (!%p3466_p12) target bundleno = 85 (0x55), region = 108  ;;  %s445_s15 = sand.u32 (%p3466_p12), 1, %s3294_s25  }
  0x4f   : > { %s2801_s19 = sshll.u32 (%p3466_p12), %s3318_s8, 2  ;;  %s2800_s20 = sshll.u32 (%p3466_p12), %s445_s15, 4 }
  0x50   : > { %s449_s23 = scalar_lea.vmem (%p3466_p12), %s3813_s5, %s2801_s19  ;;  %s447_s11 = scalar_lea.vmem (%p3466_p12), [#allocation7], %s2800_s20 }
  0x51   : > { %v465_v16 = vld [vmem:[%s449_s23] sm:$0xf] (%p3466_p12)  ;;  %v467_v17 = vld [vmem:[%s449_s23 + $0x10] sm:$0xf] (%p3466_p12) }
  0x52   : > { %466 = vst [vmem:[%s447_s11] sm:$0xf] (%p3466_p12), %v465_v16  ;;  %468 = vst [vmem:[%s447_s11 + $0x4] sm:$0xf] (%p3466_p12), %v467_v17  ;;  %v469_v18 = vld [vmem:[%s449_s23 + $0x20] sm:$0xf] (%p3466_p12) }
  0x53   : > { %v471_v19 = vld [vmem:[%s449_s23 + $0x30] sm:$0xf] (%p3466_p12)  ;;  %470 = vst [vmem:[%s447_s11 + $0x8] sm:$0xf] (%p3466_p12), %v469_v18 }
  0x54   : > { %472 = vst [vmem:[%s447_s11 + $0xc] sm:$0xf] (%p3466_p12), %v471_v19 }
  0x55 PF: > { %503 = sbr.rel (!%p3466_p12) target bundleno = 92 (0x5c), region = 149  ;;  %s505_s7 = sand.u32 (%p3466_p12), 1, %s3294_s25  }
  0x56   : > { %s2803_s13 = sshll.u32 (%p3466_p12), %s3318_s8, 2  ;;  %s2802_s17 = sshll.u32 (%p3466_p12), %s505_s7, 4 }
  0x57   : > { %s509_s28 = scalar_lea.vmem (%p3466_p12), %s3814_s6, %s2803_s13  ;;  %s507_s14 = scalar_lea.vmem (%p3466_p12), [#allocation8], %s2802_s17 }
  0x58   : > { %v525_v20 = vld [vmem:[%s509_s28] sm:$0xf] (%p3466_p12)  ;;  %v527_v21 = vld [vmem:[%s509_s28 + $0x10] sm:$0xf] (%p3466_p12) }
  0x59   : > { %526 = vst [vmem:[%s507_s14] sm:$0xf] (%p3466_p12), %v525_v20  ;;  %528 = vst [vmem:[%s507_s14 + $0x4] sm:$0xf] (%p3466_p12), %v527_v21  ;;  %v529_v22 = vld [vmem:[%s509_s28 + $0x20] sm:$0xf] (%p3466_p12) }
  0x5a   : > { %v531_v23 = vld [vmem:[%s509_s28 + $0x30] sm:$0xf] (%p3466_p12)  ;;  %530 = vst [vmem:[%s507_s14 + $0x8] sm:$0xf] (%p3466_p12), %v529_v22 }
  0x5b   : > { %532 = vst [vmem:[%s507_s14 + $0xc] sm:$0xf] (%p3466_p12), %v531_v23 }
  0x5c PF: > { %p2804_p3 = scmp.ge.s32.totalorder %s3326_s10, 1  ;;  %p562_p8 = scmp.lt.s32.totalorder %s3326_s10, 9 }
  0x5e   : > { %p563_p12 = pnand %p2804_p3, %p562_p8 }
  0x5f   : > { %s3556_s22 = sand.u32 (!%p563_p12), 1, %s3302_s27   ;;  %p3840_p13 = scmp.ne.s32.totalorder (!%p563_p12), %s3832_s18, 0 }
  0x60   : > { %566 = sbr.rel (%p563_p12) target bundleno = 1241 (0x4d9), region = 190  ;;  %s2805_s15 = sshll.u32 (!%p563_p12), %s3556_s22, 4 }
  0x61   : > { %s569_s19 = scalar_lea.sflag (!%p563_p12), [#allocation3], %s3556_s22  ;;  %s3562_s20 = scalar_lea.vmem (!%p563_p12), [#allocation2], %s2805_s15 }
  0x67   : > { %3281 = dma.done.wait (%p3840_p13), %s569_s19, 256  }
  0x68   : > { %3283 = vsyncadd (%p3840_p13), %s569_s19, 4294967040  ;;  %s578_s21 = sand.u32 1, %s3290_s24   ;;  %p657_p4 = scmp.lt.s32.totalorder %s3314_s30, 1  ;;  %v3331_v24 = vmov 0.0   ;;  %vm3332_vm0 = vmmov 0   ;;  %vm679_vm1 = vcmask 1043456  }
  0x69   : > { %2961 = vmatprep.subr.mxu0 %v3331_v24  ;;  %2966 = vmatprep.subr.mxu1 %v3331_v24  ;;  %s2808_s26 = sshll.u32 %s578_s21, 4  ;;  %vm675_vm2 = vcmask 31744   ;;  %s2806_s19 = sshll.u32 %s578_s21, 6  ;;  %vm2581_vm3 = vcmask 130048  }
  0x6a   : > { %2963 = vmatprep.mubr.msk.f32.mxu0 %vm3332_vm0, %v3331_v24  ;;  %2968 = vmatprep.mubr.msk.f32.mxu1 %vm3332_vm0, %v3331_v24  ;;  %s658_s18 = scalar_select %p657_p4, %s3314_s30, 1 }
  0x6b   : > { %s3579_s11 = scalar_lea.vmem [#allocation7], %s2808_s26  ;;  %s3582_s7 = scalar_lea.vmem [#allocation8], %s2808_s26 }
  0x6c   : > { %s2903_s23 = sshll.u32 %s658_s18, 4  ;;  %v673_v25 = vld [vmem:[%s3579_s11] sm:$0xf]  ;;  %v2835_v29 = vld [vmem:[%s3579_s11 + $0x4] sm:$0xf]  ;;  %s3621_s26 = scalar_lea.vmem [#allocation5], %s2806_s19 }
  0x6d   : > { %v674_v26 = vld [vmem:[%s3582_s7] sm:$0xf]  ;;  %s3588_s16 = scalar_lea.vmem %s3809_s1, %s2903_s23  ;;  %s3593_s14 = scalar_lea.vmem %s3810_s2, %s2903_s23  ;;  %2962 = vmatpush3.msk.msra.mxu0 %vm679_vm1, %v673_v25  ;;  %v2836_v33 = vld [vmem:[%s3582_s7 + $0x4] sm:$0xf]  ;;  %v670_v39 = vld [vmem:[%s3621_s26 + $0x8] sm:$0xff] }
  0x6e   : > { %2967 = vmatpush3.msk.msra.mxu1 %vm679_vm1, %v674_v26  ;;  %v667_v27 = vld [vmem:[%s3588_s16] sm:$0xf]  ;;  %2971 = vmatprep.subr.mxu0 %v3331_v24  ;;  %v2829_v30 = vld [vmem:[%s3588_s16 + $0x4] sm:$0xf]  ;;  %s3641_s24 = scalar_lea.vmem [#allocation6], %s2806_s19  ;;  %v2831_v51 = vld [vmem:[%s3621_s26 + $0x10] sm:$0xff] }
  0x6f   : > { %v668_v28 = vld [vmem:[%s3593_s14] sm:$0xf]  ;;  %2964 = vmatmul.mubr.msk.f32.vlgmr.msra.gmra.mrb[0].mxu0 %vm675_vm2, %v667_v27  ;;  %v2830_v32 = vld [vmem:[%s3593_s14 + $0x4] sm:$0xf]  ;;  %v672_v42 = vld [vmem:[%s3641_s24 + $0x8] sm:$0xff]  ;;  %s2896_s21 = sshll.u32 %s3310_s29, 1 }
  0x70   : > { %2969 = vmatmul.mubr.msk.f32.vlgmr.msra.gmra.mrb[0].mxu1 %vm675_vm2, %v668_v28  ;;  %2973 = vmatprep.mubr.msk.f32.mxu0 %vm3332_vm0, %v3331_v24  ;;  %v669_v31 = vld [vmem:[%s3621_s26] sm:$0xff]  ;;  %v2857_v46 = vld [vmem:[%s3579_s11 + $0x8] sm:$0xf]  ;;  %v2833_v63 = vld [vmem:[%s3641_s24 + $0x10] sm:$0xff]  ;;  %s2897_s18 = sshll.u32 %s3314_s30, 3  ;;  %s3841_s13 = sld [smem:[#allocation18_spill]] }
  0x71   : > { %2972 = vmatpush3.msk.msra.mxu0 %vm679_vm1, %v673_v25  ;;  %2983 = vmatprep.mubr.msk.f32.mxu1 %vm675_vm2, %v669_v31  ;;  %v671_v40 = vld [vmem:[%s3641_s24] sm:$0xff]  ;;  %v2851_v48 = vld [vmem:[%s3588_s16 + $0x8] sm:$0xf]  ;;  %v2832_v62 = vld [vmem:[%s3621_s26 + $0x18] sm:$0xff]  ;;  %s2597_s23 = sadd.s32 %s2897_s18, %s2896_s21 }
  0x72   : > { %2976 = vmatprep.subr.mxu0 %v3331_v24  ;;  %v2852_v50 = vld [vmem:[%s3593_s14 + $0x8] sm:$0xf]  ;;  %v2834_v0 = vld [vmem:[%s3641_s24 + $0x18] sm:$0xff]  ;;  %v2873_v5 = vld [vmem:[%s3588_s16 + $0xc] sm:$0xf]  ;;  %s3842_s16 = sld [smem:[#allocation20_spill]] }
  0x73   : > { %2974 = vmatmul.mubr.msk.f32.vlgmr.msra.gmra.mrb[2].mxu0 %vm675_vm2, %v668_v28  ;;  %v2858_v52 = vld [vmem:[%s3582_s7 + $0x8] sm:$0xf]  ;;  %v2879_v3 = vld [vmem:[%s3579_s11 + $0xc] sm:$0xf]  ;;  %v2853_v8 = vld [vmem:[%s3621_s26 + $0x20] sm:$0xff]  ;;  %s2898_s11 = sshll.u32 %s2597_s23, 7 }
  0x74   : > { %2977 = vmatpush3.msk.msra.mxu0 %vm679_vm1, %v674_v26  ;;  %2978 = vmatprep.mubr.msk.f32.mxu0 %vm3332_vm0, %v3331_v24  ;;  %v2874_v7 = vld [vmem:[%s3593_s14 + $0xc] sm:$0xf]  ;;  %v2855_v22 = vld [vmem:[%s3641_s24 + $0x20] sm:$0xff] }
  0x75   : > { %2991 = vmatprep.subr.mxu0 %v3331_v24  ;;  %v2880_v9 = vld [vmem:[%s3582_s7 + $0xc] sm:$0xf]  ;;  %s656_s7 = scalar_lea.vmem [#allocation9], %s2805_s15  ;;  %s2585_s15 = scalar_lea.sflag [#allocation4], %s3556_s22 }
  0x76   : > { %v2854_v21 = vld [vmem:[%s3621_s26 + $0x28] sm:$0xff]  ;;  %s2600_s17 = sshll.u32 %s656_s7, 4  ;;  %p3843_p10 = scmp.ne.s32.totalorder %s3841_s13, 0  ;;  %s3748_s17 = int_to_ptr.vmem [resolvable:$true] %s2600_s17 }
  0x77   : > { %v2856_v23 = vld [vmem:[%s3641_s24 + $0x28] sm:$0xff]  ;;  %s3212_s28 = scalar_lea.vmem %s3748_s17, 256 }
  0x78   : > { %s3746_s12 = scalar_lea.hbm %s3842_s16, %s2898_s11  ;;  %p3213_p6 = scmp.ne.s32.totalorder %s3748_s17, %s3212_s28 }
  0x7a   : > { %p3214_p11 = pnand %p3213_p6, %p3843_p10 }
  0x7b   : > { %2979 = vmatmul.mubr.msk.f32.vlgmr.msra.gmra.mrb[2].mxu0 %vm675_vm2, %v667_v27 }
  0x7c   : > { %2993 = vmatprep.mubr.msk.f32.mxu0 %vm3332_vm0, %v3331_v24  ;;  %2992 = vmatpush3.msk.msra.mxu0 %vm679_vm1, %v2835_v29  ;;  %p3215_p0 = pneg %p3214_p11 }
  0x7d   : > { %3001 = vmatprep.subr.mxu0 %v3331_v24 }
  0x7f   : > { %2994 = vmatmul.mubr.msk.f32.vlgmr.msra.gmra.mrb[4].mxu0 %vm675_vm2, %v2829_v30 }
  0x80   : > { %3002 = vmatpush3.msk.msra.mxu0 %vm679_vm1, %v2835_v29  ;;  %3003 = vmatprep.mubr.msk.f32.mxu0 %vm3332_vm0, %v3331_v24  ;;  %v2875_v29 = vld [vmem:[%s3621_s26 + $0x30] sm:$0xff] }
  0x81   : > { %3006 = vmatprep.subr.mxu0 %v3331_v24 }
  0x83   : > { %3004 = vmatmul.mubr.msk.f32.vlgmr.msra.gmra.mrb[6].mxu0 %vm675_vm2, %v2830_v32 }
  0x84   : > { %3008 = vmatprep.mubr.msk.f32.mxu0 %vm3332_vm0, %v3331_v24  ;;  %3007 = vmatpush3.msk.msra.mxu0 %vm679_vm1, %v2836_v33 }
  0x85   : > { %3021 = vmatprep.subr.mxu0 %v3331_v24 }
  0x8b   : > { %3009 = vmatmul.mubr.msk.f32.vlgmr.msra.gmra.mrb[6].mxu0 %vm675_vm2, %v2829_v30 }
  0x8c   : > { %3023 = vmatprep.mubr.msk.f32.mxu0 %vm3332_vm0, %v3331_v24  ;;  %3022 = vmatpush3.msk.msra.mxu0 %vm679_vm1, %v2857_v46 }
  0x8d   : > { %3031 = vmatprep.subr.mxu0 %v3331_v24 }
  0x8f   : > { %3024 = vmatmul.mubr.msk.f32.vlgmr.msra.gmra.mrb[8].mxu0 %vm675_vm2, %v2851_v48 }
  0x90   : > { %3032 = vmatpush3.msk.msra.mxu0 %vm679_vm1, %v2857_v46  ;;  %3033 = vmatprep.mubr.msk.f32.mxu0 %vm3332_vm0, %v3331_v24 }
  0x91   : > { %3036 = vmatprep.subr.mxu0 %v3331_v24 }
  0x93   : > { %3034 = vmatmul.mubr.msk.f32.vlgmr.msra.gmra.mrb[10].mxu0 %vm675_vm2, %v2852_v50 }
  0x94   : > { %3038 = vmatprep.mubr.msk.f32.mxu0 %vm3332_vm0, %v3331_v24  ;;  %3037 = vmatpush3.msk.msra.mxu0 %vm679_vm1, %v2858_v52 }
  0x95   : > { %3051 = vmatprep.subr.mxu0 %v3331_v24 }
  0x9b   : > { %3039 = vmatmul.mubr.msk.f32.vlgmr.msra.gmra.mrb[10].mxu0 %vm675_vm2, %v2851_v48  ;;  %v2578_v48 = vld [vmem:[%s3562_s20 + $0x8] sm:$0xff] }
  0x9c   : > { %3053 = vmatprep.mubr.msk.f32.mxu0 %vm3332_vm0, %v3331_v24  ;;  %3052 = vmatpush3.msk.msra.mxu0 %vm679_vm1, %v2879_v3 }
  0x9d   : > { %3061 = vmatprep.subr.mxu0 %v3331_v24 }
  0x9f   : > { %3054 = vmatmul.mubr.msk.f32.vlgmr.msra.gmra.mrb[12].mxu0 %vm675_vm2, %v2873_v5 }
  0xa0   : > { %3062 = vmatpush3.msk.msra.mxu0 %vm679_vm1, %v2879_v3  ;;  %3063 = vmatprep.mubr.msk.f32.mxu0 %vm3332_vm0, %v3331_v24 }
  0xa1   : > { %3066 = vmatprep.subr.mxu0 %v3331_v24 }
  0xa3   : > { %3064 = vmatmul.mubr.msk.f32.vlgmr.msra.gmra.mrb[14].mxu0 %vm675_vm2, %v2874_v7 }
  0xa4   : > { %3068 = vmatprep.mubr.msk.f32.mxu0 %vm3332_vm0, %v3331_v24  ;;  %3067 = vmatpush3.msk.msra.mxu0 %vm679_vm1, %v2880_v9 }
  0xab   : > { %3069 = vmatmul.mubr.msk.f32.vlgmr.msra.gmra.mrb[14].mxu0 %vm675_vm2, %v2873_v5 }
 0x142   : > { %v749_v34 = vpop.f32.mrb[0].mxu0 }
 0x143   : > { %v825_v35 = vpop.f32.mrb[0].mxu1  ;;  %v2965_v37 = vpop.f32.mrb[1].mxu0 }
 0x144   : > { %v829_v36 = vsub.f32 %v749_v34, %v825_v35  ;;  %v2970_v38 = vpop.f32.mrb[1].mxu1 }
 0x146   : > { %2981 = vmatprep.subr.msk.mxu1 %vm679_vm1, %v829_v36 }
 0x147   : > { %2982 = vmatpush3.msk.msra.mxu1 %vm679_vm1, %v829_v36 }
 0x148   : > { %2984 = vmatmul.mubr.msk.f32.vlgmr.msra.gmra.mrb[2].mxu1 %vm675_vm2, %v670_v39 }
 0x149   : > { %2988 = vmatprep.mubr.msk.f32.mxu1 %vm675_vm2, %v671_v40  ;;  %v2876_v40 = vld [vmem:[%s3621_s26 + $0x38] sm:$0xff] }
 0x14e   : > { %v966_v41 = vpop.f32.mrb[2].mxu0 }
 0x14f   : > { %v2980_v43 = vpop.f32.mrb[3].mxu0  ;;  %2986 = vmatprep.subr.msk.mxu1 %vm679_vm1, %v966_v41 }
 0x150   : > { %2987 = vmatpush3.msk.msra.mxu1 %vm679_vm1, %v966_v41  ;;  %v2877_v41 = vld [vmem:[%s3641_s24 + $0x30] sm:$0xff] }
 0x151   : > { %2989 = vmatmul.mubr.msk.f32.vlgmr.msra.gmra.mrb[4].mxu1 %vm675_vm2, %v672_v42  ;;  %2996 = vmatprep.subr.mxu1 %v3331_v24  ;;  %v2878_v42 = vld [vmem:[%s3641_s24 + $0x38] sm:$0xff] }
 0x152   : > { %2997 = vmatpush3.msk.msra.mxu1 %vm679_vm1, %v2836_v33  ;;  %2998 = vmatprep.mubr.msk.f32.mxu1 %vm3332_vm0, %v3331_v24  ;;  %v1226_v44 = vpop.f32.mrb[4].mxu0 }
 0x153   : > { %v2995_v45 = vpop.f32.mrb[5].mxu0 }
 0x155   : > { %2999 = vmatmul.mubr.msk.f32.vlgmr.msra.gmra.mrb[6].mxu1 %vm675_vm2, %v2830_v32 }
 0x156   : > { %3013 = vmatprep.mubr.msk.f32.mxu1 %vm675_vm2, %v2831_v51  ;;  %v2577_v51 = vld [vmem:[%s3562_s20] sm:$0xff]  ;;  %s3333_s20 = smov [#allocation9]  }
 0x157   : > { %s3216_s14 = sshll.u32 %s3333_s20, 4  ;;  %s3217_s14 = int_to_ptr.vmem [resolvable:$false] %s3216_s14 }
 0x158   : > { %s3218_s19 = scalar_lea.vmem %s3217_s14, 512  ;;  %p3219_p2 = scmp.lt.s32.totalorder %s3748_s17, %s3217_s14 }
 0x159   : > { %p3220_p1 = scmp.lt.s32.totalorder %s3218_s19, %s3212_s28 }
 0x15b   : > { %p3221_p5 = por %p3220_p1, %p3219_p2 }
 0x15d   : > { %p3222_p7 = pnand %p3221_p5, %p3215_p0 }
 0x15e   : > { %v1443_v47 = vpop.f32.mrb[6].mxu0 }
 0x15f   : > { %v3010_v49 = vpop.f32.mrb[7].mxu0 }
 0x162   : > { %v1705_v1 = vpop.f32.mrb[8].mxu0 }
 0x163   : > { %v3025_v2 = vpop.f32.mrb[9].mxu0 }
 0x16e   : > { %v1922_v4 = vpop.f32.mrb[10].mxu0 }
 0x16f   : > { %v3040_v6 = vpop.f32.mrb[11].mxu0 }
 0x172   : > { %v2184_v25 = vpop.f32.mrb[12].mxu0 }
 0x173   : > { %v3055_v26 = vpop.f32.mrb[13].mxu0 }
 0x17e   : > { %v2401_v27 = vpop.f32.mrb[14].mxu0 }
 0x17f   : > { %v3070_v28 = vpop.f32.mrb[15].mxu0 }
 0x21b   : > { %v2985_v53 = vpop.f32.mrb[2].mxu1 }
 0x21c   : > { %v1045_v54 = vpop.f32.mrb[3].mxu1 }
 0x224   : > { %v2990_v55 = vpop.f32.mrb[4].mxu1 }
 0x225   : > { %v1139_v56 = vsub.f32 %v2985_v53, %v2990_v55  ;;  %v1129_v57 = vpop.f32.mrb[5].mxu1 }
 0x226   : > { %v1138_v58 = vsub.f32 %v1045_v54, %v1129_v57 }
 0x228   : > { %v1302_v59 = vpop.f32.mrb[6].mxu1 }
 0x229   : > { %v1306_v60 = vsub.f32 %v1226_v44, %v1302_v59  ;;  %v3000_v61 = vpop.f32.mrb[7].mxu1 }
 0x22b   : > { %3011 = vmatprep.subr.msk.mxu1 %vm679_vm1, %v1306_v60 }
 0x22c   : > { %3012 = vmatpush3.msk.msra.mxu1 %vm679_vm1, %v1306_v60 }
 0x22d   : > { %3014 = vmatmul.mubr.msk.f32.vlgmr.msra.gmra.mrb[8].mxu1 %vm675_vm2, %v2832_v62  ;;  %3016 = vmatprep.subr.msk.mxu1 %vm679_vm1, %v1443_v47 }
 0x22e   : > { %3017 = vmatpush3.msk.msra.mxu1 %vm679_vm1, %v1443_v47  ;;  %3018 = vmatprep.mubr.msk.f32.mxu1 %vm675_vm2, %v2833_v63 }
 0x22f   : > { %3026 = vmatprep.subr.mxu1 %v3331_v24 }
 0x231   : > { %3019 = vmatmul.mubr.msk.f32.vlgmr.msra.gmra.mrb[10].mxu1 %vm675_vm2, %v2834_v0 }
 0x232   : > { %3027 = vmatpush3.msk.msra.mxu1 %vm679_vm1, %v2858_v52  ;;  %3028 = vmatprep.mubr.msk.f32.mxu1 %vm3332_vm0, %v3331_v24 }
 0x235   : > { %3029 = vmatmul.mubr.msk.f32.vlgmr.msra.gmra.mrb[12].mxu1 %vm675_vm2, %v2852_v50 }
 0x236   : > { %3043 = vmatprep.mubr.msk.f32.mxu1 %vm675_vm2, %v2853_v8 }
 0x300   : > { %v3015_v10 = vpop.f32.mrb[8].mxu1 }
 0x301   : > { %v1532_v11 = vadd.f32 %v3015_v10, %v1139_v56  ;;  %v1522_v12 = vpop.f32.mrb[9].mxu1 }
 0x302   : > { %v1531_v13 = vadd.f32 %v1522_v12, %v1138_v58 }
 0x304   : > { %v3020_v14 = vpop.f32.mrb[10].mxu1 }
 0x305   : > { %v1618_v15 = vsub.f32 %v1532_v11, %v3020_v14  ;;  %v1608_v16 = vpop.f32.mrb[11].mxu1 }
 0x306   : > { %v1617_v17 = vsub.f32 %v1531_v13, %v1608_v16 }
 0x308   : > { %v1781_v18 = vpop.f32.mrb[12].mxu1 }
 0x309   : > { %v1785_v19 = vsub.f32 %v1705_v1, %v1781_v18  ;;  %v3030_v20 = vpop.f32.mrb[13].mxu1 }
 0x30b   : > { %3041 = vmatprep.subr.msk.mxu1 %vm679_vm1, %v1785_v19 }
 0x30c   : > { %3042 = vmatpush3.msk.msra.mxu1 %vm679_vm1, %v1785_v19 }
 0x30d   : > { %3044 = vmatmul.mubr.msk.f32.vlgmr.msra.gmra.mrb[14].mxu1 %vm675_vm2, %v2854_v21  ;;  %3046 = vmatprep.subr.msk.mxu1 %vm679_vm1, %v1922_v4 }
 0x30e   : > { %3047 = vmatpush3.msk.msra.mxu1 %vm679_vm1, %v1922_v4  ;;  %3048 = vmatprep.mubr.msk.f32.mxu1 %vm675_vm2, %v2855_v22 }
 0x30f   : > { %3056 = vmatprep.subr.mxu1 %v3331_v24 }
 0x311   : > { %3049 = vmatmul.mubr.msk.f32.vlgmr.msra.gmra.mrb[16].mxu1 %vm675_vm2, %v2856_v23 }
 0x312   : > { %3057 = vmatpush3.msk.msra.mxu1 %vm679_vm1, %v2880_v9  ;;  %3058 = vmatprep.mubr.msk.f32.mxu1 %vm3332_vm0, %v3331_v24 }
 0x315   : > { %3059 = vmatmul.mubr.msk.f32.vlgmr.msra.gmra.mrb[18].mxu1 %vm675_vm2, %v2874_v7 }
 0x316   : > { %3073 = vmatprep.mubr.msk.f32.mxu1 %vm675_vm2, %v2875_v29 }
 0x3e0   : > { %v3045_v30 = vpop.f32.mrb[14].mxu1 }
 0x3e1   : > { %v2011_v31 = vadd.f32 %v3045_v30, %v1618_v15  ;;  %v2001_v32 = vpop.f32.mrb[15].mxu1 }
 0x3e2   : > { %v2010_v33 = vadd.f32 %v2001_v32, %v1617_v17 }
 0x3e4   : > { %v3050_v34 = vpop.f32.mrb[16].mxu1 }
 0x3e5   : > { %v2097_v35 = vsub.f32 %v2011_v31, %v3050_v34  ;;  %v2087_v24 = vpop.f32.mrb[17].mxu1 }
 0x3e6   : > { %v2096_v36 = vsub.f32 %v2010_v33, %v2087_v24 }
 0x3e8   : > { %v2260_v37 = vpop.f32.mrb[18].mxu1 }
 0x3e9   : > { %v2264_v38 = vsub.f32 %v2184_v25, %v2260_v37  ;;  %v3060_v39 = vpop.f32.mrb[19].mxu1 }
 0x3eb   : > { %3071 = vmatprep.subr.msk.mxu1 %vm679_vm1, %v2264_v38 }
 0x3ec   : > { %3072 = vmatpush3.msk.msra.mxu1 %vm679_vm1, %v2264_v38 }
 0x3ed   : > { %3074 = vmatmul.mubr.msk.f32.vlgmr.msra.gmra.mrb[20].mxu1 %vm675_vm2, %v2876_v40  ;;  %3076 = vmatprep.subr.msk.mxu1 %vm679_vm1, %v2401_v27 }
 0x3ee   : > { %3077 = vmatpush3.msk.msra.mxu1 %vm679_vm1, %v2401_v27  ;;  %3078 = vmatprep.mubr.msk.f32.mxu1 %vm675_vm2, %v2877_v41 }
 0x3f1   : > { %3079 = vmatmul.mubr.msk.f32.vlgmr.msra.gmra.mrb[22].mxu1 %vm675_vm2, %v2878_v42 }
 0x4c0   : > { %v3075_v43 = vpop.f32.mrb[20].mxu1 }
 0x4c1   : > { %v2490_v44 = vadd.f32 %v3075_v43, %v2097_v35  ;;  %v2480_v45 = vpop.f32.mrb[21].mxu1 }
 0x4c2   : > { %v2489_v46 = vadd.f32 %v2480_v45, %v2096_v36 }
 0x4c4   : > { %v3080_v47 = vpop.f32.mrb[22].mxu1 }
 0x4c5   : > { %v2576_v49 = vsub.f32 %v2490_v44, %v3080_v47  ;;  %v2566_v50 = vpop.f32.mrb[23].mxu1 }
 0x4c6   : > { %v2575_v52 = vsub.f32 %v2489_v46, %v2566_v50 }
 0x4c7   : > { %v2580_v53 = vadd.f32 %v2578_v48, %v2576_v49 }
 0x4c8   : > { %v2579_v54 = vadd.f32 %v2577_v51, %v2575_v52 }
 0x4c9   : > { %2583 = vst.msk [vmem:[%s656_s7 + $0x8] sm:$0xff] %vm2581_vm3, %v2580_v53 }
 0x4ca   : > { %2582 = vst.msk [vmem:[%s656_s7] sm:$0xff] %vm2581_vm3, %v2579_v54 }
 0x4cb   : > { %3225 = shalt.err (!%p3222_p7)
}
 0x4cc   : > { %s3226_s26 = scalar_lea.hbm %s3746_s12, 256  ;;  %s3230_s18 = scalar_lea.hbm %s3842_s16, 2048 }
 0x4cd   : > { %p3227_p9 = scmp.ne.s32.totalorder %s3746_s12, %s3226_s26  ;;  %p3231_p12 = scmp.lt.u32.totalorder %s3746_s12, %s3842_s16 }
 0x4ce   : > { %p3232_p13 = scmp.lt.u32.totalorder %s3230_s18, %s3226_s26  ;;  %p3234_p6 = scmp.lt.u32.totalorder %s3226_s26, %s3746_s12 }
 0x4cf   : > { %p3228_p3 = pnand %p3227_p9, %p3843_p10 }
 0x4d0   : > { %p3233_p4 = por %p3232_p13, %p3231_p12 }
 0x4d1   : > { %p3229_p8 = pneg %p3228_p3 }
 0x4d2   : > { %p3235_p11 = por %p3234_p6, %p3233_p4 }
 0x4d4   : > { %p3236_p0 = pnand %p3235_p11, %p3229_p8 }
 0x4d6   : > { %3239 = shalt.err (!%p3236_p0)
}
 0x4d7   : > { %s3334_s7 = smov 128   ;;  %s3335_s29 = smov 8  }
 0x4d8   : > { %3091 = dma.vmem_to_hbm [thread:$0]  (%p3843_p10), %s3748_s17, 256, %s3746_s12, %s2585_s15, %s3334_s7, %s3334_s7, %s3335_s29  }
 0x4d9 PF: > { %s3844_s30 = sld [smem:[#allocation12_spill]]  ;;  %s3845_s28 = sld [smem:[#allocation19_spill]] }
 0x4da   : > { %p3097_p2 = scmp.ge.s32.totalorder %s3326_s10, 2 }
 0x4df   : > { %s2615_s20 = sand.u32 1, %s3844_s30   ;;  %p3846_p1 = scmp.ne.s32.totalorder %s3845_s28, 0 }
 0x4e0   : > { %s2616_s14 = scalar_lea.sflag [#allocation4], %s2615_s20 }
 0x4e1   : > { %p3094_p5 = pnand %p3097_p2, %p3846_p1 }
 0x4e3   : > { %3285 = dma.done.wait (!%p3094_p5), %s2616_s14, 256  }
 0x4e4   : > { %3287 = vsyncadd (!%p3094_p5), %s2616_s14, 4294967040  ;;  %s23_s10 = sadd.s32 1, %s3326_s10   ;;  %s3847_s19 = sld [smem:[#allocation16_spill]] }
 0x4e5   : > { %p20_p7 = scmp.ge.s32.totalorder %s23_s10, 10   ;;  %s3848_s13 = sld [smem:[#allocation13_spill]] }
 0x4e6   : > { %s3849_s28 = sld [smem:[#allocation17_spill]]  ;;  %s3850_s22 = sld [smem:[#allocation14_spill]] }
 0x4e7   : > { %s3851_s17 = sld [smem:[#allocation15_spill]]  ;;  %s3852_s24 = smov %s3294_s25 }
 0x4e8   : > { %s3854_s26 = smov %s3302_s27  ;;  %s3856_s29 = smov %s3318_s8 }
 0x4e9   : > { %s3857_s30 = smov %s3322_s9  ;;  %22 = sbr.rel (!%p20_p7) target bundleno = 10 (0xa), region = 307 }
 0x4ea   : > { %s3853_s25 = smov %s3847_s19 }
 0x4eb   : > { %s3855_s27 = smov %s3848_s13 }
 0x4ec   : > { %s3858_s8 = smov %s3850_s22 }
 0x4ed   : > { %s3859_s9 = smov %s3851_s17 }
 0x4f0   :  { %2621 = vsyncpa [#allocation3], 1 }
 0x4f1   :  { %2623 = vsyncpa [#allocation3 + $0x1], 1 }
 0x4f2   :  { %2624 = vsyncpa [#allocation4], 1 }
 0x4f3   :  { %2626 = vsyncpa [#allocation4 + $0x1], 1 }

// kernel: _pr2d_forward_impl.2
= control target key start
LH: loop header
LB: loop body
LE: loop exit
PB: predicated region body
PF: predicated region fallthrough
CT: control target
= control target key end

     0   :  { %s8572_s0 = inlined_call_operand.vmem [shape: f32[2,4,16,16], index: 0, kind: input, shape index: {}]   ;;  %s8573_s1 = inlined_call_operand.vmem [shape: f32[2,4,16,16], index: 1, kind: input, shape index: {}]   ;;  %s8574_s2 = inlined_call_operand.vmem [shape: f32[4,4,4,16], index: 2, kind: input, shape index: {}]   ;;  %s8575_s3 = inlined_call_operand.vmem [shape: f32[4,4,4,16], index: 3, kind: input, shape index: {}]   ;;  %s8576_s4 = inlined_call_operand.vmem [shape: f32[4,4,16,4], index: 4, kind: input, shape index: {}]   ;;  %s8577_s5 = inlined_call_operand.vmem [shape: f32[4,4,16,4], index: 5, kind: input, shape index: {}]   ;;  %s8578_s6 = inlined_call_operand.vmem [shape: f32[4,4,4,16], index: 6, kind: input, shape index: {}]   ;;  %s8579_s7 = inlined_call_operand.vmem [shape: f32[4,4,4,16], index: 7, kind: input, shape index: {}]   ;;  %s8580_s8 = inlined_call_operand.vmem [shape: f32[4,4,16,4], index: 8, kind: input, shape index: {}]   ;;  %s8581_s9 = inlined_call_operand.vmem [shape: f32[4,4,16,4], index: 9, kind: input, shape index: {}]   ;;  %s8582_s10 = inlined_call_operand.vmem [shape: f32[4,4,4,4], index: 10, kind: input, shape index: {}]   ;;  %s8583_s11 = inlined_call_operand.vmem [shape: f32[4,4,4,4], index: 11, kind: input, shape index: {}]   ;;  %s8584_s12 = inlined_call_operand.vmem [shape: f32[2,4,16,16], index: 12, kind: output, shape index: {0}]   ;;  %s8585_s13 = inlined_call_operand.vmem [shape: f32[2,4,16,16], index: 13, kind: output, shape index: {1}]   ;;  %s8586_s14 = inlined_call_operand.vmem [shape: f32[2,4,4,4], index: 14, kind: output, shape index: {2}]   ;;  %s8587_s15 = inlined_call_operand.vmem [shape: f32[2,4,4,4], index: 15, kind: output, shape index: {3}]  }
   0x1   :  { %8590 = sst [smem:[#allocation15_spill]] %s8572_s0 }
   0x2   :  { %8591 = sst [smem:[#allocation16_spill]] %s8574_s2 }
   0x3   :  { %8592 = sst [smem:[#allocation17_spill]] %s8586_s14 }
   0x4   :  { %8593 = sst [smem:[#allocation18_spill]] %s8587_s15 }
   0x5   :  { %s7870_s18 = smov 0   ;;  %s7872_s19 = smov 0  }
   0x6   :  { %s7874_s20 = smov 0   ;;  %s7876_s21 = smov 0  }
   0x7   :  { %s7878_s22 = smov 0   ;;  %s7880_s23 = smov 0  }
   0x8   :  { %s7882_s24 = smov 0  }
   0x9 LB: > { %8594 = sst [smem:[#allocation12_spill]] %s7781_s23  ;;  %s35_s25 = sadd.s32 1, %s7777_s22  ;;  %s7785_s24 = sphi %s7882_s24, %s26_s24   ;;  %s7781_s23 = sphi %s7880_s23, %s8604_s23   ;;  %s7777_s22 = sphi %s7878_s22, %s8608_s22   ;;  %s7773_s21 = sphi %s7876_s21, %s8602_s21   ;;  %s7769_s20 = sphi %s7874_s20, %s8607_s20   ;;  %s7765_s19 = sphi %s7872_s19, %s8606_s19   ;;  %s7761_s18 = sphi %s7870_s18, %s8605_s18  }
   0xa   : > { %s38_s26 = sadd.s32 1, %s7781_s23  ;;  %p36_p0 = scmp.ge.s32.totalorder %s35_s25, 4 }
   0xb   : > { %s97_s27 = sadd.s32 1, %s7765_s19  ;;  %p104_p1 = scmp.ne.s32.totalorder %s7765_s19, %s7761_s18 }
   0xc   : > { %p105_p2 = scmp.eq.s32.totalorder %s7785_s24, 0  ;;  %s8610_s25 = smov (%p36_p0, %s35_s25), 0 }
   0xd   : > { %8595 = sst [smem:[#allocation13_spill]] %s8610_s25  ;;  %s8612_s26 = smov (!%p36_p0, %s38_s26), %s7781_s23 }
   0xe   : > { %s94_s28 = ssub.s32 %s7777_s22, %s8610_s25  ;;  %p7916_p3 = por %p105_p2, %p104_p1 }
   0xf   : > { %p40_p4 = scmp.ge.s32.totalorder %s8612_s26, 2  ;;  %p95_p5 = scmp.eq.s32.totalorder %s94_s28, 0 }
  0x10   : > { %p6760_p6 = scmp.ge.s32.totalorder %s7785_s24, 8 }
  0x11   : > { %s8614_s26 = smov (%p40_p4, %s8612_s26), 0 }
  0x12   : > { %8597 = sst [smem:[#allocation14_spill]] %s8614_s26  ;;  %476 = sbr.rel (%p6760_p6) target bundleno = 105 (0x69), region = 16 }
  0x13   : > { %s7923_s30 = scalar_select %p95_p5, %s7765_s19, %s97_s27  }
  0x19   : > { %495 = sbr.rel (!%p7916_p3) target bundleno = 38 (0x26), region = 28  ;;  %s497_s16 = sand.u32 (%p7916_p3), 1, %s7765_s19  }
  0x1a   : > { %s6762_s17 = sshll.u32 (%p7916_p3), %s7777_s22, 2  ;;  %s6761_s25 = sshll.u32 (%p7916_p3), %s497_s16, 4 }
  0x1b   : > { %s8598_s2 = sld [smem:[#allocation16_spill]] (%p7916_p3)  ;;  %s499_s28 = scalar_lea.vmem (%p7916_p3), [#allocation2], %s6761_s25 }
  0x21   : > { %s501_s14 = scalar_lea.vmem %s8598_s2, %s6762_s17 }
  0x22   : > { %v517_v0 = vld [vmem:[%s501_s14] sm:$0xf]  ;;  %v519_v1 = vld [vmem:[%s501_s14 + $0x10] sm:$0xf] }
  0x23   : > { %518 = vst [vmem:[%s499_s28] sm:$0xf] %v517_v0  ;;  %520 = vst [vmem:[%s499_s28 + $0x4] sm:$0xf] %v519_v1  ;;  %v521_v2 = vld [vmem:[%s501_s14 + $0x20] sm:$0xf] }
  0x24   : > { %v523_v3 = vld [vmem:[%s501_s14 + $0x30] sm:$0xf]  ;;  %522 = vst [vmem:[%s499_s28 + $0x8] sm:$0xf] %v521_v2 }
  0x25   : > { %524 = vst [vmem:[%s499_s28 + $0xc] sm:$0xf] %v523_v3 }
  0x26 PF: > { %555 = sbr.rel (!%p7916_p3) target bundleno = 45 (0x2d), region = 69  ;;  %s557_s27 = sand.u32 (%p7916_p3), 1, %s7765_s19  }
  0x27   : > { %s6764_s16 = sshll.u32 (%p7916_p3), %s7777_s22, 2  ;;  %s6763_s26 = sshll.u32 (%p7916_p3), %s557_s27, 4 }
  0x28   : > { %s561_s17 = scalar_lea.vmem (%p7916_p3), %s8575_s3, %s6764_s16  ;;  %s559_s25 = scalar_lea.vmem (%p7916_p3), [#allocation3], %s6763_s26 }
  0x29   : > { %v577_v4 = vld [vmem:[%s561_s17] sm:$0xf] (%p7916_p3)  ;;  %v579_v5 = vld [vmem:[%s561_s17 + $0x10] sm:$0xf] (%p7916_p3) }
  0x2a   : > { %578 = vst [vmem:[%s559_s25] sm:$0xf] (%p7916_p3), %v577_v4  ;;  %580 = vst [vmem:[%s559_s25 + $0x4] sm:$0xf] (%p7916_p3), %v579_v5  ;;  %v581_v6 = vld [vmem:[%s561_s17 + $0x20] sm:$0xf] (%p7916_p3) }
  0x2b   : > { %v583_v7 = vld [vmem:[%s561_s17 + $0x30] sm:$0xf] (%p7916_p3)  ;;  %582 = vst [vmem:[%s559_s25 + $0x8] sm:$0xf] (%p7916_p3), %v581_v6 }
  0x2c   : > { %584 = vst [vmem:[%s559_s25 + $0xc] sm:$0xf] (%p7916_p3), %v583_v7 }
  0x2d PF: > { %615 = sbr.rel (!%p7916_p3) target bundleno = 53 (0x35), region = 110  ;;  %s617_s14 = sand.u32 (%p7916_p3), 1, %s7765_s19  }
  0x2e   : > { %s6978_s28 = sshll.u32 (%p7916_p3), %s7777_s22, 4  ;;  %s6765_s27 = sshll.u32 (%p7916_p3), %s617_s14, 6 }
  0x2f   : > { %s622_s23 = scalar_lea.vmem (%p7916_p3), %s8576_s4, %s6978_s28  ;;  %s619_s26 = scalar_lea.vmem (%p7916_p3), [#allocation4], %s6765_s27 }
  0x30   : > { %v664_v8 = vld [vmem:[%s622_s23] sm:$0xff] (%p7916_p3)  ;;  %v666_v9 = vld [vmem:[%s622_s23 + $0x8] sm:$0xff] (%p7916_p3) }
  0x31   : > { %v668_v10 = vld [vmem:[%s622_s23 + $0x40] sm:$0xff] (%p7916_p3)  ;;  %665 = vst [vmem:[%s619_s26] sm:$0xff] (%p7916_p3), %v664_v8  ;;  %667 = vst [vmem:[%s619_s26 + $0x8] sm:$0xff] (%p7916_p3), %v666_v9  ;;  %v670_v11 = vld [vmem:[%s622_s23 + $0x48] sm:$0xff] (%p7916_p3) }
  0x32   : > { %669 = vst [vmem:[%s619_s26 + $0x10] sm:$0xff] (%p7916_p3), %v668_v10  ;;  %v672_v12 = vld [vmem:[%s622_s23 + $0x80] sm:$0xff] (%p7916_p3)  ;;  %v674_v13 = vld [vmem:[%s622_s23 + $0x88] sm:$0xff] (%p7916_p3)  ;;  %671 = vst [vmem:[%s619_s26 + $0x18] sm:$0xff] (%p7916_p3), %v670_v11 }
  0x33   : > { %673 = vst [vmem:[%s619_s26 + $0x20] sm:$0xff] (%p7916_p3), %v672_v12  ;;  %675 = vst [vmem:[%s619_s26 + $0x28] sm:$0xff] (%p7916_p3), %v674_v13  ;;  %v676_v14 = vld [vmem:[%s622_s23 + $0xc0] sm:$0xff] (%p7916_p3)  ;;  %v678_v15 = vld [vmem:[%s622_s23 + $0xc8] sm:$0xff] (%p7916_p3) }
  0x34   : > { %677 = vst [vmem:[%s619_s26 + $0x30] sm:$0xff] %v676_v14  ;;  %679 = vst [vmem:[%s619_s26 + $0x38] sm:$0xff] %v678_v15 }
  0x35 PF: > { %685 = sbr.rel (!%p7916_p3) target bundleno = 61 (0x3d), region = 148  ;;  %s687_s17 = sand.u32 (%p7916_p3), 1, %s7765_s19  }
  0x36   : > { %s6979_s25 = sshll.u32 (%p7916_p3), %s7777_s22, 4  ;;  %s6768_s14 = sshll.u32 (%p7916_p3), %s687_s17, 6 }
  0x37   : > { %s692_s15 = scalar_lea.vmem (%p7916_p3), %s8577_s5, %s6979_s25  ;;  %s689_s16 = scalar_lea.vmem (%p7916_p3), [#allocation5], %s6768_s14 }
  0x38   : > { %v734_v16 = vld [vmem:[%s692_s15] sm:$0xff] (%p7916_p3)  ;;  %v736_v17 = vld [vmem:[%s692_s15 + $0x8] sm:$0xff] (%p7916_p3) }
  0x39   : > { %v738_v18 = vld [vmem:[%s692_s15 + $0x40] sm:$0xff] (%p7916_p3)  ;;  %735 = vst [vmem:[%s689_s16] sm:$0xff] (%p7916_p3), %v734_v16  ;;  %737 = vst [vmem:[%s689_s16 + $0x8] sm:$0xff] (%p7916_p3), %v736_v17  ;;  %v740_v19 = vld [vmem:[%s692_s15 + $0x48] sm:$0xff] (%p7916_p3) }
  0x3a   : > { %739 = vst [vmem:[%s689_s16 + $0x10] sm:$0xff] (%p7916_p3), %v738_v18  ;;  %v742_v20 = vld [vmem:[%s692_s15 + $0x80] sm:$0xff] (%p7916_p3)  ;;  %v744_v21 = vld [vmem:[%s692_s15 + $0x88] sm:$0xff] (%p7916_p3)  ;;  %741 = vst [vmem:[%s689_s16 + $0x18] sm:$0xff] (%p7916_p3), %v740_v19 }
  0x3b   : > { %743 = vst [vmem:[%s689_s16 + $0x20] sm:$0xff] (%p7916_p3), %v742_v20  ;;  %745 = vst [vmem:[%s689_s16 + $0x28] sm:$0xff] (%p7916_p3), %v744_v21  ;;  %v746_v22 = vld [vmem:[%s692_s15 + $0xc0] sm:$0xff] (%p7916_p3)  ;;  %v748_v23 = vld [vmem:[%s692_s15 + $0xc8] sm:$0xff] (%p7916_p3) }
  0x3c   : > { %747 = vst [vmem:[%s689_s16 + $0x30] sm:$0xff] %v746_v22  ;;  %749 = vst [vmem:[%s689_s16 + $0x38] sm:$0xff] %v748_v23 }
  0x3d PF: > { %755 = sbr.rel (!%p7916_p3) target bundleno = 68 (0x44), region = 186  ;;  %s757_s23 = sand.u32 (%p7916_p3), 1, %s7765_s19  }
  0x3e   : > { %s6772_s26 = sshll.u32 (%p7916_p3), %s7777_s22, 2  ;;  %s6771_s17 = sshll.u32 (%p7916_p3), %s757_s23, 4 }
  0x3f   : > { %s761_s28 = scalar_lea.vmem (%p7916_p3), %s8578_s6, %s6772_s26  ;;  %s759_s27 = scalar_lea.vmem (%p7916_p3), [#allocation6], %s6771_s17 }
  0x40   : > { %v777_v24 = vld [vmem:[%s761_s28] sm:$0xf] (%p7916_p3)  ;;  %v779_v25 = vld [vmem:[%s761_s28 + $0x10] sm:$0xf] (%p7916_p3) }
  0x41   : > { %778 = vst [vmem:[%s759_s27] sm:$0xf] (%p7916_p3), %v777_v24  ;;  %780 = vst [vmem:[%s759_s27 + $0x4] sm:$0xf] (%p7916_p3), %v779_v25  ;;  %v781_v26 = vld [vmem:[%s761_s28 + $0x20] sm:$0xf] (%p7916_p3) }
  0x42   : > { %v783_v27 = vld [vmem:[%s761_s28 + $0x30] sm:$0xf] (%p7916_p3)  ;;  %782 = vst [vmem:[%s759_s27 + $0x8] sm:$0xf] (%p7916_p3), %v781_v26 }
  0x43   : > { %784 = vst [vmem:[%s759_s27 + $0xc] sm:$0xf] (%p7916_p3), %v783_v27 }
  0x44 PF: > { %815 = sbr.rel (!%p7916_p3) target bundleno = 75 (0x4b), region = 227  ;;  %s817_s15 = sand.u32 (%p7916_p3), 1, %s7765_s19  }
  0x45   : > { %s6774_s16 = sshll.u32 (%p7916_p3), %s7777_s22, 2  ;;  %s6773_s23 = sshll.u32 (%p7916_p3), %s817_s15, 4 }
  0x46   : > { %s821_s14 = scalar_lea.vmem (%p7916_p3), %s8579_s7, %s6774_s16  ;;  %s819_s17 = scalar_lea.vmem (%p7916_p3), [#allocation7], %s6773_s23 }
  0x47   : > { %v837_v28 = vld [vmem:[%s821_s14] sm:$0xf] (%p7916_p3)  ;;  %v839_v29 = vld [vmem:[%s821_s14 + $0x10] sm:$0xf] (%p7916_p3) }
  0x48   : > { %838 = vst [vmem:[%s819_s17] sm:$0xf] (%p7916_p3), %v837_v28  ;;  %840 = vst [vmem:[%s819_s17 + $0x4] sm:$0xf] (%p7916_p3), %v839_v29  ;;  %v841_v30 = vld [vmem:[%s821_s14 + $0x20] sm:$0xf] (%p7916_p3) }
  0x49   : > { %v843_v31 = vld [vmem:[%s821_s14 + $0x30] sm:$0xf] (%p7916_p3)  ;;  %842 = vst [vmem:[%s819_s17 + $0x8] sm:$0xf] (%p7916_p3), %v841_v30 }
  0x4a   : > { %844 = vst [vmem:[%s819_s17 + $0xc] sm:$0xf] (%p7916_p3), %v843_v31 }
  0x4b PF: > { %875 = sbr.rel (!%p7916_p3) target bundleno = 83 (0x53), region = 268  ;;  %s877_s28 = sand.u32 (%p7916_p3), 1, %s7765_s19  }
  0x4c   : > { %s6980_s27 = sshll.u32 (%p7916_p3), %s7777_s22, 4  ;;  %s6775_s15 = sshll.u32 (%p7916_p3), %s877_s28, 6 }
  0x4d   : > { %s882_s26 = scalar_lea.vmem (%p7916_p3), %s8580_s8, %s6980_s27  ;;  %s879_s23 = scalar_lea.vmem (%p7916_p3), [#allocation8], %s6775_s15 }
  0x4e   : > { %v924_v32 = vld [vmem:[%s882_s26] sm:$0xff] (%p7916_p3)  ;;  %v926_v33 = vld [vmem:[%s882_s26 + $0x8] sm:$0xff] (%p7916_p3) }
  0x4f   : > { %v928_v34 = vld [vmem:[%s882_s26 + $0x40] sm:$0xff] (%p7916_p3)  ;;  %925 = vst [vmem:[%s879_s23] sm:$0xff] (%p7916_p3), %v924_v32  ;;  %927 = vst [vmem:[%s879_s23 + $0x8] sm:$0xff] (%p7916_p3), %v926_v33  ;;  %v930_v35 = vld [vmem:[%s882_s26 + $0x48] sm:$0xff] (%p7916_p3) }
  0x50   : > { %929 = vst [vmem:[%s879_s23 + $0x10] sm:$0xff] (%p7916_p3), %v928_v34  ;;  %v932_v36 = vld [vmem:[%s882_s26 + $0x80] sm:$0xff] (%p7916_p3)  ;;  %v934_v37 = vld [vmem:[%s882_s26 + $0x88] sm:$0xff] (%p7916_p3)  ;;  %931 = vst [vmem:[%s879_s23 + $0x18] sm:$0xff] (%p7916_p3), %v930_v35 }
  0x51   : > { %933 = vst [vmem:[%s879_s23 + $0x20] sm:$0xff] (%p7916_p3), %v932_v36  ;;  %935 = vst [vmem:[%s879_s23 + $0x28] sm:$0xff] (%p7916_p3), %v934_v37  ;;  %v936_v38 = vld [vmem:[%s882_s26 + $0xc0] sm:$0xff] (%p7916_p3)  ;;  %v938_v39 = vld [vmem:[%s882_s26 + $0xc8] sm:$0xff] (%p7916_p3) }
  0x52   : > { %937 = vst [vmem:[%s879_s23 + $0x30] sm:$0xff] %v936_v38  ;;  %939 = vst [vmem:[%s879_s23 + $0x38] sm:$0xff] %v938_v39 }
  0x53 PF: > { %945 = sbr.rel (!%p7916_p3) target bundleno = 91 (0x5b), region = 306  ;;  %s947_s14 = sand.u32 (%p7916_p3), 1, %s7765_s19  }
  0x54   : > { %s6981_s17 = sshll.u32 (%p7916_p3), %s7777_s22, 4  ;;  %s6778_s28 = sshll.u32 (%p7916_p3), %s947_s14, 6 }
  0x55   : > { %s952_s25 = scalar_lea.vmem (%p7916_p3), %s8581_s9, %s6981_s17  ;;  %s949_s16 = scalar_lea.vmem (%p7916_p3), [#allocation9], %s6778_s28 }
  0x56   : > { %v994_v40 = vld [vmem:[%s952_s25] sm:$0xff] (%p7916_p3)  ;;  %v996_v41 = vld [vmem:[%s952_s25 + $0x8] sm:$0xff] (%p7916_p3) }
  0x57   : > { %v998_v42 = vld [vmem:[%s952_s25 + $0x40] sm:$0xff] (%p7916_p3)  ;;  %995 = vst [vmem:[%s949_s16] sm:$0xff] (%p7916_p3), %v994_v40  ;;  %997 = vst [vmem:[%s949_s16 + $0x8] sm:$0xff] (%p7916_p3), %v996_v41  ;;  %v1000_v43 = vld [vmem:[%s952_s25 + $0x48] sm:$0xff] (%p7916_p3) }
  0x58   : > { %999 = vst [vmem:[%s949_s16 + $0x10] sm:$0xff] (%p7916_p3), %v998_v42  ;;  %v1002_v44 = vld [vmem:[%s952_s25 + $0x80] sm:$0xff] (%p7916_p3)  ;;  %v1004_v45 = vld [vmem:[%s952_s25 + $0x88] sm:$0xff] (%p7916_p3)  ;;  %1001 = vst [vmem:[%s949_s16 + $0x18] sm:$0xff] (%p7916_p3), %v1000_v43 }
  0x59   : > { %1003 = vst [vmem:[%s949_s16 + $0x20] sm:$0xff] (%p7916_p3), %v1002_v44  ;;  %1005 = vst [vmem:[%s949_s16 + $0x28] sm:$0xff] (%p7916_p3), %v1004_v45  ;;  %v1006_v46 = vld [vmem:[%s952_s25 + $0xc0] sm:$0xff] (%p7916_p3)  ;;  %v1008_v47 = vld [vmem:[%s952_s25 + $0xc8] sm:$0xff] (%p7916_p3) }
  0x5a   : > { %1007 = vst [vmem:[%s949_s16 + $0x30] sm:$0xff] %v1006_v46  ;;  %1009 = vst [vmem:[%s949_s16 + $0x38] sm:$0xff] %v1008_v47 }
  0x5b PF: > { %1015 = sbr.rel (!%p7916_p3) target bundleno = 98 (0x62), region = 344  ;;  %s1017_s26 = sand.u32 (%p7916_p3), 1, %s7765_s19  }
  0x5c   : > { %s6782_s23 = sshll.u32 (%p7916_p3), %s7777_s22, 2  ;;  %s6781_s14 = sshll.u32 (%p7916_p3), %s1017_s26, 4 }
  0x5d   : > { %s1021_s27 = scalar_lea.vmem (%p7916_p3), %s8582_s10, %s6782_s23  ;;  %s1019_s15 = scalar_lea.vmem (%p7916_p3), [#allocation10], %s6781_s14 }
  0x5e   : > { %v1037_v48 = vld [vmem:[%s1021_s27] sm:$0xf] (%p7916_p3)  ;;  %v1039_v49 = vld [vmem:[%s1021_s27 + $0x10] sm:$0xf] (%p7916_p3) }
  0x5f   : > { %1038 = vst [vmem:[%s1019_s15] sm:$0xf] (%p7916_p3), %v1037_v48  ;;  %1040 = vst [vmem:[%s1019_s15 + $0x4] sm:$0xf] (%p7916_p3), %v1039_v49  ;;  %v1041_v50 = vld [vmem:[%s1021_s27 + $0x20] sm:$0xf] (%p7916_p3) }
  0x60   : > { %v1043_v51 = vld [vmem:[%s1021_s27 + $0x30] sm:$0xf] (%p7916_p3)  ;;  %1042 = vst [vmem:[%s1019_s15 + $0x8] sm:$0xf] (%p7916_p3), %v1041_v50 }
  0x61   : > { %1044 = vst [vmem:[%s1019_s15 + $0xc] sm:$0xf] (%p7916_p3), %v1043_v51 }
  0x62 PF: > { %1075 = sbr.rel (!%p7916_p3) target bundleno = 105 (0x69), region = 385  ;;  %s1077_s25 = sand.u32 (%p7916_p3), 1, %s7765_s19  }
  0x63   : > { %s6784_s16 = sshll.u32 (%p7916_p3), %s7777_s22, 2  ;;  %s6783_s26 = sshll.u32 (%p7916_p3), %s1077_s25, 4 }
  0x64   : > { %s1081_s28 = scalar_lea.vmem (%p7916_p3), %s8583_s11, %s6784_s16  ;;  %s1079_s14 = scalar_lea.vmem (%p7916_p3), [#allocation11], %s6783_s26 }
  0x65   : > { %v1097_v52 = vld [vmem:[%s1081_s28] sm:$0xf] (%p7916_p3)  ;;  %v1099_v53 = vld [vmem:[%s1081_s28 + $0x10] sm:$0xf] (%p7916_p3) }
  0x66   : > { %1098 = vst [vmem:[%s1079_s14] sm:$0xf] (%p7916_p3), %v1097_v52  ;;  %1100 = vst [vmem:[%s1079_s14 + $0x4] sm:$0xf] (%p7916_p3), %v1099_v53  ;;  %v1101_v54 = vld [vmem:[%s1081_s28 + $0x20] sm:$0xf] (%p7916_p3) }
  0x67   : > { %v1103_v55 = vld [vmem:[%s1081_s28 + $0x30] sm:$0xf] (%p7916_p3)  ;;  %1102 = vst [vmem:[%s1079_s14 + $0x8] sm:$0xf] (%p7916_p3), %v1101_v54 }
  0x68   : > { %1104 = vst [vmem:[%s1079_s14 + $0xc] sm:$0xf] (%p7916_p3), %v1103_v55 }
  0x69 PF: > { %p6785_p7 = scmp.ge.s32.totalorder %s7785_s24, 1  ;;  %p1134_p8 = scmp.lt.s32.totalorder %s7785_s24, 9 }
  0x6b   : > { %p1135_p9 = pnand %p6785_p7, %p1134_p8 }
  0x6c   : > { %s1141_s29 = sand.u32 (!%p1135_p9), 1, %s7761_s18   ;;  %v7787_v56 = vmov (!%p1135_p9), 0.0   ;;  %vm1392_vm0 = vcmask (!%p1135_p9), 1043456   ;;  %vm7788_vm1 = vmmov (!%p1135_p9), 0   ;;  %vm1388_vm2 = vcmask (!%p1135_p9), 31744   ;;  %p1326_p10 = scmp.lt.s32.totalorder (!%p1135_p9), %s7773_s21, 1 }
  0x6d   : > { %1138 = sbr.rel (%p1135_p9) target bundleno = 2169 (0x879), region = 426  ;;  %7160 = vmatprep.subr.mxu1 (!%p1135_p9), %v7787_v56  ;;  %7170 = vmatprep.subr.mxu0 (!%p1135_p9), %v7787_v56  ;;  %s8001_s27 = sshll.u32 (!%p1135_p9), %s1141_s29, 4  ;;  %v7789_v13 = vmov (!%p1135_p9), 0.0|0.0   ;;  %vm2019_vm3 = vcmask (!%p1135_p9), 130048   ;;  %vm6329_vm4 = vcmask (!%p1135_p9), 27648  }
  0x6e   : > { %7162 = vmatprep.mubr.msk.f32.mxu1 (!%p1135_p9), %vm7788_vm1, %v7787_v56  ;;  %7172 = vmatprep.mubr.msk.f32.mxu0 (!%p1135_p9), %vm7788_vm1, %v7787_v56  ;;  %s8008_s18 = scalar_lea.vmem (!%p1135_p9), [#allocation6], %s8001_s27  ;;  %s8014_s15 = scalar_lea.vmem (!%p1135_p9), [#allocation10], %s8001_s27 }
  0x6f   : > { %v1380_v57 = vld [vmem:[%s8008_s18] sm:$0xf] (!%p1135_p9)  ;;  %s8022_s25 = scalar_lea.vmem (!%p1135_p9), [#allocation11], %s8001_s27  ;;  %s8029_s16 = scalar_lea.vmem (!%p1135_p9), [#allocation7], %s8001_s27  ;;  %v6848_v48 = vld [vmem:[%s8008_s18 + $0x4] sm:$0xf] (!%p1135_p9) }
  0x70   : > { %7161 = vmatpush3.msk.msra.mxu1 (!%p1135_p9), %vm1392_vm0, %v1380_v57  ;;  %7171 = vmatpush3.msk.msra.mxu0 (!%p1135_p9), %vm1392_vm0, %v1380_v57  ;;  %v8017_v58 = vld [vmem:[%s8014_s15] sm:$0xf] (!%p1135_p9)  ;;  %s8045_s26 = sshll.u32 (!%p1135_p9), %s1141_s29, 6  ;;  %s8599_s0 = sld [smem:[#allocation15_spill]] (!%p1135_p9)  ;;  %v8171_v51 = vld [vmem:[%s8014_s15 + $0x4] sm:$0xf] (!%p1135_p9) }
  0x71   : > { %7163 = vmatmul.mubr.msk.f32.vlgmr.msra.gmra.mrb[0].mxu1 (!%p1135_p9), %vm1388_vm2, %v8017_v58  ;;  %v8025_v59 = vld [vmem:[%s8022_s25] sm:$0xf] (!%p1135_p9)  ;;  %7165 = vmatprep.subr.mxu1 (!%p1135_p9), %v7787_v56  ;;  %s8048_s17 = scalar_lea.vmem (!%p1135_p9), [#allocation4], %s8045_s26  ;;  %s8052_s23 = scalar_lea.vmem (!%p1135_p9), [#allocation5], %s8045_s26  ;;  %v6849_v52 = vld [vmem:[%s8029_s16 + $0x4] sm:$0xf] (!%p1135_p9) }
  0x72   : > { %v1381_v60 = vld [vmem:[%s8029_s16] sm:$0xf] (!%p1135_p9)  ;;  %7173 = vmatmul.mubr.msk.f32.vlgmr.msra.gmra.mrb[0].mxu0 (!%p1135_p9), %vm1388_vm2, %v8025_v59  ;;  %7167 = vmatprep.mubr.msk.f32.mxu1 (!%p1135_p9), %vm7788_vm1, %v7787_v56  ;;  %v1377_v4 = vld [vmem:[%s8048_s17 + $0x8] sm:$0xff] (!%p1135_p9)  ;;  %s8109_s14 = scalar_lea.vmem (!%p1135_p9), [#allocation3], %s8001_s27  ;;  %s8142_s29 = scalar_lea.vmem (!%p1135_p9), [#allocation9], %s8045_s26 }
  0x73   : > { %7166 = vmatpush3.msk.msra.mxu1 (!%p1135_p9), %vm1392_vm0, %v1381_v60  ;;  %7175 = vmatprep.subr.mxu0 (!%p1135_p9), %v7787_v56  ;;  %v1376_v61 = vld [vmem:[%s8048_s17] sm:$0xff] (!%p1135_p9)  ;;  %v1379_v5 = vld [vmem:[%s8052_s23 + $0x8] sm:$0xff] (!%p1135_p9)  ;;  %v6846_v54 = vld [vmem:[%s8052_s23 + $0x10] sm:$0xff] (!%p1135_p9)  ;;  %p1338_p11 = scmp.lt.s32.totalorder (!%p1135_p9), %s7769_s20, 3 }
  0x74   : > { %7176 = vmatpush3.msk.msra.mxu0 %vm1392_vm0, %v1381_v60  ;;  %7177 = vmatprep.mubr.msk.f32.mxu0 %vm7788_vm1, %v7787_v56  ;;  %v1378_v62 = vld [vmem:[%s8052_s23] sm:$0xff]  ;;  %s8616_s21 = smov (!%p1326_p10, %s7773_s21), 1  ;;  %v1385_v35 = vld [vmem:[%s8142_s29 + $0x8] sm:$0xff]  ;;  %v6844_v55 = vld [vmem:[%s8048_s17 + $0x10] sm:$0xff] }
  0x75   : > { %7168 = vmatmul.mubr.msk.f32.vlgmr.msra.gmra.mrb[2].mxu1 %vm1388_vm2, %v8025_v59  ;;  %s6982_s28 = sshll.u32 %s8616_s21, 6  ;;  %v1375_v16 = vld [vmem:[%s8109_s14] sm:$0xf]  ;;  %v8184_v53 = vld [vmem:[%s8022_s25 + $0x4] sm:$0xf]  ;;  %s8618_s20 = smov (!%p1338_p11, %s7769_s20), 3 }
  0x76   : > { %7182 = vmatprep.mubr.msk.f32.mxu1 %vm1388_vm2, %v1376_v61  ;;  %s8065_s2 = scalar_lea.vmem %s8599_s0, %s6982_s28  ;;  %s8082_s0 = scalar_lea.vmem %s8573_s1, %s6982_s28  ;;  %v1384_v34 = vld [vmem:[%s8142_s29] sm:$0xff] }
  0x77   : > { %v8072_v6 = vld [vmem:[%s8065_s2] sm:$0xff]  ;;  %v8075_v7 = vld [vmem:[%s8065_s2 + $0x8] sm:$0xff]  ;;  %s8101_s28 = scalar_lea.vmem [#allocation2], %s8001_s27  ;;  %s8129_s27 = scalar_lea.vmem [#allocation8], %s8045_s26  ;;  %v7560_v45 = vpack.c.bf16 %v1385_v35, %v1384_v34 }
  0x78   : > { %v7545_v10 = vpack.c.bf16 %v8075_v7, %v8072_v6  ;;  %v1372_v11 = vld [vmem:[%s8082_s0] sm:$0xff]  ;;  %v1373_v12 = vld [vmem:[%s8082_s0 + $0x8] sm:$0xff] }
  0x79   : > { %v1374_v14 = vld [vmem:[%s8101_s28] sm:$0xf]  ;;  %v7548_v15 = vpack.c.bf16 %v1373_v12, %v1372_v11  ;;  %v1383_v18 = vld [vmem:[%s8129_s27 + $0x8] sm:$0xff] }
  0x7a   : > { %7178 = vmatmul.mubr.msk.f32.vlgmr.msra.gmra.mrb[0].mxu0 %vm1388_vm2, %v8017_v58  ;;  %v1382_v17 = vld [vmem:[%s8129_s27] sm:$0xff] }
  0x7b   : > { %7192 = vmatprep.mubr.msk.f32.mxu0 %vm1388_vm2, %v1378_v62  ;;  %v7557_v19 = vpack.c.bf16 %v1383_v18, %v1382_v17 }
 0x144   : > { %v1462_v63 = vpop.f32.mrb[0].mxu1 }
 0x145   : > { %v7164_v0 = vpop.f32.mrb[1].mxu1 }
 0x148   : > { %v1538_v1 = vpop.f32.mrb[2].mxu1 }
 0x149   : > { %v1542_v2 = vsub.f32 %v1462_v63, %v1538_v1  ;;  %v7169_v3 = vpop.f32.mrb[3].mxu1 }
 0x14b   : > { %7180 = vmatprep.subr.msk.mxu1 %vm1392_vm0, %v1542_v2  ;;  %7190 = vmatprep.subr.msk.mxu0 %vm1392_vm0, %v1542_v2 }
 0x14c   : > { %7181 = vmatpush3.msk.msra.mxu1 %vm1392_vm0, %v1542_v2  ;;  %7191 = vmatpush3.msk.msra.mxu0 %vm1392_vm0, %v1542_v2 }
 0x14d   : > { %v1679_v8 = vpop.f32.mrb[0].mxu0  ;;  %7183 = vmatmul.mubr.msk.f32.vlgmr.msra.gmra.mrb[4].mxu1 %vm1388_vm2, %v1377_v4  ;;  %7193 = vmatmul.mubr.msk.f32.vlgmr.msra.gmra.mrb[2].mxu0 %vm1388_vm2, %v1379_v5 }
 0x14e   : > { %v7179_v9 = vpop.f32.mrb[1].mxu0  ;;  %7185 = vmatprep.subr.msk.mxu1 %vm1392_vm0, %v1679_v8  ;;  %7195 = vmatprep.subr.msk.mxu0 %vm1392_vm0, %v1679_v8 }
 0x14f   : > { %7186 = vmatpush3.msk.msra.mxu1 %vm1392_vm0, %v1679_v8  ;;  %7196 = vmatpush3.msk.msra.mxu0 %vm1392_vm0, %v1679_v8 }
 0x150   : > { %7187 = vmatprep.mubr.msk.f32.mxu1 %vm1388_vm2, %v1378_v62  ;;  %7544 = vmatprep.subr.bf16.mxu1 %v7789_v13 }
 0x151   : > { %7188 = vmatmul.mubr.msk.f32.vlgmr.msra.gmra.mrb[6].mxu1 %vm1388_vm2, %v1379_v5  ;;  %7197 = vmatprep.mubr.msk.f32.mxu0 %vm1388_vm2, %v1376_v61 }
 0x152   : > { %7546 = vmatpush3.bf16.msra.mxu1 %v7545_v10  ;;  %7204 = vmatprep.mubr.msk.f32.mxu1 %vm7788_vm1, %v7787_v56 }
 0x153   : > { %7547 = vmatprep.subr.bf16.mxu1 %v7789_v13  ;;  %7550 = vmatprep.subr.bf16.mxu0 %v7789_v13 }
 0x155   : > { %7198 = vmatmul.mubr.msk.f32.vlgmr.msra.gmra.mrb[2].mxu0 %vm1388_vm2, %v1377_v4  ;;  %7205 = vmatmul.mubr.msk.f32.vlgmr.msra.gmra.mrb[8].mxu1 %vm2019_vm3, %v1374_v14 }
 0x156   : > { %7549 = vmatpush3.bf16.msra.mxu1 %v7548_v15  ;;  %7552 = vmatpush3.bf16.msra.mxu0 %v7545_v10 }
 0x157   : > { %7211 = vmatprep.mubr.msk.f32.mxu1 %vm7788_vm1, %v7787_v56  ;;  %7218 = vmatprep.mubr.msk.f32.mxu0 %vm7788_vm1, %v7787_v56 }
 0x158   : > { %7553 = vmatprep.subr.bf16.mxu0 %v7789_v13  ;;  %7556 = vmatprep.subr.bf16.mxu1 %v7789_v13 }
 0x159   : > { %7212 = vmatmul.mubr.msk.f32.vlgmr.msra.gmra.mrb[10].mxu1 %vm2019_vm3, %v1375_v16  ;;  %7219 = vmatmul.mubr.msk.f32.vlgmr.msra.gmra.mrb[4].mxu0 %vm2019_vm3, %v1375_v16 }
 0x15a   : > { %7555 = vmatpush3.bf16.msra.mxu0 %v7548_v15  ;;  %7225 = vmatprep.mubr.msk.f32.mxu0 %vm7788_vm1, %v7787_v56 }
 0x15b   : > { %7232 = vmatprep.mubr.msk.f32.mxu1 %vm7788_vm1, %v7787_v56  ;;  %7562 = vmatprep.subr.bf16.mxu0 %v7789_v13 }
 0x15c   : > { %7558 = vmatpush3.bf16.msra.mxu1 %v7557_v19 }
 0x15d   : > { %7559 = vmatprep.subr.bf16.mxu1 %v7789_v13 }
 0x161   : > { %7226 = vmatmul.mubr.msk.f32.vlgmr.msra.gmra.mrb[4].mxu0 %vm2019_vm3, %v1374_v14 }
 0x162   : > { %7246 = vmatprep.mubr.msk.f32.mxu0 %vm7788_vm1, %v7787_v56  ;;  %7564 = vmatpush3.bf16.msra.mxu0 %v7557_v19  ;;  %v6840_v19 = vld [vmem:[%s8082_s0 + $0x10] sm:$0xff] }
 0x163   : > { %7565 = vmatprep.subr.bf16.mxu0 %v7789_v13 }
 0x220   : > { %v7184_v20 = vpop.f32.mrb[4].mxu1 }
 0x221   : > { %v1758_v21 = vpop.f32.mrb[5].mxu1 }
 0x224   : > { %v7189_v22 = vpop.f32.mrb[6].mxu1 }
 0x225   : > { %v1852_v23 = vsub.f32 %v7184_v20, %v7189_v22  ;;  %v1842_v24 = vpop.f32.mrb[7].mxu1  ;;  %v6841_v20 = vld [vmem:[%s8082_s0 + $0x18] sm:$0xff]  ;;  %v6843_v22 = vld [vmem:[%s8109_s14 + $0x4] sm:$0xf] }
 0x226   : > { %v1851_v25 = vsub.f32 %v1758_v21, %v1842_v24  ;;  %v6842_v21 = vld [vmem:[%s8101_s28 + $0x4] sm:$0xf] }
 0x227   : > { %v8136_v28 = vmul.f32 %v1852_v23, %v8075_v7  ;;  %v2014_v29 = vmul.f32 %v1852_v23, %v1373_v12  ;;  %v7572_v23 = vpack.c.bf16 %v6841_v20, %v6840_v19  ;;  %v6850_v24 = vld [vmem:[%s8129_s27 + $0x10] sm:$0xff] }
 0x228   : > { %v7199_v26 = vpop.f32.mrb[2].mxu0  ;;  %v2089_v27 = vpop.f32.mrb[8].mxu1  ;;  %v8147_v36 = vmul.f32 %v1851_v25, %v8072_v6  ;;  %v2013_v37 = vmul.f32 %v1851_v25, %v1372_v11  ;;  %v6851_v25 = vld [vmem:[%s8129_s27 + $0x18] sm:$0xff] }
 0x229   : > { %v8138_v30 = vmul.f32 %v7199_v26, %v1373_v12  ;;  %v2012_v31 = vmul.f32 %v7199_v26, %v8075_v7  ;;  %v1994_v32 = vpop.f32.mrb[3].mxu0  ;;  %v7206_v33 = vpop.f32.mrb[9].mxu1  ;;  %v6845_v12 = vld [vmem:[%s8048_s17 + $0x18] sm:$0xff]  ;;  %v7581_v26 = vpack.c.bf16 %v6851_v25, %v6850_v24 }
 0x22a   : > { %v8149_v38 = vmul.f32 %v1994_v32, %v1372_v11  ;;  %v2011_v39 = vmul.f32 %v1994_v32, %v8072_v6  ;;  %v6847_v11 = vld [vmem:[%s8052_s23 + $0x18] sm:$0xff] }
 0x22b   : > { %v2008_v40 = vsub.f32 %v8136_v28, %v8138_v30  ;;  %v8154_v41 = vadd.f32 %v2014_v29, %v2012_v31 }
 0x22c   : > { %v2007_v42 = vsub.f32 %v8147_v36, %v8149_v38  ;;  %v8158_v43 = vadd.f32 %v2013_v37, %v2011_v39  ;;  %v2162_v44 = vpop.f32.mrb[10].mxu1  ;;  %v6894_v36 = vld [vmem:[%s8008_s18 + $0x8] sm:$0xf] }
 0x22d   : > { %v2166_v46 = vsub.f32 %v2089_v27, %v2162_v44  ;;  %v7213_v47 = vpop.f32.mrb[11].mxu1  ;;  %v8296_v38 = vld [vmem:[%s8014_s15 + $0x8] sm:$0xf] }
 0x22f   : > { %7233 = vmatmul.mubr.msk.f32.vlgmr.msra.gmra.mrb[12].mxu1 %vm2019_vm3, %v2166_v46 }
 0x230   : > { %7561 = vmatpush3.bf16.msra.mxu1 %v7560_v45  ;;  %7239 = vmatprep.mubr.msk.f32.mxu1 %vm7788_vm1, %v7787_v56 }
 0x231   : > { %7256 = vmatprep.subr.mxu1 %v7787_v56 }
 0x234   : > { %v2303_v49 = vpop.f32.mrb[4].mxu0 }
 0x235   : > { %v7227_v50 = vpop.f32.mrb[5].mxu0  ;;  %7240 = vmatmul.mubr.msk.f32.vlgmr.msra.gmra.mrb[14].mxu1 %vm2019_vm3, %v2303_v49  ;;  %7247 = vmatmul.mubr.msk.f32.vlgmr.msra.gmra.mrb[6].mxu0 %vm2019_vm3, %v2303_v49 }
 0x236   : > { %7257 = vmatpush3.msk.msra.mxu1 %vm1392_vm0, %v6848_v48  ;;  %7258 = vmatprep.mubr.msk.f32.mxu1 %vm7788_vm1, %v7787_v56 }
 0x237   : > { %7567 = vmatpush3.bf16.msra.mxu0 %v7560_v45  ;;  %7261 = vmatprep.subr.mxu1 %v7787_v56 }
 0x238   : > { %7253 = vmatprep.mubr.msk.f32.mxu0 %vm7788_vm1, %v7787_v56  ;;  %7266 = vmatprep.subr.mxu0 %v7787_v56 }
 0x239   : > { %7259 = vmatmul.mubr.msk.f32.vlgmr.msra.gmra.mrb[16].mxu1 %vm1388_vm2, %v8171_v51 }
 0x23a   : > { %7262 = vmatpush3.msk.msra.mxu1 %vm1392_vm0, %v6849_v52  ;;  %7263 = vmatprep.mubr.msk.f32.mxu1 %vm7788_vm1, %v7787_v56 }
 0x23d   : > { %7254 = vmatmul.mubr.msk.f32.vlgmr.msra.gmra.mrb[6].mxu0 %vm2019_vm3, %v2166_v46  ;;  %7264 = vmatmul.mubr.msk.f32.vlgmr.msra.gmra.mrb[18].mxu1 %vm1388_vm2, %v8184_v53 }
 0x23e   : > { %7267 = vmatpush3.msk.msra.mxu0 %vm1392_vm0, %v6848_v48  ;;  %7268 = vmatprep.mubr.msk.f32.mxu0 %vm7788_vm1, %v7787_v56 }
 0x23f   : > { %7271 = vmatprep.subr.mxu0 %v7787_v56  ;;  %7278 = vmatprep.mubr.msk.f32.mxu1 %vm1388_vm2, %v6844_v55 }
 0x241   : > { %7269 = vmatmul.mubr.msk.f32.vlgmr.msra.gmra.mrb[8].mxu0 %vm1388_vm2, %v8184_v53 }
 0x242   : > { %7272 = vmatpush3.msk.msra.mxu0 %vm1392_vm0, %v6849_v52  ;;  %7273 = vmatprep.mubr.msk.f32.mxu0 %vm7788_vm1, %v7787_v56 }
 0x249   : > { %7274 = vmatmul.mubr.msk.f32.vlgmr.msra.gmra.mrb[8].mxu0 %vm1388_vm2, %v8171_v51 }
 0x24a   : > { %7288 = vmatprep.mubr.msk.f32.mxu0 %vm1388_vm2, %v6846_v54 }
 0x302   : > { %v2376_v57 = vpop.f32.mrb[12].mxu1 }
 0x303   : > { %v7234_v60 = vpop.f32.mrb[13].mxu1 }
 0x308   : > { %v2449_v61 = vpop.f32.mrb[14].mxu1 }
 0x309   : > { %v2453_v62 = vsub.f32 %v2376_v57, %v2449_v61  ;;  %v7241_v63 = vpop.f32.mrb[15].mxu1 }
 0x30a   : > { %v6853_v63 = vld [vmem:[%s8142_s29 + $0x18] sm:$0xff] }
 0x30b   : > { %v8205_v2 = vmul.f32 %v2453_v62, %v8017_v58  ;;  %v2599_v5 = vmul.f32 %v2453_v62, %v8025_v59  ;;  %v6852_v62 = vld [vmem:[%s8142_s29 + $0x10] sm:$0xff] }
 0x30c   : > { %v2704_v0 = vpop.f32.mrb[16].mxu1 }
 0x30d   : > { %v7260_v1 = vpop.f32.mrb[17].mxu1 }
 0x310   : > { %v2590_v3 = vpop.f32.mrb[6].mxu0  ;;  %v2780_v4 = vpop.f32.mrb[18].mxu1 }
 0x311   : > { %v8209_v6 = vmul.f32 %v2590_v3, %v8025_v59  ;;  %v2598_v7 = vmul.f32 %v2590_v3, %v8017_v58  ;;  %v2784_v8 = vsub.f32 %v2704_v0, %v2780_v4  ;;  %v7255_v9 = vpop.f32.mrb[7].mxu0  ;;  %v7265_v10 = vpop.f32.mrb[19].mxu1  ;;  %v6838_v58 = vld [vmem:[%s8065_s2 + $0x10] sm:$0xff]  ;;  %v6839_v59 = vld [vmem:[%s8065_s2 + $0x18] sm:$0xff] }
 0x312   : > { %v7569_v18 = vpack.c.bf16 %v6839_v59, %v6838_v58 }
 0x313   : > { %v2596_v14 = vsub.f32 %v8205_v2, %v8209_v6  ;;  %v8216_v15 = vadd.f32 %v2599_v5, %v2598_v7  ;;  %7276 = vmatprep.subr.msk.mxu1 %vm1392_vm0, %v2784_v8  ;;  %7286 = vmatprep.subr.msk.mxu0 %vm1392_vm0, %v2784_v8  ;;  %v7584_v7 = vpack.c.bf16 %v6853_v63, %v6852_v62 }
 0x314   : > { %7277 = vmatpush3.msk.msra.mxu1 %vm1392_vm0, %v2784_v8  ;;  %7287 = vmatpush3.msk.msra.mxu0 %vm1392_vm0, %v2784_v8 }
 0x315   : > { %7289 = vmatmul.mubr.msk.f32.vlgmr.msra.gmra.mrb[10].mxu0 %vm1388_vm2, %v6847_v11  ;;  %7279 = vmatmul.mubr.msk.f32.vlgmr.msra.gmra.mrb[20].mxu1 %vm1388_vm2, %v6845_v12 }
 0x316   : > { %7283 = vmatprep.mubr.msk.f32.mxu1 %vm1388_vm2, %v6846_v54  ;;  %7293 = vmatprep.mubr.msk.f32.mxu0 %vm1388_vm2, %v6844_v55 }
 0x31c   : > { %v2921_v16 = vpop.f32.mrb[8].mxu0 }
 0x31d   : > { %v7275_v17 = vpop.f32.mrb[9].mxu0  ;;  %7281 = vmatprep.subr.msk.mxu1 %vm1392_vm0, %v2921_v16  ;;  %7291 = vmatprep.subr.msk.mxu0 %vm1392_vm0, %v2921_v16 }
 0x31e   : > { %7282 = vmatpush3.msk.msra.mxu1 %vm1392_vm0, %v2921_v16  ;;  %7292 = vmatpush3.msk.msra.mxu0 %vm1392_vm0, %v2921_v16 }
 0x31f   : > { %7284 = vmatmul.mubr.msk.f32.vlgmr.msra.gmra.mrb[22].mxu1 %vm1388_vm2, %v6847_v11  ;;  %7294 = vmatmul.mubr.msk.f32.vlgmr.msra.gmra.mrb[10].mxu0 %vm1388_vm2, %v6845_v12 }
 0x320   : > { %7568 = vmatprep.subr.bf16.mxu1 %v7789_v13  ;;  %7574 = vmatprep.subr.bf16.mxu0 %v7789_v13 }
 0x321   : > { %7570 = vmatpush3.bf16.msra.mxu1 %v7569_v18  ;;  %7576 = vmatpush3.bf16.msra.mxu0 %v7569_v18 }
 0x322   : > { %7300 = vmatprep.mubr.msk.f32.mxu1 %vm7788_vm1, %v7787_v56  ;;  %7314 = vmatprep.mubr.msk.f32.mxu0 %vm7788_vm1, %v7787_v56 }
 0x323   : > { %7571 = vmatprep.subr.bf16.mxu1 %v7789_v13  ;;  %7577 = vmatprep.subr.bf16.mxu0 %v7789_v13 }
 0x324   : > { %7301 = vmatmul.mubr.msk.f32.vlgmr.msra.gmra.mrb[24].mxu1 %vm2019_vm3, %v6842_v21  ;;  %7315 = vmatmul.mubr.msk.f32.vlgmr.msra.gmra.mrb[12].mxu0 %vm2019_vm3, %v6843_v22 }
 0x325   : > { %7573 = vmatpush3.bf16.msra.mxu1 %v7572_v23  ;;  %7307 = vmatprep.mubr.msk.f32.mxu1 %vm7788_vm1, %v7787_v56 }
 0x326   : > { %7579 = vmatpush3.bf16.msra.mxu0 %v7572_v23  ;;  %7321 = vmatprep.mubr.msk.f32.mxu0 %vm7788_vm1, %v7787_v56 }
 0x327   : > { %7580 = vmatprep.subr.bf16.mxu1 %v7789_v13  ;;  %7586 = vmatprep.subr.bf16.mxu0 %v7789_v13 }
 0x328   : > { %7308 = vmatmul.mubr.msk.f32.vlgmr.msra.gmra.mrb[26].mxu1 %vm2019_vm3, %v6843_v22 }
 0x329   : > { %7328 = vmatprep.mubr.msk.f32.mxu1 %vm7788_vm1, %v7787_v56  ;;  %7582 = vmatpush3.bf16.msra.mxu1 %v7581_v26 }
 0x32a   : > { %7583 = vmatprep.subr.bf16.mxu1 %v7789_v13 }
 0x32c   : > { %7322 = vmatmul.mubr.msk.f32.vlgmr.msra.gmra.mrb[12].mxu0 %vm2019_vm3, %v6842_v21 }
 0x32d   : > { %7342 = vmatprep.mubr.msk.f32.mxu0 %vm7788_vm1, %v7787_v56  ;;  %7588 = vmatpush3.bf16.msra.mxu0 %v7581_v26 }
 0x32e   : > { %7589 = vmatprep.subr.bf16.mxu0 %v7789_v13 }
 0x3e8   : > { %v7280_v27 = vpop.f32.mrb[20].mxu1 }
 0x3e9   : > { %v3000_v29 = vpop.f32.mrb[21].mxu1 }
 0x3f2   : > { %v7285_v31 = vpop.f32.mrb[22].mxu1  ;;  %v7295_v32 = vpop.f32.mrb[10].mxu0 }
 0x3f3   : > { %v3094_v33 = vsub.f32 %v7280_v27, %v7285_v31  ;;  %v3084_v34 = vpop.f32.mrb[23].mxu1  ;;  %v3236_v35 = vpop.f32.mrb[11].mxu0  ;;  %v3248_v45 = vmul.f32 %v7295_v32, %v6841_v20  ;;  %v3254_v46 = vmul.f32 %v7295_v32, %v6839_v59  ;;  %v6893_v31 = vld [vmem:[%s8052_s23 + $0x28] sm:$0xff] }
 0x3f4   : > { %v3093_v37 = vsub.f32 %v3000_v29, %v3084_v34  ;;  %v3247_v49 = vmul.f32 %v6840_v19, %v3236_v35  ;;  %v3253_v50 = vmul.f32 %v6838_v58, %v3236_v35  ;;  %v6891_v32 = vld [vmem:[%s8048_s17 + $0x28] sm:$0xff] }
 0x3f5   : > { %v3246_v39 = vmul.f32 %v6839_v59, %v3094_v33  ;;  %v3256_v44 = vmul.f32 %v6841_v20, %v3094_v33  ;;  %v6887_v35 = vld [vmem:[%s8082_s0 + $0x28] sm:$0xff] }
 0x3f6   : > { %v3245_v47 = vmul.f32 %v6838_v58, %v3093_v37  ;;  %v3255_v48 = vmul.f32 %v6840_v19, %v3093_v37  ;;  %v6888_v37 = vld [vmem:[%s8101_s28 + $0x8] sm:$0xf] }
 0x3f7   : > { %v3250_v52 = vsub.f32 %v3246_v39, %v3248_v45  ;;  %v3258_v54 = vadd.f32 %v3256_v44, %v3254_v46  ;;  %v3330_v55 = vpop.f32.mrb[24].mxu1  ;;  %v6889_v39 = vld [vmem:[%s8109_s14 + $0x8] sm:$0xf]  ;;  %v6896_v45 = vld [vmem:[%s8129_s27 + $0x20] sm:$0xff] }
 0x3f8   : > { %v3249_v57 = vsub.f32 %v3245_v47, %v3247_v49  ;;  %v3257_v60 = vadd.f32 %v3255_v48, %v3253_v50  ;;  %v7302_v61 = vpop.f32.mrb[25].mxu1  ;;  %v6897_v46 = vld [vmem:[%s8129_s27 + $0x28] sm:$0xff] }
 0x3f9   : > { %v8269_v0 = vadd.f32 %v3250_v52, %v2008_v40  ;;  %v8272_v1 = vadd.f32 %v3258_v54, %v8154_v41  ;;  %v6895_v40 = vld [vmem:[%s8029_s16 + $0x8] sm:$0xf]  ;;  %v7605_v47 = vpack.c.bf16 %v6897_v46, %v6896_v45 }
 0x3fa   : > { %v8277_v3 = vadd.f32 %v3249_v57, %v2007_v42  ;;  %v8280_v4 = vadd.f32 %v3257_v60, %v8158_v43  ;;  %v8306_v41 = vld [vmem:[%s8022_s25 + $0x8] sm:$0xf]  ;;  %v6892_v42 = vld [vmem:[%s8052_s23 + $0x20] sm:$0xff] }
 0x3fb   : > { %v3403_v5 = vpop.f32.mrb[26].mxu1  ;;  %v6890_v43 = vld [vmem:[%s8048_s17 + $0x20] sm:$0xff] }
 0x3fc   : > { %v3407_v8 = vsub.f32 %v3330_v55, %v3403_v5  ;;  %v7309_v9 = vpop.f32.mrb[27].mxu1 }
 0x3fe   : > { %7329 = vmatmul.mubr.msk.f32.vlgmr.msra.gmra.mrb[28].mxu1 %vm2019_vm3, %v3407_v8 }
 0x3ff   : > { %v3544_v28 = vpop.f32.mrb[12].mxu0  ;;  %7585 = vmatpush3.bf16.msra.mxu1 %v7584_v7  ;;  %7335 = vmatprep.mubr.msk.f32.mxu1 %vm7788_vm1, %v7787_v56 }
 0x400   : > { %v7323_v30 = vpop.f32.mrb[13].mxu0  ;;  %7343 = vmatmul.mubr.msk.f32.vlgmr.msra.gmra.mrb[14].mxu0 %vm2019_vm3, %v3544_v28  ;;  %7352 = vmatprep.subr.mxu1 %v7787_v56 }
 0x401   : > { %7591 = vmatpush3.bf16.msra.mxu0 %v7584_v7  ;;  %7349 = vmatprep.mubr.msk.f32.mxu0 %vm7788_vm1, %v7787_v56 }
 0x402   : > { %7336 = vmatmul.mubr.msk.f32.vlgmr.msra.gmra.mrb[30].mxu1 %vm2019_vm3, %v3544_v28  ;;  %7362 = vmatprep.subr.mxu0 %v7787_v56 }
 0x403   : > { %7353 = vmatpush3.msk.msra.mxu1 %vm1392_vm0, %v6894_v36  ;;  %7354 = vmatprep.mubr.msk.f32.mxu1 %vm7788_vm1, %v7787_v56 }
 0x404   : > { %7357 = vmatprep.subr.mxu1 %v7787_v56 }
 0x406   : > { %7355 = vmatmul.mubr.msk.f32.vlgmr.msra.gmra.mrb[32].mxu1 %vm1388_vm2, %v8296_v38 }
 0x407   : > { %7358 = vmatpush3.msk.msra.mxu1 %vm1392_vm0, %v6895_v40  ;;  %7359 = vmatprep.mubr.msk.f32.mxu1 %vm7788_vm1, %v7787_v56 }
 0x408   : > { %7350 = vmatmul.mubr.msk.f32.vlgmr.msra.gmra.mrb[14].mxu0 %vm2019_vm3, %v3407_v8 }
 0x409   : > { %7363 = vmatpush3.msk.msra.mxu0 %vm1392_vm0, %v6894_v36  ;;  %7364 = vmatprep.mubr.msk.f32.mxu0 %vm7788_vm1, %v7787_v56 }
 0x40a   : > { %7360 = vmatmul.mubr.msk.f32.vlgmr.msra.gmra.mrb[34].mxu1 %vm1388_vm2, %v8306_v41  ;;  %7367 = vmatprep.subr.mxu0 %v7787_v56 }
 0x40b   : > { %7374 = vmatprep.mubr.msk.f32.mxu1 %vm1388_vm2, %v6890_v43 }
 0x40c   : > { %7365 = vmatmul.mubr.msk.f32.vlgmr.msra.gmra.mrb[16].mxu0 %vm1388_vm2, %v8306_v41 }
 0x40d   : > { %7368 = vmatpush3.msk.msra.mxu0 %vm1392_vm0, %v6895_v40  ;;  %7369 = vmatprep.mubr.msk.f32.mxu0 %vm7788_vm1, %v7787_v56 }
 0x414   : > { %7370 = vmatmul.mubr.msk.f32.vlgmr.msra.gmra.mrb[16].mxu0 %vm1388_vm2, %v8296_v38 }
 0x415   : > { %7384 = vmatprep.mubr.msk.f32.mxu0 %vm1388_vm2, %v6892_v42 }
 0x4d1   : > { %v3617_v10 = vpop.f32.mrb[28].mxu1 }
 0x4d2   : > { %v7330_v11 = vpop.f32.mrb[29].mxu1 }
 0x4d3   : > { %v6898_v11 = vld [vmem:[%s8142_s29 + $0x20] sm:$0xff] }
 0x4d5   : > { %v3690_v12 = vpop.f32.mrb[30].mxu1 }
 0x4d6   : > { %v3694_v58 = vsub.f32 %v3617_v10, %v3690_v12  ;;  %v7337_v59 = vpop.f32.mrb[31].mxu1  ;;  %v6899_v12 = vld [vmem:[%s8142_s29 + $0x28] sm:$0xff] }
 0x4d8   : > { %v3835_v19 = vmul.f32 %v8171_v51, %v3694_v58  ;;  %v3840_v20 = vmul.f32 %v8184_v53, %v3694_v58 }
 0x4d9   : > { %v3945_v16 = vpop.f32.mrb[32].mxu1 }
 0x4da   : > { %v7356_v17 = vpop.f32.mrb[33].mxu1 }
 0x4db   : > { %v3831_v18 = vpop.f32.mrb[14].mxu0 }
 0x4dc   : > { %v3836_v21 = vmul.f32 %v8184_v53, %v3831_v18  ;;  %v3839_v22 = vmul.f32 %v8171_v51, %v3831_v18  ;;  %v7351_v23 = vpop.f32.mrb[15].mxu0  ;;  %v6884_v51 = vld [vmem:[%s8065_s2 + $0x20] sm:$0xff]  ;;  %v6885_v53 = vld [vmem:[%s8065_s2 + $0x28] sm:$0xff] }
 0x4dd   : > { %v4021_v24 = vpop.f32.mrb[34].mxu1  ;;  %v8424_v23 = vld [vmem:[%s8022_s25 + $0xc] sm:$0xf] }
 0x4de   : > { %v3837_v25 = vsub.f32 %v3835_v19, %v3836_v21  ;;  %v3841_v26 = vadd.f32 %v3840_v20, %v3839_v22  ;;  %v4025_v27 = vsub.f32 %v3945_v16, %v4021_v24  ;;  %v7361_v29 = vpop.f32.mrb[35].mxu1  ;;  %v7608_v19 = vpack.c.bf16 %v6899_v12, %v6898_v11  ;;  %v6938_v24 = vld [vmem:[%s8052_s23 + $0x30] sm:$0xff] }
 0x4e0   : > { %v8335_v33 = vadd.f32 %v3837_v25, %v2596_v14  ;;  %v8338_v34 = vadd.f32 %v3841_v26, %v8216_v15  ;;  %7372 = vmatprep.subr.msk.mxu1 %vm1392_vm0, %v4025_v27  ;;  %7382 = vmatprep.subr.msk.mxu0 %vm1392_vm0, %v4025_v27  ;;  %v7593_v14 = vpack.c.bf16 %v6885_v53, %v6884_v51  ;;  %v6886_v15 = vld [vmem:[%s8082_s0 + $0x20] sm:$0xff]  ;;  %v6936_v25 = vld [vmem:[%s8048_s17 + $0x30] sm:$0xff] }
 0x4e1   : > { %7373 = vmatpush3.msk.msra.mxu1 %vm1392_vm0, %v4025_v27  ;;  %7383 = vmatpush3.msk.msra.mxu0 %vm1392_vm0, %v4025_v27  ;;  %v7596_v44 = vpack.c.bf16 %v6887_v35, %v6886_v15 }
 0x4e2   : > { %7385 = vmatmul.mubr.msk.f32.vlgmr.msra.gmra.mrb[18].mxu0 %vm1388_vm2, %v6893_v31  ;;  %7375 = vmatmul.mubr.msk.f32.vlgmr.msra.gmra.mrb[36].mxu1 %vm1388_vm2, %v6891_v32 }
 0x4e3   : > { %7379 = vmatprep.mubr.msk.f32.mxu1 %vm1388_vm2, %v6892_v42  ;;  %7389 = vmatprep.mubr.msk.f32.mxu0 %vm1388_vm2, %v6890_v43 }
 0x4e7   : > { %v4162_v2 = vpop.f32.mrb[16].mxu0 }
 0x4e8   : > { %v7371_v6 = vpop.f32.mrb[17].mxu0  ;;  %7377 = vmatprep.subr.msk.mxu1 %vm1392_vm0, %v4162_v2  ;;  %7387 = vmatprep.subr.msk.mxu0 %vm1392_vm0, %v4162_v2 }
 0x4e9   : > { %7378 = vmatpush3.msk.msra.mxu1 %vm1392_vm0, %v4162_v2  ;;  %7388 = vmatpush3.msk.msra.mxu0 %vm1392_vm0, %v4162_v2 }
 0x4ea   : > { %7380 = vmatmul.mubr.msk.f32.vlgmr.msra.gmra.mrb[38].mxu1 %vm1388_vm2, %v6893_v31  ;;  %7390 = vmatmul.mubr.msk.f32.vlgmr.msra.gmra.mrb[18].mxu0 %vm1388_vm2, %v6891_v32 }
 0x4eb   : > { %7592 = vmatprep.subr.bf16.mxu1 %v7789_v13  ;;  %7598 = vmatprep.subr.bf16.mxu0 %v7789_v13 }
 0x4ec   : > { %7594 = vmatpush3.bf16.msra.mxu1 %v7593_v14  ;;  %7600 = vmatpush3.bf16.msra.mxu0 %v7593_v14 }
 0x4ed   : > { %7396 = vmatprep.mubr.msk.f32.mxu1 %vm7788_vm1, %v7787_v56  ;;  %7410 = vmatprep.mubr.msk.f32.mxu0 %vm7788_vm1, %v7787_v56 }
 0x4ee   : > { %7595 = vmatprep.subr.bf16.mxu1 %v7789_v13  ;;  %7601 = vmatprep.subr.bf16.mxu0 %v7789_v13 }
 0x4ef   : > { %7397 = vmatmul.mubr.msk.f32.vlgmr.msra.gmra.mrb[40].mxu1 %vm2019_vm3, %v6888_v37  ;;  %7411 = vmatmul.mubr.msk.f32.vlgmr.msra.gmra.mrb[20].mxu0 %vm2019_vm3, %v6889_v39 }
 0x4f0   : > { %7597 = vmatpush3.bf16.msra.mxu1 %v7596_v44  ;;  %7403 = vmatprep.mubr.msk.f32.mxu1 %vm7788_vm1, %v7787_v56 }
 0x4f1   : > { %7603 = vmatpush3.bf16.msra.mxu0 %v7596_v44  ;;  %7417 = vmatprep.mubr.msk.f32.mxu0 %vm7788_vm1, %v7787_v56 }
 0x4f2   : > { %7604 = vmatprep.subr.bf16.mxu1 %v7789_v13  ;;  %7610 = vmatprep.subr.bf16.mxu0 %v7789_v13 }
 0x4f3   : > { %7404 = vmatmul.mubr.msk.f32.vlgmr.msra.gmra.mrb[42].mxu1 %vm2019_vm3, %v6889_v39 }
 0x4f4   : > { %7424 = vmatprep.mubr.msk.f32.mxu1 %vm7788_vm1, %v7787_v56  ;;  %7606 = vmatpush3.bf16.msra.mxu1 %v7605_v47 }
 0x4f5   : > { %7607 = vmatprep.subr.bf16.mxu1 %v7789_v13 }
 0x4f7   : > { %7418 = vmatmul.mubr.msk.f32.vlgmr.msra.gmra.mrb[20].mxu0 %vm2019_vm3, %v6888_v37 }
 0x4f8   : > { %7438 = vmatprep.mubr.msk.f32.mxu0 %vm7788_vm1, %v7787_v56  ;;  %7612 = vmatpush3.bf16.msra.mxu0 %v7605_v47 }
 0x4f9   : > { %7613 = vmatprep.subr.bf16.mxu0 %v7789_v13 }
 0x5b5   : > { %v7376_v48 = vpop.f32.mrb[36].mxu1 }
 0x5b6   : > { %v4241_v49 = vpop.f32.mrb[37].mxu1 }
 0x5bd   : > { %v7381_v50 = vpop.f32.mrb[38].mxu1  ;;  %v7391_v52 = vpop.f32.mrb[18].mxu0 }
 0x5be   : > { %v4335_v54 = vsub.f32 %v7376_v48, %v7381_v50  ;;  %v4325_v55 = vpop.f32.mrb[39].mxu1  ;;  %v4477_v57 = vpop.f32.mrb[19].mxu0  ;;  %v4489_v63 = vmul.f32 %v7391_v52, %v6887_v35  ;;  %v4495_v5 = vmul.f32 %v7391_v52, %v6885_v53  ;;  %v6939_v48 = vld [vmem:[%s8052_s23 + $0x38] sm:$0xff] }
 0x5bf   : > { %v4334_v60 = vsub.f32 %v4241_v49, %v4325_v55  ;;  %v4488_v9 = vmul.f32 %v6886_v15, %v4477_v57  ;;  %v4494_v28 = vmul.f32 %v6884_v51, %v4477_v57  ;;  %v6937_v49 = vld [vmem:[%s8048_s17 + $0x38] sm:$0xff]  ;;  %v6932_v55 = vld [vmem:[%s8082_s0 + $0x30] sm:$0xff] }
 0x5c0   : > { %v4487_v61 = vmul.f32 %v6885_v53, %v4335_v54  ;;  %v4497_v62 = vmul.f32 %v6887_v35, %v4335_v54  ;;  %v6933_v57 = vld [vmem:[%s8082_s0 + $0x38] sm:$0xff]  ;;  %s6800_s0 = sshll.u32 %s8618_s20, 1 }
 0x5c1   : > { %v4486_v7 = vmul.f32 %v6884_v51, %v4334_v60  ;;  %v4496_v8 = vmul.f32 %v6886_v15, %v4334_v60  ;;  %v6934_v60 = vld [vmem:[%s8101_s28 + $0xc] sm:$0xf] }
 0x5c2   : > { %v4491_v30 = vsub.f32 %v4487_v61, %v4489_v63  ;;  %v4499_v36 = vadd.f32 %v4497_v62, %v4495_v5  ;;  %v4571_v40 = vpop.f32.mrb[40].mxu1  ;;  %v6935_v61 = vld [vmem:[%s8109_s14 + $0xc] sm:$0xf]  ;;  %v7620_v62 = vpack.c.bf16 %v6933_v57, %v6932_v55  ;;  %v6942_v63 = vld [vmem:[%s8129_s27 + $0x30] sm:$0xff]  ;;  %s6806_s14 = sshll.u32 %s8616_s21, 2 }
 0x5c3   : > { %v4490_v42 = vsub.f32 %v4486_v7, %v4488_v9  ;;  %v4498_v43 = vadd.f32 %v4496_v8, %v4494_v28  ;;  %v7398_v10 = vpop.f32.mrb[41].mxu1  ;;  %v6943_v5 = vld [vmem:[%s8129_s27 + $0x38] sm:$0xff]  ;;  %s1359_s27 = sadd.s32 %s6806_s14, %s8618_s20  ;;  %s8601_s20 = sld [smem:[#allocation18_spill]] }
 0x5c4   : > { %v8389_v58 = vadd.f32 %v4491_v30, %v8269_v0  ;;  %v8392_v59 = vadd.f32 %v4499_v36, %v8272_v1  ;;  %v6940_v1 = vld [vmem:[%s8008_s18 + $0xc] sm:$0xf]  ;;  %v7629_v7 = vpack.c.bf16 %v6943_v5, %v6942_v63 }
 0x5c5   : > { %v8395_v16 = vadd.f32 %v4490_v42, %v8277_v3  ;;  %v8398_v17 = vadd.f32 %v4498_v43, %v8280_v4  ;;  %v8414_v3 = vld [vmem:[%s8014_s15 + $0xc] sm:$0xf] }
 0x5c6   : > { %v4644_v18 = vpop.f32.mrb[42].mxu1  ;;  %v6941_v4 = vld [vmem:[%s8029_s16 + $0xc] sm:$0xf] }
 0x5c7   : > { %v4648_v20 = vsub.f32 %v4571_v40, %v4644_v18  ;;  %v7405_v21 = vpop.f32.mrb[43].mxu1 }
 0x5c9   : > { %7425 = vmatmul.mubr.msk.f32.vlgmr.msra.gmra.mrb[44].mxu1 %vm2019_vm3, %v4648_v20 }
 0x5ca   : > { %v4785_v22 = vpop.f32.mrb[20].mxu0  ;;  %7609 = vmatpush3.bf16.msra.mxu1 %v7608_v19  ;;  %7431 = vmatprep.mubr.msk.f32.mxu1 %vm7788_vm1, %v7787_v56 }
 0x5cb   : > { %v7419_v0 = vpop.f32.mrb[21].mxu0  ;;  %7439 = vmatmul.mubr.msk.f32.vlgmr.msra.gmra.mrb[22].mxu0 %vm2019_vm3, %v4785_v22  ;;  %7448 = vmatprep.subr.mxu1 %v7787_v56 }
 0x5cc   : > { %7615 = vmatpush3.bf16.msra.mxu0 %v7608_v19  ;;  %7445 = vmatprep.mubr.msk.f32.mxu0 %vm7788_vm1, %v7787_v56 }
 0x5cd   : > { %7432 = vmatmul.mubr.msk.f32.vlgmr.msra.gmra.mrb[46].mxu1 %vm2019_vm3, %v4785_v22  ;;  %7458 = vmatprep.subr.mxu0 %v7787_v56 }
 0x5ce   : > { %7449 = vmatpush3.msk.msra.mxu1 %vm1392_vm0, %v6940_v1  ;;  %7450 = vmatprep.mubr.msk.f32.mxu1 %vm7788_vm1, %v7787_v56 }
 0x5cf   : > { %7453 = vmatprep.subr.mxu1 %v7787_v56 }
 0x5d1   : > { %7451 = vmatmul.mubr.msk.f32.vlgmr.msra.gmra.mrb[48].mxu1 %vm1388_vm2, %v8414_v3 }
 0x5d2   : > { %7454 = vmatpush3.msk.msra.mxu1 %vm1392_vm0, %v6941_v4  ;;  %7455 = vmatprep.mubr.msk.f32.mxu1 %vm7788_vm1, %v7787_v56 }
 0x5d3   : > { %7446 = vmatmul.mubr.msk.f32.vlgmr.msra.gmra.mrb[22].mxu0 %vm2019_vm3, %v4648_v20 }
 0x5d4   : > { %7459 = vmatpush3.msk.msra.mxu0 %vm1392_vm0, %v6940_v1  ;;  %7460 = vmatprep.mubr.msk.f32.mxu0 %vm7788_vm1, %v7787_v56 }
 0x5d5   : > { %7456 = vmatmul.mubr.msk.f32.vlgmr.msra.gmra.mrb[50].mxu1 %vm1388_vm2, %v8424_v23  ;;  %7463 = vmatprep.subr.mxu0 %v7787_v56 }
 0x5d6   : > { %7470 = vmatprep.mubr.msk.f32.mxu1 %vm1388_vm2, %v6936_v25 }
 0x5d7   : > { %7461 = vmatmul.mubr.msk.f32.vlgmr.msra.gmra.mrb[24].mxu0 %vm1388_vm2, %v8424_v23 }
 0x5d8   : > { %7464 = vmatpush3.msk.msra.mxu0 %vm1392_vm0, %v6941_v4  ;;  %7465 = vmatprep.mubr.msk.f32.mxu0 %vm7788_vm1, %v7787_v56 }
 0x5df   : > { %7466 = vmatmul.mubr.msk.f32.vlgmr.msra.gmra.mrb[24].mxu0 %vm1388_vm2, %v8414_v3 }
 0x5e0   : > { %7480 = vmatprep.mubr.msk.f32.mxu0 %vm1388_vm2, %v6938_v24 }
 0x69c   : > { %v4858_v26 = vpop.f32.mrb[44].mxu1 }
 0x69d   : > { %v7426_v27 = vpop.f32.mrb[45].mxu1 }
 0x69e   : > { %v6945_v27 = vld [vmem:[%s8142_s29 + $0x38] sm:$0xff] }
 0x6a0   : > { %v4931_v29 = vpop.f32.mrb[46].mxu1 }
 0x6a1   : > { %v4935_v31 = vsub.f32 %v4858_v26, %v4931_v29  ;;  %v7433_v32 = vpop.f32.mrb[47].mxu1  ;;  %v6944_v26 = vld [vmem:[%s8142_s29 + $0x30] sm:$0xff]  ;;  %s6807_s29 = sshll.u32 %s1359_s27, 2 }
 0x6a2   : > { %s1369_s16 = scalar_lea.vmem %s8601_s20, %s6807_s29 }
 0x6a3   : > { %v5076_v6 = vmul.f32 %v8296_v38, %v4935_v31  ;;  %v5081_v14 = vmul.f32 %v8306_v41, %v4935_v31 }
 0x6a4   : > { %v5186_v51 = vpop.f32.mrb[48].mxu1 }
 0x6a5   : > { %v7452_v53 = vpop.f32.mrb[49].mxu1 }
 0x6a6   : > { %v5072_v2 = vpop.f32.mrb[22].mxu0 }
 0x6a7   : > { %v5077_v15 = vmul.f32 %v8306_v41, %v5072_v2  ;;  %v5080_v35 = vmul.f32 %v8296_v38, %v5072_v2  ;;  %v7447_v37 = vpop.f32.mrb[23].mxu0  ;;  %v8465_v38 = vld [vmem:[%s8065_s2 + $0x30] sm:$0xff]  ;;  %v6931_v41 = vld [vmem:[%s8065_s2 + $0x38] sm:$0xff]  ;;  %s6801_s2 = sshll.u32 %s8616_s21, 3  ;;  %v7632_v2 = vpack.c.bf16 %v6945_v27, %v6944_v26 }
 0x6a8   : > { %v5262_v39 = vpop.f32.mrb[50].mxu1  ;;  %v7617_v54 = vpack.c.bf16 %v6931_v41, %v8465_v38  ;;  %s1342_s18 = sadd.s32 %s6801_s2, %s6800_s0 }
 0x6a9   : > { %v5078_v44 = vsub.f32 %v5076_v6, %v5077_v15  ;;  %v5082_v45 = vadd.f32 %v5081_v14, %v5080_v35  ;;  %v5266_v46 = vsub.f32 %v5186_v51, %v5262_v39  ;;  %v7457_v47 = vpop.f32.mrb[51].mxu1  ;;  %s6802_s15 = sshll.u32 %s1342_s18, 3  ;;  %s8600_s18 = sld [smem:[#allocation17_spill]] }
 0x6aa   : > { %s1344_s26 = scalar_lea.vmem %s8584_s12, %s6802_s15  ;;  %s1353_s28 = scalar_lea.vmem %s8585_s13, %s6802_s15 }
 0x6ab   : > { %v8451_v50 = vadd.f32 %v5078_v44, %v8335_v33  ;;  %v8454_v52 = vadd.f32 %v5082_v45, %v8338_v34  ;;  %7468 = vmatprep.subr.msk.mxu1 %vm1392_vm0, %v5266_v46  ;;  %7478 = vmatprep.subr.msk.mxu0 %vm1392_vm0, %v5266_v46 }
 0x6ac   : > { %7469 = vmatpush3.msk.msra.mxu1 %vm1392_vm0, %v5266_v46  ;;  %7479 = vmatpush3.msk.msra.mxu0 %vm1392_vm0, %v5266_v46 }
 0x6ad   : > { %7481 = vmatmul.mubr.msk.f32.vlgmr.msra.gmra.mrb[26].mxu0 %vm1388_vm2, %v6939_v48  ;;  %7471 = vmatmul.mubr.msk.f32.vlgmr.msra.gmra.mrb[52].mxu1 %vm1388_vm2, %v6937_v49 }
 0x6ae   : > { %7475 = vmatprep.mubr.msk.f32.mxu1 %vm1388_vm2, %v6938_v24  ;;  %7485 = vmatprep.mubr.msk.f32.mxu0 %vm1388_vm2, %v6936_v25 }
 0x6af   : > { %s1361_s15 = scalar_lea.vmem %s8600_s18, %s6807_s29 }
 0x6b2   : > { %v5403_v33 = vpop.f32.mrb[24].mxu0 }
 0x6b3   : > { %v7467_v34 = vpop.f32.mrb[25].mxu0  ;;  %7473 = vmatprep.subr.msk.mxu1 %vm1392_vm0, %v5403_v33  ;;  %7483 = vmatprep.subr.msk.mxu0 %vm1392_vm0, %v5403_v33 }
 0x6b4   : > { %7474 = vmatpush3.msk.msra.mxu1 %vm1392_vm0, %v5403_v33  ;;  %7484 = vmatpush3.msk.msra.mxu0 %vm1392_vm0, %v5403_v33 }
 0x6b5   : > { %7476 = vmatmul.mubr.msk.f32.vlgmr.msra.gmra.mrb[54].mxu1 %vm1388_vm2, %v6939_v48  ;;  %7486 = vmatmul.mubr.msk.f32.vlgmr.msra.gmra.mrb[26].mxu0 %vm1388_vm2, %v6937_v49 }
 0x6b6   : > { %7616 = vmatprep.subr.bf16.mxu1 %v7789_v13  ;;  %7622 = vmatprep.subr.bf16.mxu0 %v7789_v13 }
 0x6b7   : > { %7618 = vmatpush3.bf16.msra.mxu1 %v7617_v54  ;;  %7624 = vmatpush3.bf16.msra.mxu0 %v7617_v54 }
 0x6b8   : > { %7492 = vmatprep.mubr.msk.f32.mxu1 %vm7788_vm1, %v7787_v56  ;;  %7506 = vmatprep.mubr.msk.f32.mxu0 %vm7788_vm1, %v7787_v56 }
 0x6b9   : > { %7619 = vmatprep.subr.bf16.mxu1 %v7789_v13  ;;  %7625 = vmatprep.subr.bf16.mxu0 %v7789_v13 }
 0x6ba   : > { %7493 = vmatmul.mubr.msk.f32.vlgmr.msra.gmra.mrb[56].mxu1 %vm2019_vm3, %v6934_v60  ;;  %7507 = vmatmul.mubr.msk.f32.vlgmr.msra.gmra.mrb[28].mxu0 %vm2019_vm3, %v6935_v61 }
 0x6bb   : > { %7621 = vmatpush3.bf16.msra.mxu1 %v7620_v62  ;;  %7499 = vmatprep.mubr.msk.f32.mxu1 %vm7788_vm1, %v7787_v56 }
 0x6bc   : > { %7627 = vmatpush3.bf16.msra.mxu0 %v7620_v62  ;;  %7513 = vmatprep.mubr.msk.f32.mxu0 %vm7788_vm1, %v7787_v56 }
 0x6bd   : > { %7628 = vmatprep.subr.bf16.mxu1 %v7789_v13  ;;  %7634 = vmatprep.subr.bf16.mxu0 %v7789_v13 }
 0x6be   : > { %7500 = vmatmul.mubr.msk.f32.vlgmr.msra.gmra.mrb[58].mxu1 %vm2019_vm3, %v6935_v61 }
 0x6bf   : > { %7520 = vmatprep.mubr.msk.f32.mxu1 %vm7788_vm1, %v7787_v56  ;;  %7630 = vmatpush3.bf16.msra.mxu1 %v7629_v7 }
 0x6c0   : > { %7631 = vmatprep.subr.bf16.mxu1 %v7789_v13 }
 0x6c2   : > { %7514 = vmatmul.mubr.msk.f32.vlgmr.msra.gmra.mrb[28].mxu0 %vm2019_vm3, %v6934_v60 }
 0x6c3   : > { %7534 = vmatprep.mubr.msk.f32.mxu0 %vm7788_vm1, %v7787_v56  ;;  %7636 = vmatpush3.bf16.msra.mxu0 %v7629_v7 }
 0x6c4   : > { %7637 = vmatprep.subr.bf16.mxu0 %v7789_v13 }
 0x780   : > { %v7472_v8 = vpop.f32.mrb[52].mxu1 }
 0x781   : > { %v5482_v9 = vpop.f32.mrb[53].mxu1 }
 0x788   : > { %v7477_v28 = vpop.f32.mrb[54].mxu1  ;;  %v7487_v30 = vpop.f32.mrb[26].mxu0 }
 0x789   : > { %v5576_v36 = vsub.f32 %v7472_v8, %v7477_v28  ;;  %v5566_v40 = vpop.f32.mrb[55].mxu1  ;;  %v5718_v42 = vpop.f32.mrb[27].mxu0  ;;  %v5730_v13 = vmul.f32 %v7487_v30, %v6933_v57  ;;  %v5736_v12 = vmul.f32 %v7487_v30, %v6931_v41 }
 0x78a   : > { %v5575_v43 = vsub.f32 %v5482_v9, %v5566_v40  ;;  %v5729_v20 = vmul.f32 %v6932_v55, %v5718_v42  ;;  %v5735_v21 = vmul.f32 %v8465_v38, %v5718_v42 }
 0x78b   : > { %v5728_v10 = vmul.f32 %v6931_v41, %v5576_v36  ;;  %v5738_v11 = vmul.f32 %v6933_v57, %v5576_v36 }
 0x78c   : > { %v5727_v18 = vmul.f32 %v8465_v38, %v5575_v43  ;;  %v5737_v19 = vmul.f32 %v6932_v55, %v5575_v43 }
 0x78d   : > { %v5732_v22 = vsub.f32 %v5728_v10, %v5730_v13  ;;  %v5740_v0 = vadd.f32 %v5738_v11, %v5736_v12  ;;  %v5812_v1 = vpop.f32.mrb[56].mxu1 }
 0x78e   : > { %v5731_v4 = vsub.f32 %v5727_v18, %v5729_v20  ;;  %v5739_v24 = vadd.f32 %v5737_v19, %v5735_v21  ;;  %v7494_v25 = vpop.f32.mrb[57].mxu1 }
 0x78f   : > { %v5734_v29 = vadd.f32 %v5732_v22, %v8389_v58  ;;  %v5742_v31 = vadd.f32 %v5740_v0, %v8392_v59 }
 0x790   : > { %v5733_v32 = vadd.f32 %v5731_v4, %v8395_v16  ;;  %v5741_v51 = vadd.f32 %v5739_v24, %v8398_v17 }
 0x791   : > { %6326 = vst.msk [vmem:[%s1344_s26 + $0x8] sm:$0xff] %vm2019_vm3, %v5734_v29  ;;  %6328 = vst.msk [vmem:[%s1353_s28 + $0x8] sm:$0xff] %vm2019_vm3, %v5742_v31  ;;  %v5885_v53 = vpop.f32.mrb[58].mxu1 }
 0x792   : > { %6325 = vst.msk [vmem:[%s1344_s26] sm:$0xff] %vm2019_vm3, %v5733_v32  ;;  %6327 = vst.msk [vmem:[%s1353_s28] sm:$0xff] %vm2019_vm3, %v5741_v51  ;;  %v5889_v6 = vsub.f32 %v5812_v1, %v5885_v53  ;;  %v7501_v14 = vpop.f32.mrb[59].mxu1 }
 0x794   : > { %7521 = vmatmul.mubr.msk.f32.vlgmr.msra.gmra.mrb[60].mxu1 %vm2019_vm3, %v5889_v6 }
 0x795   : > { %v6026_v58 = vpop.f32.mrb[28].mxu0  ;;  %7633 = vmatpush3.bf16.msra.mxu1 %v7632_v2  ;;  %7527 = vmatprep.mubr.msk.f32.mxu1 %vm7788_vm1, %v7787_v56 }
 0x796   : > { %v7515_v59 = vpop.f32.mrb[29].mxu0  ;;  %7535 = vmatmul.mubr.msk.f32.vlgmr.msra.gmra.mrb[30].mxu0 %vm2019_vm3, %v6026_v58 }
 0x797   : > { %7639 = vmatpush3.bf16.msra.mxu0 %v7632_v2  ;;  %7541 = vmatprep.mubr.msk.f32.mxu0 %vm7788_vm1, %v7787_v56 }
 0x798   : > { %7528 = vmatmul.mubr.msk.f32.vlgmr.msra.gmra.mrb[62].mxu1 %vm2019_vm3, %v6026_v58 }
 0x79e   : > { %7542 = vmatmul.mubr.msk.f32.vlgmr.msra.gmra.mrb[30].mxu0 %vm2019_vm3, %v5889_v6 }
 0x867   : > { %v6099_v16 = vpop.f32.mrb[60].mxu1 }
 0x868   : > { %v7522_v17 = vpop.f32.mrb[61].mxu1 }
 0x86b   : > { %v6172_v15 = vpop.f32.mrb[62].mxu1 }
 0x86c   : > { %v6176_v35 = vsub.f32 %v6099_v16, %v6172_v15  ;;  %v7529_v37 = vpop.f32.mrb[63].mxu1 }
 0x86e   : > { %v6317_v44 = vmul.f32 %v8414_v3, %v6176_v35  ;;  %v6322_v45 = vmul.f32 %v8424_v23, %v6176_v35 }
 0x871   : > { %v6313_v39 = vpop.f32.mrb[30].mxu0 }
 0x872   : > { %v6318_v46 = vmul.f32 %v8424_v23, %v6313_v39  ;;  %v6321_v56 = vmul.f32 %v8414_v3, %v6313_v39  ;;  %v7543_v47 = vpop.f32.mrb[31].mxu0 }
 0x874   : > { %v6319_v48 = vsub.f32 %v6317_v44, %v6318_v46  ;;  %v6323_v49 = vadd.f32 %v6322_v45, %v6321_v56 }
 0x876   : > { %v6320_v38 = vadd.f32 %v6319_v48, %v8451_v50  ;;  %v6324_v41 = vadd.f32 %v6323_v49, %v8454_v52 }
 0x878   : > { %6330 = vst.msk [vmem:[%s1361_s15] sm:$0xf] %vm6329_vm4, %v6320_v38  ;;  %6331 = vst.msk [vmem:[%s1369_s16] sm:$0xf] %vm6329_vm4, %v6324_v41 }
 0x879 PF: > { %s26_s24 = sadd.s32 1, %s7785_s24   ;;  %s8602_s21 = sld [smem:[#allocation12_spill]] }
 0x87a   : > { %p23_p12 = scmp.ge.s32.totalorder %s26_s24, 10   ;;  %s8603_s26 = sld [smem:[#allocation13_spill]] }
 0x87b   : > { %s8604_s23 = sld [smem:[#allocation14_spill]]  ;;  %s8605_s18 = smov %s7765_s19 }
 0x87c   : > { %s8606_s19 = smov %s7923_s30  ;;  %s8607_s20 = smov %s7777_s22 }
 0x87d   :  { %25 = sbr.rel (!%p23_p12) target bundleno = 9 (0x9), region = 651 }
 0x880   : > { %s8608_s22 = smov %s8603_s26 }

</bundles_post_ra>
